<compile_context>
chip_gen: v7x
topology: tpu7x:2x2x1
jax: 0.10.0
libtpu: 0.0.40
codegen_flags: <defaults>
</compile_context>

<pallas_src>
import datetime

import numpy as np
import jax
import jax.numpy as jnp
from jax.experimental import pallas as pl
from jax.experimental.pallas import tpu as pltpu

N_WEEKS = 53
N_DAYS = 7
N_HOURS = 24
N_SLOTS = N_DAYS * N_HOURS        # 168 time slots per sample
N_ROWS = N_WEEKS * N_DAYS         # 371 (week, weekday) rows
K_PAD = 384                       # 371 padded up to 3 * 128 lanes for the MXU
YEAR0 = 2015
TB_MAX = 64                       # cap samples/step; the (384, N) one-hot is
                                  # ~0.25 MiB per sample, so tb=64 -> ~16 MiB,
                                  # covered by the explicit vmem_limit below.


def _cdiv(a, b):
    return -(-a // b)


def _round_up(x, m):
    return _cdiv(x, m) * m


def _vmem_limit_bytes(n_pad):
    """Generous scoped-VMEM estimate (bytes) for one grid step, with margin."""
    onehot_like = K_PAD * n_pad * 4           # (384, N) iota / compare / one-hot
    hour_like = N_HOURS * n_pad * 4           # (24, N) rows_t / mask / select
    io = 2 * (8 * n_pad * 4) + 2 * (n_pad * 4)  # double-buffered in/out blocks
    table = 2 * N_HOURS * K_PAD * 4           # resident table (+ spare buffer)
    est = 3 * onehot_like + 3 * hour_like + io + table + (4 << 20)
    # Clamp: at least 24 MiB (margin over the estimate), at most 48 MiB so we
    # always leave headroom on v7x's 64 MiB physical VMEM.
    return int(min(max(est, 24 << 20), 48 << 20))


def naive_kernel(idx_ref, table_ref, out_ref):
    """One grid step == tb batch samples, (sample, slot) flattened on lanes.

    idx_ref:   VMEM (1, 8, N) int32 -> rows / hours / f32 affine bits / zero pad
    table_ref: VMEM (24, 384) f32   -> transposed, lane-padded seasonal_delta
                                       (hours on sublanes, (week,weekday) rows
                                        on lanes); constant index_map => resident
    out_ref:   VMEM (1, 1, N) f32
    """
    row_idx = idx_ref[0, 0:1, :]                               # (1, N) int32
    hour_idx = idx_ref[0, 1:2, :]                              # (1, N) int32
    affine = pltpu.bitcast(idx_ref[0, 2:3, :], jnp.float32)    # (1, N) f32

    n = row_idx.shape[-1]

    # One-hot over the (week, weekday) rows: rows on sublanes, slots on lanes.
    # TODO(synk): on v6e/v7x an int16 iota/compare + bf16 one-hot would halve
    # VALU traffic here; needs a bundle-dump check before adopting.
    row_iota = jax.lax.broadcasted_iota(jnp.int32, (K_PAD, n), 0)
    onehot = (row_iota == row_idx).astype(jnp.float32)          # (384, N)

    # MXU gather of the per-slot table row: (24, 384) @ (384, N) -> (24, N).
    # HIGHEST precision keeps the gathered f32 table entry exact (one-hot has
    # exactly one 1.0 per column, so multi-pass accumulation is exact).
    rows_t = jnp.dot(table_ref[...], onehot,
                     preferred_element_type=jnp.float32,
                     precision=jax.lax.Precision.HIGHEST)       # (24, N)

    # Hour select: mask + cross-sublane reduction (XLU slot), then the
    # precomputed affine term and one wide unmasked lane-dense store.
    hour_iota = jax.lax.broadcasted_iota(jnp.int32, (N_HOURS, n), 0)
    sel = jnp.where(hour_iota == hour_idx, rows_t, 0.0)
    out_ref[0] = jnp.sum(sel, axis=0, keepdims=True) + affine


def naive_model_pallas(seasonal_delta, cosmic_slope, cosmic_intersection,
                       row_idx, hour_idx, year_off, *, tb=16):
    """row_idx / hour_idx / year_off are (B, 168) int32 host arrays."""
    batch, n_slots = row_idx.shape

    # Samples per grid step.  No forced multi-step split: on single-TC
    # v5e/v6e the grid is a sequential loop, so one big lane-dense step is
    # cheapest; multi-step only happens naturally when batch > tb.
    tb = max(1, min(tb, TB_MAX, batch))
    num_blocks = _cdiv(batch, tb)
    b_pad = num_blocks * tb
    n = tb * n_slots
    n_pad = _round_up(n, 128)     # unmasked vregs/stores even for tiny batches

    # Precompute the affine year term and carry it as f32 bits in the packed
    # int32 index array (drops the in-kernel cast/mul/add and SMEM scalars).
    slope = jnp.asarray(cosmic_slope, jnp.float32)
    intercept = jnp.asarray(cosmic_intersection, jnp.float32)
    affine = (slope * jnp.asarray(year_off, jnp.float32) + intercept)
    affine_bits = jax.lax.bitcast_convert_type(
        affine.astype(jnp.float32), jnp.int32)                    # (B, 168)

    # Pack the per-slot streams into ONE int32 array (single DMA per step);
    # flatten (sample, slot) onto lanes, pad sublanes to 8 and lanes to 128*.
    packed = jnp.stack([jnp.asarray(row_idx, jnp.int32),
                        jnp.asarray(hour_idx, jnp.int32),
                        affine_bits], axis=1)                     # (B, 3, 168)
    if b_pad != batch:
        packed = jnp.pad(packed, ((0, b_pad - batch), (0, 0), (0, 0)))
    packed = (packed.reshape(num_blocks, tb, 3, n_slots)
                    .transpose(0, 2, 1, 3)
                    .reshape(num_blocks, 3, n))
    packed = jnp.pad(packed, ((0, 0), (0, 8 - 3), (0, n_pad - n)))  # (nb,8,Np)

    # Transposed, lane-padded table: (24 hours, 384 rows); padded rows
    # 371..383 are zero and never selected (row index max is 370).
    table_t = jnp.zeros((N_HOURS, K_PAD), jnp.float32)
    table_t = table_t.at[:, :N_ROWS].set(
        jnp.asarray(seasonal_delta, jnp.float32).reshape(N_ROWS, N_HOURS).T)

    out = pl.pallas_call(
        naive_kernel,
        out_shape=jax.ShapeDtypeStruct((num_blocks, 1, n_pad), jnp.float32),
        grid=(num_blocks,),
        in_specs=[
            pl.BlockSpec((1, 8, n_pad), lambda b: (b, 0, 0)),       # packed idx
            pl.BlockSpec((N_HOURS, K_PAD), lambda b: (0, 0)),       # table (resident)
        ],
        out_specs=pl.BlockSpec((1, 1, n_pad), lambda b: (b, 0, 0)),
        compiler_params=pltpu.CompilerParams(
            dimension_semantics=("parallel",),
            vmem_limit_bytes=_vmem_limit_bytes(n_pad)),
    )(packed, table_t)

    # (num_blocks, 1, n_pad) -> (B, 168, 1); drop lane and batch padding.
    out = out.reshape(num_blocks, n_pad)[:, :n].reshape(b_pad, n_slots)[:batch]
    return out[..., None]


def metadata_to_indices(metadata):
    """Host-side glue: parse 'YYYY-MM-DD HH:MM:SS' strings -> integer indices.
    # TODO(synk): datetime / isocalendar parsing has no Pallas equivalent;
    # it stays in Python, exactly as in the reference forward()."""
    rows, hours, yoffs = [], [], []
    for sample in metadata:
        r, h, y = [], [], []
        for s in sample:
            dpart, tpart = s.split()
            d = datetime.date(*[int(t) for t in dpart.split('-')])
            iso = d.isocalendar()
            iso_year, iso_week, iso_weekday = iso[0], iso[1], iso[2]
            r.append((iso_week - 1) * N_DAYS + (iso_weekday - 1))
            h.append(int(tpart.split(':')[0]))
            y.append(iso_year - YEAR0)          # exact small integer
        rows.append(r)
        hours.append(h)
        yoffs.append(y)
    return (np.asarray(rows, np.int32),
            np.asarray(hours, np.int32),
            np.asarray(yoffs, np.int32))


def naive_model_forward(x, seasonal_delta, cosmic_slope, cosmic_intersection,
                        *, tb=16):
    """Mirrors NaiveModel.forward: x = (loaddata, metadata)."""
    loaddata, metadata = x
    # The reference NaiveModel.forward only shape-checks loaddata; it does not
    # contribute to the output, so it is intentionally unused here as well.
    assert loaddata.shape == (len(metadata), len(metadata[0]), 1)
    assert len(metadata[0]) == N_SLOTS
    row_idx, hour_idx, year_off = metadata_to_indices(metadata)
    return naive_model_pallas(seasonal_delta, cosmic_slope, cosmic_intersection,
                              row_idx, hour_idx, year_off, tb=tb)


if __name__ == "__main__":
    key = jax.random.PRNGKey(0)
    k_sd, k_load = jax.random.split(key)

    # Deterministic parameter init (shapes implied by __init__: (53, 7, 24)
    # table plus scalar slope / intersection).
    seasonal_delta = jax.random.normal(k_sd, (N_WEEKS, N_DAYS, N_HOURS),
                                       dtype=jnp.float32)
    cosmic_slope = 0.5
    cosmic_intersection = 1.25

    # Small synthetic batch: 2 samples x 168 consecutive hourly timestamps.
    batch = 2
    starts = [datetime.datetime(2016, 1, 4, 0, 0, 0),
              datetime.datetime(2017, 6, 15, 5, 0, 0)]
    metadata = []
    for b in range(batch):
        sample = []
        for j in range(N_SLOTS):
            t = starts[b] + datetime.timedelta(hours=j)
            sample.append(t.strftime("%Y-%m-%d %H:%M:%S"))
        metadata.append(sample)

    loaddata = jax.random.normal(k_load, (batch, N_SLOTS, 1), dtype=jnp.float32)

    out = naive_model_forward((loaddata, metadata), seasonal_delta,
                              cosmic_slope, cosmic_intersection)
    out = jax.block_until_ready(out)

    # Reference (plain numpy) check of the gather + affine term.
    sd_np = np.asarray(seasonal_delta)
    expected = np.empty((batch, N_SLOTS, 1), np.float32)
    for i in range(batch):
        for j in range(N_SLOTS):
            t = starts[i] + datetime.timedelta(hours=j)
            iso = t.date().isocalendar()
            week, weekday, year = iso[1], iso[2], iso[0]
            hour = t.hour
            expected[i, j, 0] = (sd_np[week - 1, weekday - 1, hour]
                                 + cosmic_intersection
                                 + cosmic_slope * (year - YEAR0))

    assert out.shape == (batch, N_SLOTS, 1)
    np.testing.assert_allclose(np.asarray(out), expected, rtol=1e-6, atol=1e-6)
    print("KERNEL_OK")
</pallas_src>

<mosaic_0001>
module attributes {stable_mosaic.version = 11 : i64} {
  func.func @naive_kernel(%arg0: i32, %arg1: memref<1x8x384xi32, #tpu.memory_space<vmem>>, %arg2: memref<24x384xf32, #tpu.memory_space<vmem>>, %arg3: memref<1x1x384xf32, #tpu.memory_space<vmem>>) attributes {dimension_semantics = [#tpu.dimension_semantics<parallel>], iteration_bounds = array<i64: 1>, scalar_prefetch = 0 : i64, scratch_operands = 0 : i64, tpu.core_type = #tpu.core_type<tc>, window_params = [{transform_indices = @transform_0, window_bounds = array<i64: 1, 8, 384>}, {pipeline_mode = #tpu.pipeline_mode<synchronous>, transform_indices = @transform_1, window_bounds = array<i64: 24, 384>}, {transform_indices = @transform_2, window_bounds = array<i64: 1, 1, 384>}]} {
    %c0 = arith.constant 0 : index
    %c0_0 = arith.constant 0 : index
    %c0_1 = arith.constant 0 : index
    %0 = vector.load %arg1[%c0, %c0_0, %c0_1] : memref<1x8x384xi32, #tpu.memory_space<vmem>>, vector<1x1x384xi32>
    %1 = vector.shape_cast %0 : vector<1x1x384xi32> to vector<1x384xi32>
    %c0_2 = arith.constant 0 : index
    %c1 = arith.constant 1 : index
    %c0_3 = arith.constant 0 : index
    %2 = vector.load %arg1[%c0_2, %c1, %c0_3] : memref<1x8x384xi32, #tpu.memory_space<vmem>>, vector<1x1x384xi32>
    %3 = vector.shape_cast %2 : vector<1x1x384xi32> to vector<1x384xi32>
    %c0_4 = arith.constant 0 : index
    %c2 = arith.constant 2 : index
    %c0_5 = arith.constant 0 : index
    %4 = vector.load %arg1[%c0_4, %c2, %c0_5] : memref<1x8x384xi32, #tpu.memory_space<vmem>>, vector<1x1x384xi32>
    %5 = vector.shape_cast %4 : vector<1x1x384xi32> to vector<1x384xi32>
    %6 = tpu.bitcast %5 : vector<1x384xi32> -> vector<1x384xf32>
    %7 = tpu.iota {dimensions = array<i32: 0>} : vector<384x384xi32>
    %8 = vector.broadcast %1 : vector<1x384xi32> to vector<384x384xi32>
    %9 = arith.cmpi eq, %7, %8 : vector<384x384xi32>
    %10 = arith.extui %9 : vector<384x384xi1> to vector<384x384xi32>
    %11 = arith.sitofp %10 : vector<384x384xi32> to vector<384x384xf32>
    %c0_6 = arith.constant 0 : index
    %c0_7 = arith.constant 0 : index
    %12 = vector.load %arg2[%c0_6, %c0_7] : memref<24x384xf32, #tpu.memory_space<vmem>>, vector<24x384xf32>
    %cst = arith.constant dense<0.000000e+00> : vector<24x384xf32>
    %13 = tpu.matmul %12, %11, %cst {dimension_numbers = #tpu.dot_dimension_numbers<[1], [0], [0], [1], [0, 0, 1, 1], [], []>, precision = #tpu.contract_precision<fp32>} : vector<24x384xf32>, vector<384x384xf32>, vector<24x384xf32> -> vector<24x384xf32>
    %14 = tpu.iota {dimensions = array<i32: 0>} : vector<24x384xi32>
    %15 = vector.broadcast %3 : vector<1x384xi32> to vector<24x384xi32>
    %16 = arith.cmpi eq, %14, %15 : vector<24x384xi32>
    %cst_8 = arith.constant 0.000000e+00 : f32
    %17 = vector.broadcast %cst_8 : f32 to vector<24x384xf32>
    %18 = arith.select %16, %13, %17 : vector<24x384xi1>, vector<24x384xf32>
    %cst_9 = arith.constant dense<0.000000e+00> : vector<384xf32>
    %19 = vector.multi_reduction <add>, %18, %cst_9 [0] : vector<24x384xf32> to vector<384xf32>
    %20 = vector.shape_cast %19 : vector<384xf32> to vector<1x384xf32>
    %21 = arith.addf %20, %6 : vector<1x384xf32>
    %c0_10 = arith.constant 0 : index
    %c0_11 = arith.constant 0 : index
    %c0_12 = arith.constant 0 : index
    %22 = vector.load %arg3[%c0_10, %c0_11, %c0_12] : memref<1x1x384xf32, #tpu.memory_space<vmem>>, vector<1x1x384xf32>
    %23 = vector.shape_cast %22 : vector<1x1x384xf32> to vector<1x384xf32>
    %24 = vector.shape_cast %21 : vector<1x384xf32> to vector<1x1x384xf32>
    tpu.vector_store %arg3[%c0_10, %c0_11, %c0_12], %24 {strides = array<i32>} : memref<1x1x384xf32, #tpu.memory_space<vmem>>, vector<1x1x384xf32>,
    return
  }
  func.func @transform_0(%arg0: i32) -> (i32, i32, i32) {
    %c0_i32 = arith.constant 0 : i32
    %c0_i32_0 = arith.constant 0 : i32
    %c0_i32_1 = arith.constant 0 : i32
    return %arg0, %c0_i32, %c0_i32_0 : i32, i32, i32
  }
  func.func @transform_1(%arg0: i32) -> (i32, i32) {
    %c0_i32 = arith.constant 0 : i32
    %c0_i32_0 = arith.constant 0 : i32
    %c0_i32_1 = arith.constant 0 : i32
    return %c0_i32, %c0_i32_0 : i32, i32
  }
  func.func @transform_2(%arg0: i32) -> (i32, i32, i32) {
    %c0_i32 = arith.constant 0 : i32
    %c0_i32_0 = arith.constant 0 : i32
    %c0_i32_1 = arith.constant 0 : i32
    return %arg0, %c0_i32, %c0_i32_0 : i32, i32, i32
  }
}

</mosaic_0001>

<bundles_post_ra>
// kernel: tpu_custom_call.1
= control target key start
LH: loop header
LB: loop body
LE: loop exit
PB: predicated region body
PF: predicated region fallthrough
CT: control target
= control target key end

     0   :  { %7 = vsyncpa [#allocation3], 0  ;;  %s11070_s0 = inlined_call_operand.hbm [shape: s32[1,8,384], index: 0, kind: input, shape index: {}]   ;;  %s11071_s1 = inlined_call_operand.hbm [shape: f32[24,384], index: 1, kind: input, shape index: {}]   ;;  %s11072_s2 = inlined_call_operand.hbm [shape: f32[1,1,384], index: 2, kind: output, shape index: {}]  }
   0x1   :  { %8 = vsyncpa [#allocation6], 0 }
   0x2   :  { %9 = vsyncpa [#allocation4], 0  ;;  %s7003_s9 = smov [#allocation2]   ;;  %s7004_s11 = smov [#allocation5]  }
   0x3   :  { %s16_s10 = sshll.u32 %s7003_s9, 4  ;;  %s25_s12 = sshll.u32 %s7004_s11, 4  ;;  %s17_s10 = int_to_ptr.vmem [resolvable:$true] %s16_s10  ;;  %s7028_s12 = int_to_ptr.vmem [resolvable:$true] %s25_s12 }
   0x4   :  { %s6931_s15 = scalar_lea.hbm %s11070_s0, 384 }
   0x5   :  { %p6932_p0 = scmp.ne.s32.totalorder %s11070_s0, %s6931_s15  ;;  %p6935_p1 = scmp.lt.u32.totalorder %s6931_s15, %s11070_s0 }
   0x7   :  { %p6937_p2 = pnand %p6935_p1, %p6932_p0 }
   0x9   :  { %6940 = shalt.err (!%p6937_p2)
}
   0xa   :  { %s6941_s20 = scalar_lea.vmem %s17_s10, 384  ;;  %p6946_p4 = scmp.lt.s32.totalorder %s17_s10, %s17_s10 }
   0xb   :  { %p6942_p3 = scmp.ne.s32.totalorder %s17_s10, %s6941_s20  ;;  %p6947_p5 = scmp.lt.s32.totalorder %s6941_s20, %s6941_s20 }
   0xd   :  { %p6948_p6 = por %p6947_p5, %p6946_p4 }
   0xf   :  { %p6949_p7 = pnand %p6948_p6, %p6942_p3 }
  0x11   :  { %6952 = shalt.err (!%p6949_p7)
}
  0x12   :  { %19 = dma.hbm_to_vmem [thread:$0]  %s11070_s0, 384, %s17_s10, [#allocation3]  }
  0x13   :  { %s6953_s25 = scalar_lea.hbm %s11071_s1, 1152 }
  0x14   :  { %p6954_p8 = scmp.ne.s32.totalorder %s11071_s1, %s6953_s25  ;;  %p6957_p9 = scmp.lt.u32.totalorder %s6953_s25, %s11071_s1 }
  0x16   :  { %p6959_p10 = pnand %p6957_p9, %p6954_p8 }
  0x18   :  { %6962 = shalt.err (!%p6959_p10)
}
  0x19   :  { %s6963_s30 = scalar_lea.vmem %s7028_s12, 1152  ;;  %p6968_p12 = scmp.lt.s32.totalorder %s7028_s12, %s7028_s12 }
  0x1a   :  { %p6964_p11 = scmp.ne.s32.totalorder %s7028_s12, %s6963_s30  ;;  %p6969_p13 = scmp.lt.s32.totalorder %s6963_s30, %s6963_s30 }
  0x1c   :  { %p6970_p0 = por %p6969_p13, %p6968_p12 }
  0x1e   :  { %p6971_p1 = pnand %p6970_p0, %p6964_p11 }
  0x20   :  { %6974 = shalt.err (!%p6971_p1)
}
  0x21   :  { %s7005_s0 = smov 384   ;;  %s7006_s3 = smov 24  }
  0x22   :  { %31 = dma.hbm_to_vmem [thread:$0]  %s11071_s1, 1152, %s7028_s12, [#allocation6], %s7005_s0, %s7005_s0, %s7006_s3  }
  0x23   :  { %6997 = dma.done.wait [#allocation3], 384  }
  0x24   :  { %6998 = vsyncadd [#allocation3], 4294966912 }
  0x25   :  { %6999 = dma.done.wait [#allocation6], 1152  }
  0x26   :  { %7000 = vsyncadd [#allocation6], 4294966144  ;;  %v11073_v0 = vlaneseq  ;;  %v38_v8 = vld [vmem:[#allocation2] ss:$8 sm:$0x7]  ;;  %v11819_v20 = vmov 0 }
  0x27   :  { %v11083_v25 = vmov 0.0   ;;  %v11090_v28 = vmov 1.0|1.0   ;;  %v11824_v31 = vmov 0  ;;  %v11827_v34 = vmov 0  ;;  %s7012_s1 = smov [#allocation7]  }
  0x28   :  { %v7060_v1 = vshrl.u32 %v11073_v0, 7  ;;  %v11834_v41 = vmov 0  ;;  %v11841_v46 = vmov 0  ;;  %v11844_v51 = vmov 0  ;;  %s4717_s6 = sshll.u32 %s7012_s1, 4  ;;  %s4718_s6 = int_to_ptr.vmem [resolvable:$true] %s4717_s6 }
  0x29   :  { %v11847_v60 = vmov 0  ;;  %s6975_s7 = scalar_lea.vmem %s4718_s6, 48  ;;  %s6979_s8 = scalar_lea.vmem %s4718_s6, 64 }
  0x2a   :  { %11801 = vst [vmem:[#allocation11_spill] sm:$0xff] %v7060_v1  ;;  %v7063_v2 = vsub.s32 0, %v7060_v1  ;;  %v7066_v3 = vsub.s32 1, %v7060_v1  ;;  %v7069_v4 = vadd.s32 8, %v7060_v1  ;;  %v7072_v5 = vadd.s32 16, %v7060_v1  ;;  %p6976_p2 = scmp.ne.s32.totalorder %s4718_s6, %s6975_s7  ;;  %p6980_p3 = scmp.lt.s32.totalorder %s4718_s6, %s4718_s6 }
  0x2b   :  { %v7075_v6 = vadd.s32 24, %v7060_v1  ;;  %v7078_v7 = vadd.s32 32, %v7060_v1  ;;  %v7081_v9 = vadd.s32 40, %v7060_v1  ;;  %v7084_v10 = vadd.s32 48, %v7060_v1  ;;  %p6981_p4 = scmp.lt.s32.totalorder %s6979_s8, %s6975_s7 }
  0x2c   :  { %11802 = vst [vmem:[#allocation12_spill] sm:$0xff] %v7063_v2  ;;  %11803 = vst [vmem:[#allocation13_spill] sm:$0xff] %v7066_v3  ;;  %v7087_v11 = vadd.s32 56, %v7060_v1  ;;  %v7090_v12 = vrot.slane %v38_v8, %v7063_v2  ;;  %v7093_v13 = vrot.slane %v38_v8, %v7066_v3  ;;  %v7096_v14 = vadd.s32 64, %v7060_v1 }
  0x2d   :  { %11804 = vst [vmem:[#allocation14_spill] sm:$0xff] %v7069_v4  ;;  %11805 = vst [vmem:[#allocation15_spill] sm:$0xff] %v7072_v5  ;;  %v7099_v15 = vadd.s32 72, %v7060_v1  ;;  %v7102_v16 = vadd.s32 80, %v7060_v1  ;;  %v7105_v17 = vadd.s32 88, %v7060_v1  ;;  %v7108_v18 = vadd.s32 96, %v7060_v1  ;;  %p6982_p5 = por %p6981_p4, %p6980_p3 }
  0x2e   :  { %11806 = vst [vmem:[#allocation16_spill] sm:$0xff] %v7075_v6  ;;  %11807 = vst [vmem:[#allocation17_spill] sm:$0xff] %v7078_v7  ;;  %v7111_v19 = vadd.s32 104, %v7060_v1  ;;  %vm120_vm0 = vcmp.eq.s32.totalorder %v7060_v1, %v7093_v13  ;;  %vm123_vm1 = vcmp.eq.s32.totalorder %v7069_v4, %v7093_v13  ;;  %vm119_vm2 = vcmp.eq.s32.totalorder %v7060_v1, %v7090_v12 }
  0x2f   :  { %11808 = vst [vmem:[#allocation18_spill] sm:$0xff] %v7081_v9  ;;  %11809 = vst [vmem:[#allocation19_spill] sm:$0xff] %v7084_v10  ;;  %vm122_vm3 = vcmp.eq.s32.totalorder %v7069_v4, %v7090_v12  ;;  %v7126_v21 = vadd.s32 112, %v7060_v1  ;;  %v7129_v22 = vadd.s32 120, %v7060_v1  ;;  %v7132_v23 = vadd.s32 128, %v7060_v1  ;;  %p6983_p6 = pnand %p6982_p5, %p6976_p2 }
  0x30   :  { %11810 = vst [vmem:[#allocation20_spill] sm:$0xff] %v7087_v11  ;;  %11811 = vst [vmem:[#allocation21_spill] sm:$0xff] %v7090_v12  ;;  %v7135_v24 = vadd.s32 136, %v7060_v1  ;;  %v4728_v26 = vsel %vm120_vm0, 1.0, %v11083_v25  ;;  %v4731_v27 = vsel %vm123_vm1, 1.0, %v11083_v25  ;;  %v4727_v29 = vsel %vm119_vm2, 1.0, %v11083_v25 }
  0x31   :  { %11812 = vst [vmem:[#allocation22_spill] sm:$0xff] %v7093_v13  ;;  %11813 = vst [vmem:[#allocation23_spill] sm:$0xff] %v7096_v14  ;;  %v4730_v30 = vsel %vm122_vm3, 1.0, %v11083_v25  ;;  %vm126_vm6 = vcmp.eq.s32.totalorder %v7072_v5, %v7093_v13  ;;  %vm129_vm7 = vcmp.eq.s32.totalorder %v7075_v6, %v7093_v13  ;;  %vm125_vm8 = vcmp.eq.s32.totalorder %v7072_v5, %v7090_v12 }
  0x32   :  { %11814 = vst [vmem:[#allocation24_spill] sm:$0xff] %v7099_v15  ;;  %11815 = vst [vmem:[#allocation25_spill] sm:$0xff] %v7102_v16  ;;  %vm128_vm9 = vcmp.eq.s32.totalorder %v7075_v6, %v7090_v12  ;;  %v4734_v32 = vsel %vm126_vm6, 1.0, %v11083_v25  ;;  %v4737_v33 = vsel %vm129_vm7, 1.0, %v11083_v25  ;;  %v4733_v35 = vsel %vm125_vm8, 1.0, %v11083_v25 }
  0x33   :  { %11816 = vst [vmem:[#allocation26_spill] sm:$0xff] %v7105_v17  ;;  %11817 = vst [vmem:[#allocation27_spill] sm:$0xff] %v7108_v18  ;;  %v4736_v36 = vsel %vm128_vm9, 1.0, %v11083_v25  ;;  %v7167_v37 = vsub.f32 %v4728_v26, %v4728_v26  ;;  %v7169_v38 = vsub.f32 %v4731_v27, %v4731_v27  ;;  %v7171_v39 = vsub.f32 %v4727_v29, %v4727_v29 }
  0x34   :  { %11818 = vst [vmem:[#allocation28_spill] sm:$0xff] %v7111_v19  ;;  %vm7121_vm4 = vmpackc.low %vm123_vm1, %vm120_vm0  ;;  %v7173_v40 = vsub.f32 %v4730_v30, %v4730_v30  ;;  %vm132_vm12 = vcmp.eq.s32.totalorder %v7078_v7, %v7093_v13  ;;  %vm135_vm13 = vcmp.eq.s32.totalorder %v7081_v9, %v7093_v13  ;;  %vm131_vm14 = vcmp.eq.s32.totalorder %v7078_v7, %v7090_v12 }
  0x35   :  { %v11820_v20 = vsel %vm7121_vm4, 4294967295, %v11819_v20  ;;  %11822 = vst [vmem:[#allocation30_spill] sm:$0xff] %v7126_v21  ;;  %11823 = vst [vmem:[#allocation31_spill] sm:$0xff] %v7129_v22  ;;  %5910 = vmatprep.subr.msk.bf16.mxu1 %vm7121_vm4, %v11090_v28  ;;  %vm134_vm15 = vcmp.eq.s32.totalorder %v7081_v9, %v7090_v12  ;;  %v7190_v42 = vsub.f32 %v4734_v32, %v4734_v32  ;;  %v4740_v47 = vsel %vm132_vm12, 1.0, %v11083_v25 }
  0x36   :  { %11821 = vst [vmem:[#allocation29_spill] sm:$0xff] %v11820_v20  ;;  %vm7144_vm5 = vmpackc.low %vm122_vm3, %vm119_vm2  ;;  %v7192_v43 = vsub.f32 %v4737_v33, %v4737_v33  ;;  %v7197_v44 = vsub.f32 %v4733_v35, %v4733_v35  ;;  %v7199_v45 = vsub.f32 %v4736_v36, %v4736_v36  ;;  %v4743_v48 = vsel %vm135_vm13, 1.0, %v11083_v25 }
  0x37   :  { %v11825_v31 = vsel %vm7144_vm5, 4294967295, %v11824_v31  ;;  %5912 = vmatpush1.bf16.msk.msra.mxu1 %vm7144_vm5, %v11090_v28  ;;  %vm7161_vm10 = vmpackc.low %vm129_vm7, %vm126_vm6  ;;  %11830 = vst [vmem:[#allocation34_spill] sm:$0xff] %v7167_v37  ;;  %v4739_v49 = vsel %vm131_vm14, 1.0, %v11083_v25  ;;  %v4742_v50 = vsel %vm134_vm15, 1.0, %v11083_v25  ;;  %v11081_v52 = vand.u32 4294901760, %v7167_v37 }
  0x38   :  { %11826 = vst [vmem:[#allocation32_spill] sm:$0xff] %v11825_v31  ;;  %v11828_v34 = vsel %vm7161_vm10, 4294967295, %v11827_v34  ;;  %11831 = vst [vmem:[#allocation35_spill] sm:$0xff] %v7169_v38  ;;  %5914 = vmatprep.subr.msk.bf16.mxu1 %vm7161_vm10, %v11090_v28  ;;  %v11080_v53 = vand.u32 4294901760, %v7169_v38  ;;  %v11079_v54 = vand.u32 4294901760, %v7171_v39  ;;  %v11076_v55 = vand.u32 4294901760, %v7173_v40 }
  0x39   :  { %11829 = vst [vmem:[#allocation33_spill] sm:$0xff] %v11828_v34  ;;  %11832 = vst [vmem:[#allocation36_spill] sm:$0xff] %v7171_v39  ;;  %vm138_vm2 = vcmp.eq.s32.totalorder %v7084_v10, %v7093_v13  ;;  %vm141_vm3 = vcmp.eq.s32.totalorder %v7087_v11, %v7093_v13  ;;  %vm137_vm6 = vcmp.eq.s32.totalorder %v7084_v10, %v7090_v12  ;;  %v11854_v26 = vmov 0 }
  0x3a   :  { %11833 = vst [vmem:[#allocation37_spill] sm:$0xff] %v7173_v40  ;;  %vm7178_vm11 = vmpackc.low %vm128_vm9, %vm125_vm8  ;;  %vm140_vm7 = vcmp.eq.s32.totalorder %v7087_v11, %v7090_v12  ;;  %v740_v56 = vsub.f32 %v7167_v37, %v11081_v52  ;;  %v752_v57 = vsub.f32 %v7169_v38, %v11080_v53  ;;  %v746_v58 = vsub.f32 %v7171_v39, %v11079_v54 }
  0x3b   :  { %v11835_v41 = vsel %vm7178_vm11, 4294967295, %v11834_v41  ;;  %11837 = vst [vmem:[#allocation39_spill] sm:$0xff] %v7190_v42  ;;  %11838 = vst [vmem:[#allocation40_spill] sm:$0xff] %v7192_v43  ;;  %5916 = vmatpush1.bf16.msk.msra.mxu1 %vm7178_vm11, %v11090_v28  ;;  %v758_v59 = vsub.f32 %v7173_v40, %v11076_v55  ;;  %v7253_v61 = vsub.f32 %v4740_v47, %v4740_v47  ;;  %v4746_v33 = vsel %vm138_vm2, 1.0, %v11083_v25 }
  0x3c   :  { %11836 = vst [vmem:[#allocation38_spill] sm:$0xff] %v11835_v41  ;;  %11839 = vst [vmem:[#allocation41_spill] sm:$0xff] %v7197_v44  ;;  %v7255_v62 = vsub.f32 %v4743_v48, %v4743_v48  ;;  %v7257_v63 = vsub.f32 %v4739_v49, %v4739_v49  ;;  %v7259_v8 = vsub.f32 %v4742_v50, %v4742_v50  ;;  %v741_v27 = vand.u32 4294901760, %v740_v56 }
  0x3d   :  { %11840 = vst [vmem:[#allocation42_spill] sm:$0xff] %v7199_v45  ;;  %vm7201_vm0 = vmpackc.low %vm135_vm13, %vm132_vm12  ;;  %v753_v29 = vand.u32 4294901760, %v752_v57  ;;  %v747_v30 = vand.u32 4294901760, %v746_v58  ;;  %v759_v32 = vand.u32 4294901760, %v758_v59  ;;  %v4749_v35 = vsel %vm141_vm3, 1.0, %v11083_v25 }
  0x3e   :  { %v11842_v46 = vsel %vm7201_vm0, 4294967295, %v11841_v46  ;;  %5918 = vmatprep.subr.msk.bf16.mxu1 %vm7201_vm0, %v11090_v28  ;;  %vm7212_vm1 = vmpackc.low %vm134_vm15, %vm131_vm14  ;;  %11850 = vst [vmem:[#allocation46_spill] sm:$0xff] %v7253_v61  ;;  %v4745_v36 = vsel %vm137_vm6, 1.0, %v11083_v25  ;;  %v4748_v47 = vsel %vm140_vm7, 1.0, %v11083_v25  ;;  %v11075_v50 = vand.u32 4294901760, %v7190_v42 }
  0x3f   :  { %11843 = vst [vmem:[#allocation43_spill] sm:$0xff] %v11842_v46  ;;  %v11845_v51 = vsel %vm7212_vm1, 4294967295, %v11844_v51  ;;  %5920 = vmatpush1.bf16.msk.msra.mxu1 %vm7212_vm1, %v11090_v28  ;;  %vm7249_vm8 = vmpackc.low %vm141_vm3, %vm138_vm2  ;;  %v5973_v48 = vpack.c.bf16 %v753_v29, %v741_v27  ;;  %v5975_v49 = vpack.c.bf16 %v759_v32, %v747_v30  ;;  %v11074_v56 = vand.u32 4294901760, %v7192_v43 }
  0x40   :  { %11846 = vst [vmem:[#allocation44_spill] sm:$0xff] %v11845_v51  ;;  %v11848_v60 = vsel %vm7249_vm8, 4294967295, %v11847_v60  ;;  %11851 = vst [vmem:[#allocation47_spill] sm:$0xff] %v7255_v62  ;;  %5922 = vmatprep.subr.msk.bf16.mxu1 %vm7249_vm8, %v11090_v28  ;;  %v11078_v57 = vand.u32 4294901760, %v7197_v44  ;;  %v11077_v58 = vand.u32 4294901760, %v7199_v45  ;;  %vm144_vm12 = vcmp.eq.s32.totalorder %v7096_v14, %v7093_v13 }
  0x41   :  { %11849 = vst [vmem:[#allocation45_spill] sm:$0xff] %v11848_v60  ;;  %11852 = vst [vmem:[#allocation48_spill] sm:$0xff] %v7257_v63  ;;  %vm147_vm13 = vcmp.eq.s32.totalorder %v7099_v15, %v7093_v13  ;;  %5974 = vmatprep.subr.bf16.mxu0 %v5973_v48  ;;  %v7301_v59 = vsub.f32 %v4746_v33, %v4746_v33  ;;  %v7303_v27 = vsub.f32 %v4749_v35, %v4749_v35  ;;  %v11859_v32 = vmov 0 }
  0x42   :  { %11853 = vst [vmem:[#allocation49_spill] sm:$0xff] %v7259_v8  ;;  %vm7270_vm9 = vmpackc.low %vm140_vm7, %vm137_vm6  ;;  %v764_v29 = vsub.f32 %v7190_v42, %v11075_v50  ;;  %v776_v30 = vsub.f32 %v7192_v43, %v11074_v56  ;;  %5976 = vmatpush1.bf16.msra.mxu0 %v5975_v49  ;;  %v7321_v33 = vsub.f32 %v4745_v36, %v4745_v36  ;;  %v11082_v0 = vand.u32 4294901760, %v7253_v61 }
  0x43   :  { %v11855_v26 = vsel %vm7270_vm9, 4294967295, %v11854_v26  ;;  %5924 = vmatpush1.bf16.msk.msra.mxu1 %vm7270_vm9, %v11090_v28  ;;  %11857 = vst [vmem:[#allocation51_spill] sm:$0xff] %v7301_v59  ;;  %11858 = vst [vmem:[#allocation52_spill] sm:$0xff] %v7303_v27  ;;  %v770_v35 = vsub.f32 %v7197_v44, %v11078_v57  ;;  %v782_v48 = vsub.f32 %v7199_v45, %v11077_v58  ;;  %v4752_v58 = vsel %vm144_vm12, 1.0, %v11083_v25 }
  0x44   :  { %11856 = vst [vmem:[#allocation50_spill] sm:$0xff] %v11855_v26  ;;  %vm7317_vm14 = vmpackc.low %vm147_vm13, %vm144_vm12  ;;  %v7333_v56 = vsub.f32 %v4748_v47, %v4748_v47  ;;  %v765_v50 = vand.u32 4294901760, %v764_v29  ;;  %v777_v49 = vand.u32 4294901760, %v776_v30  ;;  %vm143_vm15 = vcmp.eq.s32.totalorder %v7096_v14, %v7090_v12 }
  0x45   :  { %v11860_v32 = vsel %vm7317_vm14, 4294967295, %v11859_v32  ;;  %11862 = vst [vmem:[#allocation54_spill] sm:$0xff] %v7321_v33  ;;  %5926 = vmatprep.subr.msk.bf16.mxu1 %vm7317_vm14, %v11090_v28  ;;  %v771_v36 = vand.u32 4294901760, %v770_v35  ;;  %v783_v55 = vand.u32 4294901760, %v782_v48  ;;  %vm146_vm2 = vcmp.eq.s32.totalorder %v7099_v15, %v7090_v12 }
  0x46   :  { %11861 = vst [vmem:[#allocation53_spill] sm:$0xff] %v11860_v32  ;;  %11863 = vst [vmem:[#allocation55_spill] sm:$0xff] %v7333_v56  ;;  %v5977_v57 = vpack.c.bf16 %v777_v49, %v765_v50  ;;  %v4755_v47 = vsel %vm147_vm13, 1.0, %v11083_v25  ;;  %v4751_v29 = vsel %vm143_vm15, 1.0, %v11083_v25  ;;  %v11864_v30 = vmov 0 }
  0x47   :  { %vm7348_vm3 = vmpackc.low %vm146_vm2, %vm143_vm15  ;;  %v788_v35 = vsub.f32 %v7253_v61, %v11082_v0  ;;  %v5979_v48 = vpack.c.bf16 %v783_v55, %v771_v36  ;;  %v4754_v54 = vsel %vm146_vm2, 1.0, %v11083_v25  ;;  %v11086_v50 = vand.u32 4294901760, %v7255_v62 }
  0x48   :  { %v11865_v30 = vsel %vm7348_vm3, 4294967295, %v11864_v30  ;;  %5928 = vmatpush1.bf16.msk.msra.mxu1 %vm7348_vm3, %v11090_v28  ;;  %v11085_v49 = vand.u32 4294901760, %v7257_v63  ;;  %5978 = vmatprep.subr.bf16.mxu0 %v5977_v57  ;;  %v7361_v53 = vsub.f32 %v4752_v58, %v4752_v58  ;;  %v11089_v52 = vand.u32 4294901760, %v7259_v8 }
  0x49   :  { %11866 = vst [vmem:[#allocation56_spill] sm:$0xff] %v11865_v30  ;;  %vm150_vm6 = vcmp.eq.s32.totalorder %v7102_v16, %v7093_v13  ;;  %vm153_vm7 = vcmp.eq.s32.totalorder %v7105_v17, %v7093_v13  ;;  %5980 = vmatpush1.bf16.msra.mxu0 %v5979_v48  ;;  %v7368_v55 = vsub.f32 %v4755_v47, %v4755_v47  ;;  %v789_v36 = vand.u32 4294901760, %v788_v35 }
  0x4a   :  { %11867 = vst [vmem:[#allocation57_spill] sm:$0xff] %v7361_v53  ;;  %v800_v0 = vsub.f32 %v7255_v62, %v11086_v50  ;;  %v794_v57 = vsub.f32 %v7257_v63, %v11085_v49  ;;  %vm7379_vm12 = vmpackc.low %vm153_vm7, %vm150_vm6  ;;  %v11869_v58 = vmov 0  ;;  %v7383_v25 = vsub.f32 %v4751_v29, %v4751_v29 }
  0x4b   :  { %11868 = vst [vmem:[#allocation58_spill] sm:$0xff] %v7368_v55  ;;  %v11870_v58 = vsel %vm7379_vm12, 4294967295, %v11869_v58  ;;  %v7385_v47 = vsub.f32 %v4754_v54, %v4754_v54  ;;  %v806_v35 = vsub.f32 %v7259_v8, %v11089_v52  ;;  %5930 = vmatprep.subr.msk.bf16.mxu1 %vm7379_vm12, %v11090_v28  ;;  %vm149_vm13 = vcmp.eq.s32.totalorder %v7102_v16, %v7090_v12 }
  0x4c   :  { %11871 = vst [vmem:[#allocation59_spill] sm:$0xff] %v11870_v58  ;;  %11872 = vst [vmem:[#allocation60_spill] sm:$0xff] %v7383_v25  ;;  %v801_v48 = vand.u32 4294901760, %v800_v0  ;;  %v795_v49 = vand.u32 4294901760, %v794_v57  ;;  %v11874_v50 = vmov 0.0   ;;  %vm152_vm15 = vcmp.eq.s32.totalorder %v7105_v17, %v7090_v12 }
  0x4d   :  { %11873 = vst [vmem:[#allocation61_spill] sm:$0xff] %v7385_v47  ;;  %v4758_v3 = vsel %vm150_vm6, 1.0, %v11874_v50  ;;  %v807_v54 = vand.u32 4294901760, %v806_v35  ;;  %v4761_v29 = vsel %vm153_vm7, 1.0, %v11874_v50  ;;  %v4757_v52 = vsel %vm149_vm13, 1.0, %v11874_v50  ;;  %vm7403_vm2 = vmpackc.low %vm152_vm15, %vm149_vm13 }
  0x4e   :  { %v11875_v28 = vmov 0  ;;  %v11104_v0 = vand.u32 4294901760, %v7301_v59  ;;  %v5981_v57 = vpack.c.bf16 %v801_v48, %v789_v36  ;;  %v4760_v2 = vsel %vm152_vm15, 1.0, %v11874_v50 }
  0x4f   :  { %v11876_v28 = vsel %vm7403_vm2, 4294967295, %v11875_v28  ;;  %v11878_v58 = vmov 1.0|1.0   ;;  %v11109_v35 = vand.u32 4294901760, %v7303_v27  ;;  %v11105_v30 = vand.u32 4294901760, %v7321_v33 }
  0x50   :  { %11877 = vst [vmem:[#allocation62_spill] sm:$0xff] %v11876_v28  ;;  %5932 = vmatpush1.bf16.msk.msra.mxu1 %vm7403_vm2, %v11878_v58  ;;  %v5983_v32 = vpack.c.bf16 %v807_v54, %v795_v49  ;;  %v812_v26 = vsub.f32 %v7301_v59, %v11104_v0  ;;  %vm156_vm6 = vcmp.eq.s32.totalorder %v7108_v18, %v7093_v13  ;;  %v11132_v41 = vand.u32 4294901760, %v7385_v47 }
  0x51   :  { %5982 = vmatprep.subr.bf16.mxu0 %v5981_v57  ;;  %v7420_v36 = vsub.f32 %v4758_v3, %v4758_v3  ;;  %v824_v48 = vsub.f32 %v7303_v27, %v11109_v35  ;;  %v818_v49 = vsub.f32 %v7321_v33, %v11105_v30  ;;  %vm11106_vm7 = vcmp.eq.s32.totalorder %v7111_v19, %v7093_v13 }
  0x52   :  { %5984 = vmatpush1.bf16.msra.mxu0 %v5983_v32  ;;  %v7430_v54 = vsub.f32 %v4761_v29, %v4761_v29  ;;  %v7432_v0 = vsub.f32 %v4757_v52, %v4757_v52  ;;  %v813_v60 = vand.u32 4294901760, %v812_v26  ;;  %v11882_v3 = vand.u32 4294901760, %v7333_v56  ;;  %vm7443_vm13 = vmpackc.low %vm11106_vm7, %vm156_vm6 }
  0x53   :  { %11879 = vst [vmem:[#allocation63_spill] sm:$0xff] %v7420_v36  ;;  %v11883_v30 = vmov 0  ;;  %v7447_v32 = vsub.f32 %v4760_v2, %v4760_v2  ;;  %v825_v29 = vand.u32 4294901760, %v824_v48  ;;  %v819_v52 = vand.u32 4294901760, %v818_v49  ;;  %5934 = vmatprep.subr.msk.bf16.mxu1 %vm7443_vm13, %v11878_v58 }
  0x54   :  { %11880 = vst [vmem:[#allocation64_spill] sm:$0xff] %v7430_v54  ;;  %11881 = vst [vmem:[#allocation65_spill] sm:$0xff] %v7432_v0  ;;  %v830_v57 = vsub.f32 %v7333_v56, %v11882_v3  ;;  %v11884_v30 = vsel %vm7443_vm13, 4294967295, %v11883_v30  ;;  %vm155_vm15 = vcmp.eq.s32.totalorder %v7108_v18, %v7090_v12  ;;  %v4764_v3 = vsel %vm156_vm6, 1.0, %v11874_v50 }
  0x55   :  { %11885 = vst [vmem:[#allocation66_spill] sm:$0xff] %v11884_v30  ;;  %11886 = vst [vmem:[#allocation67_spill] sm:$0xff] %v7447_v32  ;;  %vm158_vm7 = vcmp.eq.s32.totalorder %v7111_v19, %v7090_v12  ;;  %v11122_v2 = vand.u32 4294901760, %v7361_v53  ;;  %v5985_v48 = vpack.c.bf16 %v825_v29, %v813_v60  ;;  %vm11887_vm2 = vcmp.eq.s32.totalorder %v7111_v19, %v7093_v13 }
  0x56   :  { %v831_v26 = vand.u32 4294901760, %v830_v57  ;;  %v4767_v49 = vsel %vm11887_vm2, 1.0, %v11874_v50  ;;  %v4763_v35 = vsel %vm155_vm15, 1.0, %v11874_v50  ;;  %vm7466_vm13 = vmpackc.low %vm158_vm7, %vm155_vm15  ;;  %v11888_v57 = vmov 0 }
  0x57   :  { %v11889_v57 = vsel %vm7466_vm13, 4294967295, %v11888_v57  ;;  %v11123_v30 = vand.u32 4294901760, %v7368_v55  ;;  %v4766_v51 = vsel %vm158_vm7, 1.0, %v11874_v50  ;;  %5936 = vmatpush1.bf16.msk.msra.mxu1 %vm7466_vm13, %v11878_v58  ;;  %v836_v60 = vsub.f32 %v7361_v53, %v11122_v2  ;;  %5986 = vmatprep.subr.bf16.mxu0 %v5985_v48 }
  0x58   :  { %11890 = vst [vmem:[#allocation68_spill] sm:$0xff] %v11889_v57  ;;  %v5987_v28 = vpack.c.bf16 %v831_v26, %v819_v52  ;;  %v11124_v29 = vand.u32 4294901760, %v7383_v25  ;;  %vm162_vm2 = vcmp.eq.s32.totalorder %v7126_v21, %v7093_v13  ;;  %vm11125_vm6 = vcmp.eq.s32.totalorder %v7129_v22, %v7093_v13 }
  0x59   :  { %v848_v46 = vsub.f32 %v7368_v55, %v11123_v30  ;;  %v7487_v52 = vsub.f32 %v4764_v3, %v4764_v3  ;;  %v7489_v26 = vsub.f32 %v4767_v49, %v4767_v49  ;;  %v837_v2 = vand.u32 4294901760, %v836_v60  ;;  %vm7500_vm7 = vmpackc.low %vm11125_vm6, %vm162_vm2 }
  0x5a   :  { %5988 = vmatpush1.bf16.msra.mxu0 %v5987_v28  ;;  %v842_v48 = vsub.f32 %v7383_v25, %v11124_v29  ;;  %v11893_v30 = vmov 0  ;;  %v7504_v28 = vsub.f32 %v4763_v35, %v4763_v35  ;;  %v7506_v3 = vsub.f32 %v4766_v51, %v4766_v51  ;;  %5938 = vmatprep.subr.msk.bf16.mxu1 %vm7500_vm7, %v11878_v58 }
  0x5b   :  { %11891 = vst [vmem:[#allocation69_spill] sm:$0xff] %v7487_v52  ;;  %11892 = vst [vmem:[#allocation70_spill] sm:$0xff] %v7489_v26  ;;  %v11894_v30 = vsel %vm7500_vm7, 4294967295, %v11893_v30  ;;  %v849_v49 = vand.u32 4294901760, %v848_v46  ;;  %v854_v60 = vsub.f32 %v7385_v47, %v11132_v41  ;;  %vm161_vm15 = vcmp.eq.s32.totalorder %v7126_v21, %v7090_v12 }
  0x5c   :  { %11895 = vst [vmem:[#allocation71_spill] sm:$0xff] %v11894_v30  ;;  %11896 = vst [vmem:[#allocation72_spill] sm:$0xff] %v7504_v28  ;;  %v843_v29 = vand.u32 4294901760, %v842_v48  ;;  %vm164_vm6 = vcmp.eq.s32.totalorder %v7129_v22, %v7090_v12  ;;  %v4770_v46 = vsel %vm162_vm2, 1.0, %v11874_v50  ;;  %vm11898_vm7 = vcmp.eq.s32.totalorder %v7129_v22, %v7093_v13 }
  0x5d   :  { %11897 = vst [vmem:[#allocation73_spill] sm:$0xff] %v7506_v3  ;;  %v5989_v51 = vpack.c.bf16 %v849_v49, %v837_v2  ;;  %v855_v57 = vand.u32 4294901760, %v854_v60  ;;  %v4773_v48 = vsel %vm11898_vm7, 1.0, %v11874_v50  ;;  %vm7527_vm13 = vmpackc.low %vm164_vm6, %vm161_vm15  ;;  %v11899_v41 = vmov 0 }
  0x5e   :  { %v11900_v41 = vsel %vm7527_vm13, 4294967295, %v11899_v41  ;;  %v4769_v30 = vsel %vm161_vm15, 1.0, %v11874_v50  ;;  %v4772_v35 = vsel %vm164_vm6, 1.0, %v11874_v50  ;;  %5940 = vmatpush1.bf16.msk.msra.mxu1 %vm7527_vm13, %v11878_v58  ;;  %v11902_v2 = vand.u32 4294901760, %v7420_v36 }
  0x5f   :  { %11901 = vst [vmem:[#allocation74_spill] sm:$0xff] %v11900_v41  ;;  %v11153_v60 = vand.u32 4294901760, %v7430_v54  ;;  %5990 = vmatprep.subr.bf16.mxu0 %v5989_v51  ;;  %v5991_v34 = vpack.c.bf16 %v855_v57, %v843_v29  ;;  %v11152_v31 = vand.u32 4294901760, %v7432_v0  ;;  %v11149_v20 = vand.u32 4294901760, %v7447_v32 }
  0x60   :  { %v860_v49 = vsub.f32 %v7420_v36, %v11902_v2  ;;  %vm168_vm2 = vcmp.eq.s32.totalorder %v7132_v23, %v7093_v13  ;;  %v7544_v22 = vsub.f32 %v4770_v46, %v4770_v46  ;;  %vm171_vm6 = vcmp.eq.s32.totalorder %v7135_v24, %v7093_v13 }
  0x61   :  { %v872_v41 = vsub.f32 %v7430_v54, %v11153_v60  ;;  %5992 = vmatpush1.bf16.msra.mxu0 %v5991_v34  ;;  %v7551_v51 = vsub.f32 %v4773_v48, %v4773_v48  ;;  %v7553_v57 = vsub.f32 %v4769_v30, %v4769_v30  ;;  %v866_v29 = vsub.f32 %v7432_v0, %v11152_v31  ;;  %vm7564_vm7 = vmpackc.low %vm171_vm6, %vm168_vm2 }
  0x62   :  { %11903 = vst [vmem:[#allocation75_spill] sm:$0xff] %v7544_v22  ;;  %v861_v21 = vand.u32 4294901760, %v860_v49  ;;  %v878_v46 = vsub.f32 %v7447_v32, %v11149_v20  ;;  %v11906_v2 = vmov 0  ;;  %v7568_v34 = vsub.f32 %v4772_v35, %v4772_v35  ;;  %5942 = vmatprep.subr.msk.bf16.mxu1 %vm7564_vm7, %v11878_v58 }
  0x63   :  { %11904 = vst [vmem:[#allocation76_spill] sm:$0xff] %v7551_v51  ;;  %11905 = vst [vmem:[#allocation77_spill] sm:$0xff] %v7553_v57  ;;  %v11907_v2 = vsel %vm7564_vm7, 4294967295, %v11906_v2  ;;  %v873_v48 = vand.u32 4294901760, %v872_v41  ;;  %vm167_vm15 = vcmp.eq.s32.totalorder %v7132_v23, %v7090_v12  ;;  %vm170_vm13 = vcmp.eq.s32.totalorder %v7135_v24, %v7090_v12 }
  0x64   :  { %11908 = vst [vmem:[#allocation78_spill] sm:$0xff] %v11907_v2  ;;  %11909 = vst [vmem:[#allocation79_spill] sm:$0xff] %v7568_v34  ;;  %v867_v30 = vand.u32 4294901760, %v866_v29  ;;  %v879_v49 = vand.u32 4294901760, %v878_v46  ;;  %v4776_v20 = vsel %vm168_vm2, 1.0, %v11874_v50  ;;  %v4779_v35 = vsel %vm171_vm6, 1.0, %v11874_v50 }
  0x65   :  { %vm7582_vm12 = vmpackc.low %vm170_vm13, %vm167_vm15  ;;  %v11910_v41 = vmov 0  ;;  %v5993_v31 = vpack.c.bf16 %v873_v48, %v861_v21  ;;  %v4775_v60 = vsel %vm167_vm15, 1.0, %v11874_v50  ;;  %v4778_v2 = vsel %vm170_vm13, 1.0, %v11874_v50 }
  0x66   :  { %v11911_v41 = vsel %vm7582_vm12, 4294967295, %v11910_v41  ;;  %5944 = vmatpush1.bf16.msk.msra.mxu1 %vm7582_vm12, %v11878_v58  ;;  %v11166_v29 = vand.u32 4294901760, %v7487_v52  ;;  %v5995_v46 = vpack.c.bf16 %v879_v49, %v867_v30  ;;  %v11169_v19 = vand.u32 4294901760, %v7489_v26 }
  0x67   :  { %11912 = vst [vmem:[#allocation80_spill] sm:$0xff] %v11911_v41  ;;  %v11170_v18 = vand.u32 4294901760, %v7504_v28  ;;  %v11173_v17 = vand.u32 4294901760, %v7506_v3  ;;  %5994 = vmatprep.subr.bf16.mxu0 %v5993_v31  ;;  %v7599_v48 = vadd.s32 144, %v7060_v1  ;;  %v7602_v41 = vadd.s32 152, %v7060_v1 }
  0x68   :  { %v884_v21 = vsub.f32 %v7487_v52, %v11166_v29  ;;  %5996 = vmatpush1.bf16.msra.mxu0 %v5995_v46  ;;  %v896_v30 = vsub.f32 %v7489_v26, %v11169_v19  ;;  %v7621_v46 = vsub.f32 %v4776_v20, %v4776_v20  ;;  %v11914_v14 = vmov 0 }
  0x69   :  { %v890_v31 = vsub.f32 %v7504_v28, %v11170_v18  ;;  %v902_v49 = vsub.f32 %v7506_v3, %v11173_v17  ;;  %vm174_vm13 = vcmp.eq.s32.totalorder %v7599_v48, %v7093_v13  ;;  %vm177_vm2 = vcmp.eq.s32.totalorder %v7602_v41, %v7093_v13 }
  0x6a   :  { %v885_v15 = vand.u32 4294901760, %v884_v21  ;;  %11913 = vst [vmem:[#allocation81_spill] sm:$0xff] %v7621_v46  ;;  %v897_v19 = vand.u32 4294901760, %v896_v30  ;;  %vm7623_vm15 = vmpackc.low %vm177_vm2, %vm174_vm13  ;;  %v7627_v17 = vsub.f32 %v4779_v35, %v4779_v35  ;;  %v7629_v21 = vsub.f32 %v4775_v60, %v4775_v60 }
  0x6b   :  { %v891_v18 = vand.u32 4294901760, %v890_v31  ;;  %v903_v16 = vand.u32 4294901760, %v902_v49  ;;  %v11915_v14 = vsel %vm7623_vm15, 4294967295, %v11914_v14  ;;  %v7631_v29 = vsub.f32 %v4778_v2, %v4778_v2  ;;  %5946 = vmatprep.subr.msk.bf16.mxu1 %vm7623_vm15, %v11878_v58 }
  0x6c   :  { %11916 = vst [vmem:[#allocation82_spill] sm:$0xff] %v11915_v14  ;;  %11917 = vst [vmem:[#allocation83_spill] sm:$0xff] %v7627_v17  ;;  %vm176_vm6 = vcmp.eq.s32.totalorder %v7602_v41, %v7090_v12  ;;  %v5997_v20 = vpack.c.bf16 %v897_v19, %v885_v15  ;;  %v4782_v31 = vsel %vm174_vm13, 1.0, %v11874_v50  ;;  %v4785_v49 = vsel %vm177_vm2, 1.0, %v11874_v50 }
  0x6d   :  { %11918 = vst [vmem:[#allocation84_spill] sm:$0xff] %v7629_v21  ;;  %11919 = vst [vmem:[#allocation85_spill] sm:$0xff] %v7631_v29  ;;  %v5999_v30 = vpack.c.bf16 %v903_v16, %v891_v18  ;;  %vm11920_vm12 = vcmp.eq.s32.totalorder %v7599_v48, %v7090_v12  ;;  %v11921_v60 = vmov 0  ;;  %v4784_v35 = vsel %vm176_vm6, 1.0, %v11874_v50 }
  0x6e   :  { %vm7643_vm7 = vmpackc.low %vm176_vm6, %vm11920_vm12  ;;  %v11925_v15 = vand.u32 4294901760, %v7544_v22  ;;  %v11926_v18 = vand.u32 4294901760, %v7551_v51  ;;  %5998 = vmatprep.subr.bf16.mxu0 %v5997_v20  ;;  %v11194_v14 = vand.u32 4294901760, %v7553_v57  ;;  %v11195_v11 = vand.u32 4294901760, %v7568_v34 }
  0x6f   :  { %v11922_v60 = vsel %vm7643_vm7, 4294967295, %v11921_v60  ;;  %vm11924_vm15 = vmmov %vm11920_vm12  ;;  %5948 = vmatpush1.bf16.msk.msra.mxu1 %vm7643_vm7, %v11878_v58  ;;  %v7664_v10 = vadd.s32 160, %v7060_v1  ;;  %v7667_v9 = vadd.s32 168, %v7060_v1  ;;  %6000 = vmatpush1.bf16.msra.mxu0 %v5999_v30  ;;  %v7681_v30 = vsub.f32 %v4782_v31, %v4782_v31 }
  0x70   :  { %11923 = vst [vmem:[#allocation86_spill] sm:$0xff] %v11922_v60  ;;  %v4781_v2 = vsel %vm11924_vm15, 1.0, %v11874_v50  ;;  %v908_v16 = vsub.f32 %v7544_v22, %v11925_v15  ;;  %v920_v19 = vsub.f32 %v7551_v51, %v11926_v18  ;;  %v914_v20 = vsub.f32 %v7553_v57, %v11194_v14 }
  0x71   :  { %11927 = vst [vmem:[#allocation87_spill] sm:$0xff] %v7664_v10  ;;  %11928 = vst [vmem:[#allocation88_spill] sm:$0xff] %v7667_v9  ;;  %v926_v18 = vsub.f32 %v7568_v34, %v11195_v11  ;;  %vm180_vm12 = vcmp.eq.s32.totalorder %v7664_v10, %v7093_v13  ;;  %vm183_vm13 = vcmp.eq.s32.totalorder %v7667_v9, %v7093_v13  ;;  %v11931_v14 = vmov 0 }
  0x72   :  { %v909_v60 = vand.u32 4294901760, %v908_v16  ;;  %v921_v7 = vand.u32 4294901760, %v920_v19  ;;  %11929 = vst [vmem:[#allocation89_spill] sm:$0xff] %v7681_v30  ;;  %v7683_v16 = vsub.f32 %v4785_v49, %v4785_v49  ;;  %vm7688_vm2 = vmpackc.low %vm183_vm13, %vm180_vm12  ;;  %vm179_vm6 = vcmp.eq.s32.totalorder %v7664_v10, %v7090_v12 }
  0x73   :  { %v11932_v14 = vsel %vm7688_vm2, 4294967295, %v11931_v14  ;;  %v7694_v11 = vsub.f32 %v4781_v2, %v4781_v2  ;;  %v7696_v22 = vsub.f32 %v4784_v35, %v4784_v35  ;;  %v915_v15 = vand.u32 4294901760, %v914_v20  ;;  %5950 = vmatprep.subr.msk.bf16.mxu1 %vm7688_vm2, %v11878_v58 }
  0x74   :  { %11930 = vst [vmem:[#allocation90_spill] sm:$0xff] %v7683_v16  ;;  %v6001_v19 = vpack.c.bf16 %v921_v7, %v909_v60  ;;  %11933 = vst [vmem:[#allocation91_spill] sm:$0xff] %v11932_v14  ;;  %v927_v31 = vand.u32 4294901760, %v926_v18  ;;  %v4788_v7 = vsel %vm180_vm12, 1.0, %v11874_v50  ;;  %vm182_vm15 = vcmp.eq.s32.totalorder %v7667_v9, %v7090_v12 }
  0x75   :  { %11934 = vst [vmem:[#allocation92_spill] sm:$0xff] %v7694_v11  ;;  %11935 = vst [vmem:[#allocation93_spill] sm:$0xff] %v7696_v22  ;;  %v11936_v49 = vand.u32 4294901760, %v7621_v46  ;;  %v11937_v2 = vand.u32 4294901760, %v7627_v17  ;;  %v4791_v18 = vsel %vm183_vm13, 1.0, %v11874_v50  ;;  %v11938_v14 = vmov 0 }
  0x76   :  { %6002 = vmatprep.subr.bf16.mxu0 %v6001_v19  ;;  %v6003_v20 = vpack.c.bf16 %v927_v31, %v915_v15  ;;  %v4787_v19 = vsel %vm179_vm6, 1.0, %v11874_v50  ;;  %vm7715_vm12 = vmpackc.low %vm182_vm15, %vm179_vm6  ;;  %v11212_v10 = vand.u32 4294901760, %v7629_v21  ;;  %v7732_v9 = vadd.s32 184, %v7060_v1 }
  0x77   :  { %v932_v60 = vsub.f32 %v7621_v46, %v11936_v49  ;;  %v944_v35 = vsub.f32 %v7627_v17, %v11937_v2  ;;  %v11939_v14 = vsel %vm7715_vm12, 4294967295, %v11938_v14  ;;  %v4790_v49 = vsel %vm182_vm15, 1.0, %v11874_v50  ;;  %5952 = vmatpush1.bf16.msk.msra.mxu1 %vm7715_vm12, %v11878_v58 }
  0x78   :  { %11940 = vst [vmem:[#allocation94_spill] sm:$0xff] %v11939_v14  ;;  %v11217_v2 = vand.u32 4294901760, %v7631_v29  ;;  %6004 = vmatpush1.bf16.msra.mxu0 %v6003_v20  ;;  %v938_v17 = vsub.f32 %v7629_v21, %v11212_v10  ;;  %v7729_v46 = vadd.s32 176, %v7060_v1  ;;  %11942 = vst [vmem:[#allocation96_spill] sm:$0xff] %v7732_v9  ;;  %v11228_v34 = vand.u32 4294901760, %v7681_v30 }
  0x79   :  { %v933_v15 = vand.u32 4294901760, %v932_v60  ;;  %v945_v31 = vand.u32 4294901760, %v944_v35  ;;  %vm189_vm6 = vcmp.eq.s32.totalorder %v7732_v9, %v7093_v13  ;;  %v7746_v10 = vsub.f32 %v4788_v7, %v4788_v7 }
  0x7a   :  { %11941 = vst [vmem:[#allocation95_spill] sm:$0xff] %v7729_v46  ;;  %v950_v60 = vsub.f32 %v7631_v29, %v11217_v2  ;;  %v939_v14 = vand.u32 4294901760, %v938_v17  ;;  %vm186_vm13 = vcmp.eq.s32.totalorder %v7729_v46, %v7093_v13  ;;  %vm185_vm15 = vcmp.eq.s32.totalorder %v7729_v46, %v7090_v12 }
  0x7b   :  { %v6005_v57 = vpack.c.bf16 %v945_v31, %v933_v15  ;;  %11943 = vst [vmem:[#allocation97_spill] sm:$0xff] %v7746_v10  ;;  %vm7748_vm12 = vmpackc.low %vm189_vm6, %vm186_vm13  ;;  %v11944_v31 = vmov 0  ;;  %vm188_vm2 = vcmp.eq.s32.totalorder %v7732_v9, %v7090_v12  ;;  %v7754_v17 = vsub.f32 %v4791_v18, %v4791_v18 }
  0x7c   :  { %v951_v15 = vand.u32 4294901760, %v950_v60  ;;  %v11945_v31 = vsel %vm7748_vm12, 4294967295, %v11944_v31  ;;  %v7756_v2 = vsub.f32 %v4787_v19, %v4787_v19  ;;  %v7758_v20 = vsub.f32 %v4790_v49, %v4790_v49  ;;  %5954 = vmatprep.subr.msk.bf16.mxu1 %vm7748_vm12, %v11878_v58  ;;  %vm7767_vm7 = vmpackc.low %vm188_vm2, %vm185_vm15 }
  0x7d   :  { %6006 = vmatprep.subr.bf16.mxu0 %v6005_v57  ;;  %11946 = vst [vmem:[#allocation98_spill] sm:$0xff] %v11945_v31  ;;  %11947 = vst [vmem:[#allocation99_spill] sm:$0xff] %v7754_v17  ;;  %v4794_v35 = vsel %vm186_vm13, 1.0, %v11874_v50  ;;  %v11950_v57 = vmov 0  ;;  %v4797_v18 = vsel %vm189_vm6, 1.0, %v11874_v50  ;;  %v4793_v19 = vsel %vm185_vm15, 1.0, %v11874_v50  ;;  %5956 = vmatpush1.bf16.msk.msra.mxu1 %vm7767_vm7, %v11878_v58 }
  0x7e   :  { %11948 = vst [vmem:[#allocation100_spill] sm:$0xff] %v7756_v2  ;;  %11949 = vst [vmem:[#allocation101_spill] sm:$0xff] %v7758_v20  ;;  %v11951_v57 = vsel %vm7767_vm7, 4294967295, %v11950_v57  ;;  %v6007_v7 = vpack.c.bf16 %v951_v15, %v939_v14  ;;  %v956_v49 = vsub.f32 %v7681_v30, %v11228_v34  ;;  %v11953_v60 = vand.u32 4294901760, %v7683_v16 }
  0x7f   :  { %11952 = vst [vmem:[#allocation102_spill] sm:$0xff] %v11951_v57  ;;  %v11954_v46 = vand.u32 4294901760, %v7694_v11  ;;  %v11235_v15 = vand.u32 4294901760, %v7696_v22  ;;  %v7787_v29 = vadd.s32 192, %v7060_v1  ;;  %v4796_v57 = vsel %vm188_vm2, 1.0, %v11874_v50 }
  0x80   :  { %v968_v31 = vsub.f32 %v7683_v16, %v11953_v60  ;;  %6008 = vmatpush1.bf16.msra.mxu0 %v6007_v7  ;;  %v957_v34 = vand.u32 4294901760, %v956_v49  ;;  %v7794_v30 = vadd.s32 200, %v7060_v1  ;;  %v7811_v49 = vsub.f32 %v4797_v18, %v4797_v18 }
  0x81   :  { %v962_v14 = vsub.f32 %v7694_v11, %v11954_v46  ;;  %11955 = vst [vmem:[#allocation103_spill] sm:$0xff] %v7787_v29  ;;  %v974_v46 = vsub.f32 %v7696_v22, %v11235_v15  ;;  %vm192_vm13 = vcmp.eq.s32.totalorder %v7787_v29, %v7093_v13  ;;  %vm191_vm2 = vcmp.eq.s32.totalorder %v7787_v29, %v7090_v12 }
  0x82   :  { %11956 = vst [vmem:[#allocation104_spill] sm:$0xff] %v7794_v30  ;;  %v969_v16 = vand.u32 4294901760, %v968_v31  ;;  %vm11244_vm6 = vcmp.eq.s32.totalorder %v7794_v30, %v7093_v13  ;;  %vm194_vm15 = vcmp.eq.s32.totalorder %v7794_v30, %v7090_v12  ;;  %v7809_v31 = vsub.f32 %v4794_v35, %v4794_v35  ;;  %11958 = vst [vmem:[#allocation106_spill] sm:$0xff] %v7811_v49 }
  0x83   :  { %v963_v21 = vand.u32 4294901760, %v962_v14  ;;  %v975_v15 = vand.u32 4294901760, %v974_v46  ;;  %vm7816_vm7 = vmpackc.low %vm11244_vm6, %vm192_vm13  ;;  %v11959_v60 = vmov 0  ;;  %v7820_v22 = vsub.f32 %v4793_v19, %v4793_v19 }
  0x84   :  { %11957 = vst [vmem:[#allocation105_spill] sm:$0xff] %v7809_v31  ;;  %v6009_v14 = vpack.c.bf16 %v969_v16, %v957_v34  ;;  %v11960_v60 = vsel %vm7816_vm7, 4294967295, %v11959_v60  ;;  %v7822_v11 = vsub.f32 %v4796_v57, %v4796_v57  ;;  %v4800_v9 = vsel %vm192_vm13, 1.0, %v11874_v50  ;;  %5958 = vmatprep.subr.msk.bf16.mxu1 %vm7816_vm7, %v11878_v58  ;;  %vm7834_vm6 = vmpackc.low %vm194_vm15, %vm191_vm2 }
  0x85   :  { %11961 = vst [vmem:[#allocation107_spill] sm:$0xff] %v11960_v60  ;;  %11962 = vst [vmem:[#allocation108_spill] sm:$0xff] %v7820_v22  ;;  %v11964_v34 = vmov 0  ;;  %v11967_v16 = vand.u32 4294901760, %v7746_v10  ;;  %v6011_v57 = vpack.c.bf16 %v975_v15, %v963_v21  ;;  %vm11968_vm13 = vcmp.eq.s32.totalorder %v7794_v30, %v7093_v13  ;;  %5960 = vmatpush1.bf16.msk.msra.mxu1 %vm7834_vm6, %v11878_v58 }
  0x86   :  { %11963 = vst [vmem:[#allocation109_spill] sm:$0xff] %v7822_v11  ;;  %v11965_v34 = vsel %vm7834_vm6, 4294967295, %v11964_v34  ;;  %6010 = vmatprep.subr.bf16.mxu0 %v6009_v14  ;;  %v4803_v18 = vsel %vm11968_vm13, 1.0, %v11874_v50  ;;  %v4799_v19 = vsel %vm191_vm2, 1.0, %v11874_v50  ;;  %v11255_v46 = vand.u32 4294901760, %v7756_v2 }
  0x87   :  { %11966 = vst [vmem:[#allocation110_spill] sm:$0xff] %v11965_v34  ;;  %v980_v35 = vsub.f32 %v7746_v10, %v11967_v16  ;;  %v11969_v14 = vand.u32 4294901760, %v7754_v17  ;;  %v11256_v15 = vand.u32 4294901760, %v7758_v20  ;;  %v7858_v16 = vadd.s32 208, %v7060_v1  ;;  %6012 = vmatpush1.bf16.msra.mxu0 %v6011_v57 }
  0x88   :  { %v4802_v60 = vsel %vm194_vm15, 1.0, %v11874_v50  ;;  %v986_v34 = vsub.f32 %v7756_v2, %v11255_v46  ;;  %v11974_v2 = vmov 0 }
  0x89   :  { %v981_v7 = vand.u32 4294901760, %v980_v35  ;;  %v992_v21 = vsub.f32 %v7754_v17, %v11969_v14  ;;  %11970 = vst [vmem:[#allocation111_spill] sm:$0xff] %v7858_v16  ;;  %v7868_v35 = vadd.s32 216, %v7060_v1  ;;  %v998_v10 = vsub.f32 %v7758_v20, %v11256_v15 }
  0x8a   :  { %vm198_vm2 = vcmp.eq.s32.totalorder %v7858_v16, %v7093_v13  ;;  %vm197_vm15 = vcmp.eq.s32.totalorder %v7858_v16, %v7090_v12  ;;  %v987_v57 = vand.u32 4294901760, %v986_v34  ;;  %v7885_v14 = vsub.f32 %v4803_v18, %v4803_v18 }
  0x8b   :  { %11971 = vst [vmem:[#allocation112_spill] sm:$0xff] %v7868_v35  ;;  %v993_v17 = vand.u32 4294901760, %v992_v21  ;;  %vm11267_vm13 = vcmp.eq.s32.totalorder %v7868_v35, %v7093_v13  ;;  %vm200_vm6 = vcmp.eq.s32.totalorder %v7868_v35, %v7090_v12  ;;  %v7883_v21 = vsub.f32 %v4800_v9, %v4800_v9 }
  0x8c   :  { %11973 = vst [vmem:[#allocation114_spill] sm:$0xff] %v7885_v14  ;;  %v999_v20 = vand.u32 4294901760, %v998_v10  ;;  %vm7890_vm7 = vmpackc.low %vm11267_vm13, %vm198_vm2  ;;  %v7894_v34 = vsub.f32 %v4799_v19, %v4799_v19  ;;  %v7896_v30 = vsub.f32 %v4802_v60, %v4802_v60  ;;  %v4806_v29 = vsel %vm198_vm2, 1.0, %v11874_v50 }
  0x8d   :  { %11972 = vst [vmem:[#allocation113_spill] sm:$0xff] %v7883_v21  ;;  %v6013_v15 = vpack.c.bf16 %v993_v17, %v981_v7  ;;  %v11975_v2 = vsel %vm7890_vm7, 4294967295, %v11974_v2  ;;  %5962 = vmatprep.subr.msk.bf16.mxu1 %vm7890_vm7, %v11878_v58  ;;  %vm7908_vm13 = vmpackc.low %vm200_vm6, %vm197_vm15  ;;  %v11979_v9 = vmov 0  ;;  %v11982_v10 = vand.u32 4294901760, %v7809_v31 }
  0x8e   :  { %11976 = vst [vmem:[#allocation115_spill] sm:$0xff] %v11975_v2  ;;  %11977 = vst [vmem:[#allocation116_spill] sm:$0xff] %v7894_v34  ;;  %v11980_v9 = vsel %vm7908_vm13, 4294967295, %v11979_v9  ;;  %v6015_v60 = vpack.c.bf16 %v999_v20, %v987_v57  ;;  %vm11983_vm2 = vcmp.eq.s32.totalorder %v7868_v35, %v7093_v13  ;;  %v4805_v18 = vsel %vm197_vm15, 1.0, %v11874_v50  ;;  %5964 = vmatpush1.bf16.msk.msra.mxu1 %vm7908_vm13, %v11878_v58 }
  0x8f   :  { %11978 = vst [vmem:[#allocation117_spill] sm:$0xff] %v7896_v30  ;;  %11981 = vst [vmem:[#allocation118_spill] sm:$0xff] %v11980_v9  ;;  %v1004_v17 = vsub.f32 %v7809_v31, %v11982_v10  ;;  %6014 = vmatprep.subr.bf16.mxu0 %v6013_v15  ;;  %v4809_v7 = vsel %vm11983_vm2, 1.0, %v11874_v50  ;;  %v11278_v19 = vand.u32 4294901760, %v7820_v22  ;;  %v11984_v15 = vand.u32 4294901760, %v7811_v49 }
  0x90   :  { %v11281_v57 = vand.u32 4294901760, %v7822_v11  ;;  %v7932_v10 = vadd.s32 224, %v7060_v1  ;;  %6016 = vmatpush1.bf16.msra.mxu0 %v6015_v60  ;;  %v4808_v2 = vsel %vm200_vm6, 1.0, %v11874_v50 }
  0x91   :  { %v1005_v46 = vand.u32 4294901760, %v1004_v17  ;;  %v1016_v20 = vsub.f32 %v7811_v49, %v11984_v15  ;;  %v1010_v9 = vsub.f32 %v7820_v22, %v11278_v19  ;;  %v7942_v17 = vadd.s32 232, %v7060_v1 }
  0x92   :  { %11985 = vst [vmem:[#allocation119_spill] sm:$0xff] %v7932_v10  ;;  %v1022_v31 = vsub.f32 %v7822_v11, %v11281_v57  ;;  %vm204_vm15 = vcmp.eq.s32.totalorder %v7932_v10, %v7093_v13  ;;  %v7969_v57 = vsub.f32 %v4809_v7, %v4809_v7  ;;  %v7971_v11 = vsub.f32 %v4805_v18, %v4805_v18 }
  0x93   :  { %11986 = vst [vmem:[#allocation120_spill] sm:$0xff] %v7942_v17  ;;  %v1017_v49 = vand.u32 4294901760, %v1016_v20  ;;  %v1011_v60 = vand.u32 4294901760, %v1010_v9  ;;  %vm11288_vm2 = vcmp.eq.s32.totalorder %v7942_v17, %v7093_v13  ;;  %v7957_v20 = vsub.f32 %v4806_v29, %v4806_v29 }
  0x94   :  { %v1023_v22 = vand.u32 4294901760, %v1022_v31  ;;  %vm7965_vm6 = vmpackc.low %vm11288_vm2, %vm204_vm15  ;;  %v11988_v9 = vmov 0  ;;  %11991 = vst [vmem:[#allocation123_spill] sm:$0xff] %v7969_v57  ;;  %v7973_v35 = vsub.f32 %v4808_v2, %v4808_v2  ;;  %vm11994_vm13 = vcmp.eq.s32.totalorder %v7932_v10, %v7090_v12 }
  0x95   :  { %11987 = vst [vmem:[#allocation121_spill] sm:$0xff] %v7957_v20  ;;  %v6017_v15 = vpack.c.bf16 %v1017_v49, %v1005_v46  ;;  %v11989_v9 = vsel %vm7965_vm6, 4294967295, %v11988_v9  ;;  %11992 = vst [vmem:[#allocation124_spill] sm:$0xff] %v7971_v11  ;;  %5966 = vmatprep.subr.msk.bf16.mxu1 %vm7965_vm6, %v11878_v58  ;;  %vm11995_vm7 = vcmp.eq.s32.totalorder %v7942_v17, %v7090_v12  ;;  %v11996_v29 = vmov 0 }
  0x96   :  { %11990 = vst [vmem:[#allocation122_spill] sm:$0xff] %v11989_v9  ;;  %11993 = vst [vmem:[#allocation125_spill] sm:$0xff] %v7973_v35  ;;  %v11999_v31 = vand.u32 4294901760, %v7883_v21  ;;  %v6019_v2 = vpack.c.bf16 %v1023_v22, %v1011_v60  ;;  %v4812_v46 = vsel %vm204_vm15, 1.0, %v11874_v50  ;;  %vm12000_vm6 = vcmp.eq.s32.totalorder %v7942_v17, %v7093_v13 }
  0x97   :  { %vm7984_vm2 = vmpackc.low %vm11995_vm7, %vm11994_vm13  ;;  %6018 = vmatprep.subr.bf16.mxu0 %v6017_v15  ;;  %v4815_v7 = vsel %vm12000_vm6, 1.0, %v11874_v50  ;;  %v11299_v18 = vand.u32 4294901760, %v7894_v34  ;;  %v12001_v15 = vand.u32 4294901760, %v7885_v14  ;;  %v11302_v60 = vand.u32 4294901760, %v7896_v30 }
  0x98   :  { %v11997_v29 = vsel %vm7984_vm2, 4294967295, %v11996_v29  ;;  %v1028_v49 = vsub.f32 %v7883_v21, %v11999_v31  ;;  %5968 = vmatpush1.bf16.msk.msra.mxu1 %vm7984_vm2, %v11878_v58  ;;  %v8008_v31 = vadd.s32 240, %v7060_v1  ;;  %6020 = vmatpush1.bf16.msra.mxu0 %v6019_v2  ;;  %vm12003_vm7 = vmmov %vm11994_vm13  ;;  %v11325_v10 = vand.u32 4294901760, %v7971_v11 }
  0x99   :  { %11998 = vst [vmem:[#allocation126_spill] sm:$0xff] %v11997_v29  ;;  %v1040_v22 = vsub.f32 %v7885_v14, %v12001_v15  ;;  %v4811_v9 = vsel %vm12003_vm7, 1.0, %v11874_v50  ;;  %v1034_v29 = vsub.f32 %v7894_v34, %v11299_v18  ;;  %v1046_v21 = vsub.f32 %v7896_v30, %v11302_v60 }
  0x9a   :  { %v1029_v19 = vand.u32 4294901760, %v1028_v49  ;;  %12002 = vst [vmem:[#allocation127_spill] sm:$0xff] %v8008_v31  ;;  %v8018_v49 = vadd.s32 248, %v7060_v1  ;;  %vm11308_vm13 = vcmp.eq.s32.totalorder %v8008_v31, %v7093_v13  ;;  %vm11326_vm15 = vcmp.eq.s32.totalorder %v8008_v31, %v7090_v12 }
  0x9b   :  { %v1041_v14 = vand.u32 4294901760, %v1040_v22  ;;  %v1035_v2 = vand.u32 4294901760, %v1034_v29  ;;  %v1047_v15 = vand.u32 4294901760, %v1046_v21  ;;  %v12005_v60 = vmov 0  ;;  %v552_v29 = vld [vmem:[#allocation5 + $0x8] sm:$0xff] }
  0x9c   :  { %12004 = vst [vmem:[#allocation128_spill] sm:$0xff] %v8018_v49  ;;  %vm11307_vm6 = vcmp.eq.s32.totalorder %v8018_v49, %v7093_v13  ;;  %v8043_v30 = vsub.f32 %v4812_v46, %v4812_v46  ;;  %v8045_v34 = vsub.f32 %v4815_v7, %v4815_v7  ;;  %vm12010_vm7 = vcmp.eq.s32.totalorder %v7942_v17, %v7090_v12  ;;  %v551_v7 = vld [vmem:[#allocation5] sm:$0xff] }
  0x9d   :  { %v6021_v22 = vpack.c.bf16 %v1041_v14, %v1029_v19  ;;  %vm8039_vm2 = vmpackc.low %vm11307_vm6, %vm11308_vm13  ;;  %v4814_v14 = vsel %vm12010_vm7, 1.0, %v11874_v50  ;;  %vm12011_vm6 = vcmp.eq.s32.totalorder %v8018_v49, %v7090_v12  ;;  %v12012_v21 = vmov 0 }
  0x9e   :  { %v12006_v60 = vsel %vm8039_vm2, 4294967295, %v12005_v60  ;;  %12008 = vst [vmem:[#allocation130_spill] sm:$0xff] %v8043_v30  ;;  %12009 = vst [vmem:[#allocation131_spill] sm:$0xff] %v8045_v34  ;;  %5970 = vmatprep.subr.msk.bf16.mxu1 %vm8039_vm2, %v11878_v58  ;;  %v12015_v19 = vand.u32 4294901760, %v7957_v20  ;;  %v8067_v18 = vsub.f32 %v4811_v9, %v4811_v9  ;;  %vm12017_vm7 = vcmp.eq.s32.totalorder %v8008_v31, %v7093_v13 }
  0x9f   :  { %12007 = vst [vmem:[#allocation129_spill] sm:$0xff] %v12006_v60  ;;  %vm8060_vm13 = vmpackc.low %vm12011_vm6, %vm11326_vm15  ;;  %6022 = vmatprep.subr.bf16.mxu0 %v6021_v22  ;;  %v6023_v60 = vpack.c.bf16 %v1047_v15, %v1035_v2  ;;  %v4818_v17 = vsel %vm12017_vm7, 1.0, %v11874_v50  ;;  %v12018_v51 = vand.u32 4294901760, %v7969_v57  ;;  %v11327_v9 = vand.u32 4294901760, %v7973_v35 }
  0xa0   :  { %v12013_v21 = vsel %vm8060_vm13, 4294967295, %v12012_v21  ;;  %v1052_v46 = vsub.f32 %v7957_v20, %v12015_v19  ;;  %12016 = vst [vmem:[#allocation133_spill] sm:$0xff] %v8067_v18  ;;  %5972 = vmatpush1.bf16.msk.msra.mxu1 %vm8060_vm13, %v11878_v58  ;;  %v8081_v22 = vand.u32 4294901760, %v552_v29  ;;  %v1058_v15 = vsub.f32 %v7971_v11, %v11325_v10 }
  0xa1   :  { %12014 = vst [vmem:[#allocation132_spill] sm:$0xff] %v12013_v21  ;;  %v1064_v19 = vsub.f32 %v7969_v57, %v12018_v51  ;;  %6024 = vmatpush1.bf16.msra.mxu0 %v6023_v60  ;;  %v8087_v2 = vadd.s32 256, %v7060_v1  ;;  %v8090_v21 = vadd.s32 264, %v7060_v1  ;;  %v1070_v51 = vsub.f32 %v7973_v35, %v11327_v9 }
  0xa2   :  { %v1053_v16 = vand.u32 4294901760, %v1052_v46  ;;  %12019 = vst [vmem:[#allocation134_spill] sm:$0xff] %v8081_v22  ;;  %v8092_v46 = vand.u32 4294901760, %v551_v7  ;;  %v8098_v57 = vsub.f32 %v552_v29, %v8081_v22  ;;  %1122 = vmatprep.mubr.f32.mxu0 %v8081_v22  ;;  %v1059_v10 = vand.u32 4294901760, %v1058_v15 }
  0xa3   :  { %12020 = vst [vmem:[#allocation135_spill] sm:$0xff] %v8087_v2  ;;  %12021 = vst [vmem:[#allocation136_spill] sm:$0xff] %v8090_v21  ;;  %v1065_v20 = vand.u32 4294901760, %v1064_v19  ;;  %vm11358_vm6 = vcmp.eq.s32.totalorder %v8087_v2, %v7093_v13  ;;  %vm11336_vm7 = vcmp.eq.s32.totalorder %v8090_v21, %v7093_v13  ;;  %vm12024_vm15 = vcmp.eq.s32.totalorder %v8018_v49, %v7093_v13 }
  0xa4   :  { %12022 = vst [vmem:[#allocation137_spill] sm:$0xff] %v8092_v46  ;;  %12023 = vst [vmem:[#allocation138_spill] sm:$0xff] %v8098_v57  ;;  %v8107_v19 = vsub.f32 %v551_v7, %v8092_v46  ;;  %v4821_v29 = vsel %vm12024_vm15, 1.0, %v11874_v50  ;;  %v1071_v35 = vand.u32 4294901760, %v1070_v51  ;;  %v8114_v60 = vand.u32 4294901760, %v8098_v57 }
  0xa5   :  { %v6025_v9 = vpack.c.bf16 %v1065_v20, %v1053_v16  ;;  %vm8122_vm13 = vmpackc.low %vm11336_vm7, %vm11358_vm6  ;;  %v12026_v15 = vmov 0  ;;  %v8126_v7 = vsub.f32 %v4814_v14, %v4814_v14  ;;  %vm12030_vm15 = vcmp.eq.s32.totalorder %v8008_v31, %v7090_v12 }
  0xa6   :  { %12025 = vst [vmem:[#allocation139_spill] sm:$0xff] %v8114_v60  ;;  %v12027_v15 = vsel %vm8122_vm13, 4294967295, %v12026_v15  ;;  %v4817_v16 = vsel %vm12030_vm15, 1.0, %v11874_v50  ;;  %vm12031_vm2 = vcmp.eq.s32.totalorder %v8018_v49, %v7090_v12  ;;  %6294 = vmatprep.subr.msk.bf16.mxu1 %vm8122_vm13, %v11878_v58  ;;  %v8140_v51 = vand.u32 4294901760, %v8107_v19 }
  0xa7   :  { %12028 = vst [vmem:[#allocation140_spill] sm:$0xff] %v12027_v15  ;;  %12029 = vst [vmem:[#allocation141_spill] sm:$0xff] %v8126_v7  ;;  %v4820_v20 = vsel %vm12031_vm2, 1.0, %v11874_v50  ;;  %6026 = vmatprep.subr.bf16.mxu0 %v6025_v9  ;;  %v6027_v14 = vpack.c.bf16 %v1071_v35, %v1059_v10  ;;  %v691_v22 = vsub.f32 %v8098_v57, %v8114_v60  ;;  %v12035_v31 = vand.u32 4294901760, %v8043_v30 }
  0xa8   :  { %12032 = vst [vmem:[#allocation142_spill] sm:$0xff] %v8140_v51  ;;  %vm11357_vm15 = vcmp.eq.s32.totalorder %v8087_v2, %v7090_v12  ;;  %vm11356_vm7 = vcmp.eq.s32.totalorder %v8090_v21, %v7090_v12  ;;  %v8148_v11 = vsub.f32 %v4818_v17, %v4818_v17  ;;  %v8150_v49 = vsub.f32 %v4821_v29, %v4821_v29 }
  0xa9   :  { %v697_v15 = vsub.f32 %v8107_v19, %v8140_v51  ;;  %v1076_v35 = vsub.f32 %v8043_v30, %v12035_v31  ;;  %v8157_v10 = vsub.f32 %v4817_v16, %v4817_v16  ;;  %6028 = vmatpush1.bf16.msra.mxu0 %v6027_v14  ;;  %v8159_v9 = vand.u32 4294901760, %v691_v22  ;;  %vm8172_vm2 = vmpackc.low %vm11356_vm7, %vm11357_vm15 }
  0xaa   :  { %12033 = vst [vmem:[#allocation143_spill] sm:$0xff] %v8148_v11  ;;  %12034 = vst [vmem:[#allocation144_spill] sm:$0xff] %v8150_v49  ;;  %v11353_v60 = vand.u32 4294901760, %v8045_v34  ;;  %v8162_v6 = vsub.f32 %v4820_v20, %v4820_v20  ;;  %v12038_v29 = vmov 0  ;;  %v11359_v31 = vand.u32 4294901760, %v8067_v18 }
  0xab   :  { %12036 = vst [vmem:[#allocation145_spill] sm:$0xff] %v8157_v10  ;;  %v8164_v17 = vand.u32 4294901760, %v697_v15  ;;  %v12039_v29 = vsel %vm8172_vm2, 4294967295, %v12038_v29  ;;  %v11360_v22 = vand.u32 4294901760, %v8126_v7  ;;  %693 = vmatprep.mubr.f32.mxu1 %v8159_v9  ;;  %v1077_v16 = vand.u32 4294901760, %v1076_v35 }
  0xac   :  { %12037 = vst [vmem:[#allocation146_spill] sm:$0xff] %v8162_v6  ;;  %12040 = vst [vmem:[#allocation147_spill] sm:$0xff] %v12039_v29  ;;  %v1088_v15 = vsub.f32 %v8045_v34, %v11353_v60  ;;  %v8183_v20 = vadd.s32 272, %v7060_v1  ;;  %v8186_v14 = vadd.s32 280, %v7060_v1  ;;  %v1082_v51 = vsub.f32 %v8067_v18, %v11359_v31 }
  0xad   :  { %699 = vmatmul.mubr.f32.vlgmr.msra.gmra.mrb[0].mxu1 %v8164_v17  ;;  %v1094_v35 = vsub.f32 %v8126_v7, %v11360_v22  ;;  %v12043_v60 = vmov 0  ;;  %v12052_v29 = vand.u32 4294901760, %v8157_v10 }
  0xae   :  { %12041 = vst [vmem:[#allocation148_spill] sm:$0xff] %v8183_v20  ;;  %12042 = vst [vmem:[#allocation149_spill] sm:$0xff] %v8186_v14  ;;  %6296 = vmatpush1.bf16.msk.msra.mxu1 %vm8172_vm2, %v11878_v58  ;;  %v1089_v2 = vand.u32 4294901760, %v1088_v15  ;;  %vm11377_vm7 = vcmp.eq.s32.totalorder %v8183_v20, %v7093_v13  ;;  %vm11365_vm15 = vcmp.eq.s32.totalorder %v8186_v14, %v7093_v13  ;;  %v1083_v31 = vand.u32 4294901760, %v1082_v51 }
  0xaf   :  { %v1095_v22 = vand.u32 4294901760, %v1094_v35  ;;  %vm8212_vm13 = vmpackc.low %vm11365_vm15, %vm11377_vm7  ;;  %vm11376_vm6 = vcmp.eq.s32.totalorder %v8186_v14, %v7090_v12  ;;  %vm12046_vm2 = vcmp.eq.s32.totalorder %v8183_v20, %v7090_v12  ;;  %v12047_v35 = vmov 0 }
  0xb0   :  { %v12044_v60 = vsel %vm8212_vm13, 4294967295, %v12043_v60  ;;  %v6029_v21 = vpack.c.bf16 %v1089_v2, %v1077_v16  ;;  %6298 = vmatprep.subr.msk.bf16.mxu1 %vm8212_vm13, %v11878_v58  ;;  %vm8228_vm15 = vmpackc.low %vm11376_vm6, %vm12046_vm2  ;;  %v12050_v2 = vand.u32 4294901760, %v8148_v11  ;;  %v11388_v15 = vand.u32 4294901760, %v8162_v6 }
  0xb1   :  { %12045 = vst [vmem:[#allocation150_spill] sm:$0xff] %v12044_v60  ;;  %v6031_v51 = vpack.c.bf16 %v1095_v22, %v1083_v31  ;;  %v12048_v35 = vsel %vm8228_vm15, 4294967295, %v12047_v35  ;;  %v12051_v31 = vand.u32 4294901760, %v8150_v49  ;;  %v1106_v14 = vsub.f32 %v8157_v10, %v12052_v29 }
  0xb2   :  { %12049 = vst [vmem:[#allocation151_spill] sm:$0xff] %v12048_v35  ;;  %v1100_v16 = vsub.f32 %v8148_v11, %v12050_v2  ;;  %6030 = vmatprep.subr.bf16.mxu0 %v6029_v21  ;;  %6300 = vmatpush1.bf16.msk.msra.mxu1 %vm8228_vm15, %v11878_v58  ;;  %v8246_v20 = vadd.s32 288, %v7060_v1  ;;  %v8249_v21 = vadd.s32 296, %v7060_v1  ;;  %v1118_v35 = vsub.f32 %v8162_v6, %v11388_v15 }
  0xb3   :  { %v1112_v22 = vsub.f32 %v8150_v49, %v12051_v31  ;;  %6032 = vmatpush1.bf16.msra.mxu0 %v6031_v51  ;;  %v1107_v31 = vand.u32 4294901760, %v1106_v14  ;;  %v12065_v15 = vmov 0 }
  0xb4   :  { %v1101_v60 = vand.u32 4294901760, %v1100_v16  ;;  %12053 = vst [vmem:[#allocation152_spill] sm:$0xff] %v8246_v20  ;;  %12054 = vst [vmem:[#allocation153_spill] sm:$0xff] %v8249_v21  ;;  %vm11385_vm2 = vcmp.eq.s32.totalorder %v8246_v20, %v7093_v13  ;;  %vm11382_vm6 = vcmp.eq.s32.totalorder %v8249_v21, %v7093_v13  ;;  %vm11384_vm7 = vcmp.eq.s32.totalorder %v8246_v20, %v7090_v12 }
  0xb5   :  { %v1113_v2 = vand.u32 4294901760, %v1112_v22  ;;  %v1119_v51 = vand.u32 4294901760, %v1118_v35  ;;  %vm8266_vm15 = vmpackc.low %vm11382_vm6, %vm11385_vm2  ;;  %v12055_v16 = vmov 0  ;;  %vm11383_vm13 = vcmp.eq.s32.totalorder %v8249_v21, %v7090_v12  ;;  %v12167_v21 = vld [vmem:[#allocation90_spill] sm:$0xff] }
  0xb6   :  { %v12056_v16 = vsel %vm8266_vm15, 4294967295, %v12055_v16  ;;  %6302 = vmatprep.subr.msk.bf16.mxu1 %vm8266_vm15, %v11878_v58  ;;  %vm8283_vm6 = vmpackc.low %vm11383_vm13, %vm11384_vm7  ;;  %v12058_v35 = vmov 0  ;;  %v8288_v22 = vadd.s32 304, %v7060_v1 }
  0xb7   :  { %v6033_v29 = vpack.c.bf16 %v1113_v2, %v1101_v60  ;;  %12057 = vst [vmem:[#allocation154_spill] sm:$0xff] %v12056_v16  ;;  %v6037_v60 = vpack.c.bf16 %v7169_v38, %v7167_v37  ;;  %v6035_v14 = vpack.c.bf16 %v1119_v51, %v1107_v31  ;;  %v12059_v35 = vsel %vm8283_vm6, 4294967295, %v12058_v35  ;;  %6304 = vmatpush1.bf16.msk.msra.mxu1 %vm8283_vm6, %v11878_v58  ;;  %v12139_v37 = vld [vmem:[#allocation87_spill] sm:$0xff] }
  0xb8   :  { %12060 = vst [vmem:[#allocation155_spill] sm:$0xff] %v12059_v35  ;;  %12061 = vst [vmem:[#allocation156_spill] sm:$0xff] %v8288_v22  ;;  %v6039_v2 = vpack.c.bf16 %v7173_v40, %v7171_v39  ;;  %v8296_v31 = vadd.s32 312, %v7060_v1  ;;  %vm11398_vm13 = vcmp.eq.s32.totalorder %v8288_v22, %v7093_v13  ;;  %v8306_v51 = vadd.s32 328, %v7060_v1  ;;  %v12129_v39 = vld [vmem:[#allocation75_spill] sm:$0xff] }
  0xb9   :  { %6034 = vmatprep.subr.bf16.mxu0 %v6033_v29  ;;  %v8303_v29 = vadd.s32 320, %v7060_v1  ;;  %vm12068_vm6 = vcmp.eq.s32.totalorder %v8288_v22, %v7090_v12  ;;  %v6043_v35 = vpack.c.bf16 %v7199_v45, %v7197_v44  ;;  %v8343_v16 = vadd.s32 336, %v7060_v1  ;;  %v554_v44 = vld [vmem:[#allocation5 + $0x18] sm:$0xff] }
  0xba   :  { %12062 = vst [vmem:[#allocation157_spill] sm:$0xff] %v8296_v31  ;;  %6036 = vmatpush1.bf16.msra.mxu0 %v6035_v14  ;;  %12064 = vst [vmem:[#allocation159_spill] sm:$0xff] %v8306_v51  ;;  %vm11395_vm2 = vcmp.eq.s32.totalorder %v8296_v31, %v7093_v13  ;;  %v6041_v14 = vpack.c.bf16 %v7192_v43, %v7190_v42  ;;  %vm12069_vm15 = vcmp.eq.s32.totalorder %v8296_v31, %v7090_v12  ;;  %v12136_v38 = vmov 0  ;;  %v12166_v22 = vld [vmem:[#allocation89_spill] sm:$0xff] }
  0xbb   :  { %12063 = vst [vmem:[#allocation158_spill] sm:$0xff] %v8303_v29  ;;  %6038 = vmatprep.subr.bf16.mxu0 %v6037_v60  ;;  %vm8320_vm7 = vmpackc.low %vm11395_vm2, %vm11398_vm13  ;;  %v12070_v60 = vmov 0  ;;  %vm11414_vm2 = vcmp.eq.s32.totalorder %v8303_v29, %v7093_v13  ;;  %vm11411_vm13 = vcmp.eq.s32.totalorder %v8306_v51, %v7090_v12  ;;  %v6047_v45 = vpack.c.bf16 %v7259_v8, %v7257_v63  ;;  %v558_v63 = vld [vmem:[#allocation5 + $0x38] sm:$0xff] }
  0xbc   :  { %v12066_v15 = vsel %vm8320_vm7, 4294967295, %v12065_v15  ;;  %6306 = vmatprep.subr.msk.bf16.mxu1 %vm8320_vm7, %v11878_v58  ;;  %vm8334_vm12 = vmpackc.low %vm12069_vm15, %vm12068_vm6  ;;  %12073 = vst [vmem:[#allocation162_spill] sm:$0xff] %v8343_v16  ;;  %vm11407_vm6 = vcmp.eq.s32.totalorder %v8306_v51, %v7093_v13  ;;  %vm11413_vm15 = vcmp.eq.s32.totalorder %v8303_v29, %v7090_v12  ;;  %v8410_v8 = vadd.s32 352, %v7060_v1  ;;  %v12151_v51 = vld [vmem:[#allocation85_spill] sm:$0xff] }
  0xbd   :  { %12067 = vst [vmem:[#allocation160_spill] sm:$0xff] %v12066_v15  ;;  %1124 = vmatmul.mubr.f32.vlgmr.msra.gmra.mrb[0].mxu0 %v8092_v46  ;;  %v12071_v60 = vsel %vm8334_vm12, 4294967295, %v12070_v60  ;;  %6308 = vmatpush1.bf16.msk.msra.mxu1 %vm8334_vm12, %v11878_v58  ;;  %vm8360_vm7 = vmpackc.low %vm11407_vm6, %vm11414_vm2  ;;  %v8380_v15 = vadd.s32 344, %v7060_v1  ;;  %vm11430_vm6 = vcmp.eq.s32.totalorder %v8343_v16, %v7093_v13  ;;  %v6055_v42 = vpack.c.bf16 %v7385_v47, %v7383_v25  ;;  %v12206_v46 = vld [vmem:[#allocation105_spill] sm:$0xff] }
  0xbe   :  { %12072 = vst [vmem:[#allocation161_spill] sm:$0xff] %v12071_v60  ;;  %6040 = vmatpush1.bf16.msra.mxu0 %v6039_v2  ;;  %v12074_v2 = vmov 0  ;;  %6310 = vmatprep.subr.msk.bf16.mxu1 %vm8360_vm7, %v11878_v58  ;;  %vm8373_vm12 = vmpackc.low %vm11411_vm13, %vm11413_vm15  ;;  %v6045_v60 = vpack.c.bf16 %v7255_v62, %v7253_v61  ;;  %vm11429_vm13 = vcmp.eq.s32.totalorder %v8343_v16, %v7090_v12  ;;  %v8428_v62 = vadd.s32 360, %v7060_v1  ;;  %v12130_v16 = vld [vmem:[#allocation76_spill] sm:$0xff] }
  0xbf   :  { %6042 = vmatprep.subr.bf16.mxu0 %v6041_v14  ;;  %v12075_v2 = vsel %vm8360_vm7, 4294967295, %v12074_v2  ;;  %v12077_v14 = vmov 0  ;;  %12080 = vst [vmem:[#allocation165_spill] sm:$0xff] %v8380_v15  ;;  %vm11421_vm15 = vcmp.eq.s32.totalorder %v8380_v15, %v7093_v13  ;;  %vm11428_vm2 = vcmp.eq.s32.totalorder %v8380_v15, %v7090_v12  ;;  %12085 = vst [vmem:[#allocation168_spill] sm:$0xff] %v8410_v8  ;;  %v557_v15 = vld [vmem:[#allocation5 + $0x30] sm:$0xff] }
  0xc0   :  { %12076 = vst [vmem:[#allocation163_spill] sm:$0xff] %v12075_v2  ;;  %v12078_v14 = vsel %vm8373_vm12, 4294967295, %v12077_v14  ;;  %v555_v2 = vld [vmem:[#allocation5 + $0x20] sm:$0xff]  ;;  %12089 = vst [vmem:[#allocation170_spill] sm:$0xff] %v8428_v62  ;;  %v8430_v61 = vand.u32 4294901760, %v554_v44  ;;  %v6073_v20 = vpack.c.bf16 %v12167_v21, %v12166_v22 }
  0xc1   :  { %12079 = vst [vmem:[#allocation164_spill] sm:$0xff] %v12078_v14  ;;  %6312 = vmatpush1.bf16.msk.msra.mxu1 %vm8373_vm12, %v11878_v58  ;;  %vm8403_vm12 = vmpackc.low %vm11421_vm15, %vm11430_vm6  ;;  %v12081_v14 = vmov 0  ;;  %vm11436_vm6 = vcmp.eq.s32.totalorder %v8428_v62, %v7093_v13 }
  0xc2   :  { %6044 = vmatpush1.bf16.msra.mxu0 %v6043_v35  ;;  %v6049_v35 = vpack.c.bf16 %v7303_v27, %v7301_v59  ;;  %v12082_v14 = vsel %vm8403_vm12, 4294967295, %v12081_v14  ;;  %6314 = vmatprep.subr.msk.bf16.mxu1 %vm8403_vm12, %v11878_v58  ;;  %vm8421_vm15 = vmpackc.low %vm11428_vm2, %vm11429_vm13  ;;  %v12086_v27 = vmov 0  ;;  %v6051_v59 = vpack.c.bf16 %v7333_v56, %v7321_v33  ;;  %12090 = vst [vmem:[#allocation171_spill] sm:$0xff] %v8430_v61 }
  0xc3   :  { %6046 = vmatprep.subr.bf16.mxu0 %v6045_v60  ;;  %12083 = vst [vmem:[#allocation166_spill] sm:$0xff] %v12082_v14  ;;  %v8407_v60 = vand.u32 4294901760, %v555_v2  ;;  %v12087_v27 = vsel %vm8421_vm15, 4294967295, %v12086_v27  ;;  %vm11437_vm2 = vcmp.eq.s32.totalorder %v8410_v8, %v7093_v13  ;;  %v8445_v56 = vsub.f32 %v554_v44, %v8430_v61 }
  0xc4   :  { %12088 = vst [vmem:[#allocation169_spill] sm:$0xff] %v12087_v27  ;;  %vm8461_vm13 = vmpackc.low %vm11436_vm6, %vm11437_vm2  ;;  %v8467_v44 = vsub.s32 2, %v7060_v1  ;;  %vm12100_vm12 = vcmp.eq.s32.totalorder %v8410_v8, %v7090_v12  ;;  %vm12101_vm6 = vcmp.eq.s32.totalorder %v8428_v62, %v7090_v12  ;;  %v12102_v33 = vmov 0 }
  0xc5   :  { %12084 = vst [vmem:[#allocation167_spill] sm:$0xff] %v8407_v60  ;;  %6316 = vmatpush1.bf16.msk.msra.mxu1 %vm8421_vm15, %v11878_v58  ;;  %v8436_v14 = vsub.f32 %v555_v2, %v8407_v60  ;;  %12092 = vst [vmem:[#allocation173_spill] sm:$0xff] %v8445_v56  ;;  %1130 = vmatprep.mubr.f32.mxu0 %v8407_v60  ;;  %v8473_v27 = vand.u32 4294901760, %v8445_v56  ;;  %v6053_v8 = vpack.c.bf16 %v7368_v55, %v7361_v53  ;;  %v6930_v53 = vld [vmem:[#allocation2] ss:$8 sm:$0x7] }
  0xc6   :  { %6048 = vmatpush1.bf16.msra.mxu0 %v6047_v45  ;;  %v8449_v45 = vand.u32 4294901760, %v558_v63  ;;  %12098 = vst [vmem:[#allocation177_spill] sm:$0xff] %v8467_v44  ;;  %6318 = vmatprep.subr.msk.bf16.mxu1 %vm8461_vm13, %v11878_v58  ;;  %vm8481_vm2 = vmpackc.low %vm12101_vm6, %vm12100_vm12  ;;  %v8494_v62 = vadd.s32 368, %v7060_v1  ;;  %v8510_v55 = vand.u32 4294901760, %v557_v15  ;;  %v8515_v47 = vrot.slane %v6930_v53, %v8467_v44  ;;  %v12189_v60 = vld [vmem:[#allocation112_spill] sm:$0xff] }
  0xc7   :  { %12091 = vst [vmem:[#allocation172_spill] sm:$0xff] %v8436_v14  ;;  %6050 = vmatprep.subr.bf16.mxu0 %v6049_v35  ;;  %v8453_v2 = vand.u32 4294901760, %v8436_v14  ;;  %v12095_v35 = vmov 0  ;;  %1132 = vmatmul.mubr.f32.gmra.mrb[2].mxu0 %v8430_v61  ;;  %12099 = vst [vmem:[#allocation178_spill] sm:$0xff] %v8473_v27  ;;  %v12103_v33 = vsel %vm8481_vm2, 4294967295, %v12102_v33  ;;  %v713_v43 = vsub.f32 %v8445_v56, %v8473_v27  ;;  %v12188_v61 = vld [vmem:[#allocation111_spill] sm:$0xff] }
  0xc8   :  { %12093 = vst [vmem:[#allocation174_spill] sm:$0xff] %v8449_v45  ;;  %v12096_v35 = vsel %vm8461_vm13, 4294967295, %v12095_v35  ;;  %12104 = vst [vmem:[#allocation179_spill] sm:$0xff] %v12103_v33  ;;  %1138 = vmatprep.mubr.f32.mxu0 %v8449_v45  ;;  %vm11462_vm12 = vcmp.eq.s32.totalorder %v8494_v62, %v7093_v13  ;;  %v12111_v53 = vmov 0  ;;  %v6057_v44 = vpack.c.bf16 %v7430_v54, %v7420_v36  ;;  %v12209_v56 = vld [vmem:[#allocation109_spill] sm:$0xff] }
  0xc9   :  { %12094 = vst [vmem:[#allocation175_spill] sm:$0xff] %v8453_v2  ;;  %12097 = vst [vmem:[#allocation176_spill] sm:$0xff] %v12096_v35  ;;  %v707_v35 = vsub.f32 %v8436_v14, %v8453_v2  ;;  %6320 = vmatpush1.bf16.msk.msra.mxu1 %vm8481_vm2, %v11878_v58  ;;  %v8504_v2 = vadd.s32 376, %v7060_v1  ;;  %v12120_v36 = vmov 0  ;;  %vm12142_vm3 = vcmp.eq.s32.totalorder %v7602_v41, %v8515_v47  ;;  %v12211_v14 = vld [vmem:[#allocation120_spill] sm:$0xff] }
  0xca   :  { %6052 = vmatpush1.bf16.msra.mxu0 %v6051_v59  ;;  %12105 = vst [vmem:[#allocation180_spill] sm:$0xff] %v8494_v62  ;;  %v8501_v59 = vsub.f32 %v558_v63, %v8449_v45  ;;  %12108 = vst [vmem:[#allocation183_spill] sm:$0xff] %v8510_v55  ;;  %v8517_v63 = vand.u32 4294901760, %v713_v43  ;;  %v8536_v43 = vsub.f32 %v557_v15, %v8510_v55  ;;  %v553_v15 = vld [vmem:[#allocation5 + $0x10] sm:$0xff] }
  0xcb   :  { %12107 = vst [vmem:[#allocation182_spill] sm:$0xff] %v8504_v2  ;;  %v8506_v33 = vand.u32 4294901760, %v707_v35  ;;  %6054 = vmatprep.subr.bf16.mxu0 %v6053_v8  ;;  %12109 = vst [vmem:[#allocation184_spill] sm:$0xff] %v8515_v47  ;;  %vm11461_vm2 = vcmp.eq.s32.totalorder %v8504_v2, %v7093_v13  ;;  %vm11471_vm13 = vcmp.eq.s32.totalorder %v8504_v2, %v7090_v12  ;;  %v12116_v8 = vmov 0  ;;  %1140 = vmatmul.mubr.f32.gmra.mrb[4].mxu0 %v8510_v55  ;;  %v12169_v13 = vld [vmem:[#allocation93_spill] sm:$0xff] }
  0xcc   :  { %12106 = vst [vmem:[#allocation181_spill] sm:$0xff] %v8501_v59  ;;  %v8520_v25 = vand.u32 4294901760, %v8501_v59  ;;  %vm8531_vm6 = vmpackc.low %vm11461_vm2, %vm11462_vm12  ;;  %vm12115_vm2 = vcmp.eq.s32.totalorder %v8494_v62, %v7090_v12  ;;  %v8557_v35 = vand.u32 4294901760, %v8536_v43  ;;  %v6059_v62 = vpack.c.bf16 %v7447_v32, %v7432_v0  ;;  %1340 = vmatprep.mubr.f32.mxu0 %v8098_v57  ;;  %v12168_v12 = vld [vmem:[#allocation92_spill] sm:$0xff]  ;;  %v12187_v55 = vld [vmem:[#allocation101_spill] sm:$0xff] }
  0xcd   :  { %709 = vmatprep.mubr.f32.mxu1 %v8506_v33  ;;  %v12112_v53 = vsel %vm8531_vm6, 4294967295, %v12111_v53  ;;  %12114 = vst [vmem:[#allocation187_spill] sm:$0xff] %v8536_v43  ;;  %6322 = vmatprep.subr.msk.bf16.mxu1 %vm8531_vm6, %v11878_v58  ;;  %vm8552_vm12 = vmpackc.low %vm11471_vm13, %vm12115_vm2  ;;  %vm169_vm2 = vcmp.eq.s32.totalorder %v7132_v23, %v8515_v47  ;;  %vm172_vm13 = vcmp.eq.s32.totalorder %v7135_v24, %v8515_v47  ;;  %v8584_v32 = vand.u32 4294901760, %v553_v15 }
  0xce   :  { %12110 = vst [vmem:[#allocation185_spill] sm:$0xff] %v8520_v25  ;;  %6056 = vmatpush1.bf16.msra.mxu0 %v6055_v42  ;;  %12113 = vst [vmem:[#allocation186_spill] sm:$0xff] %v12112_v53  ;;  %715 = vmatmul.mubr.f32.gmra.mrb[2].mxu1 %v8517_v63  ;;  %v723_v42 = vsub.f32 %v8501_v59, %v8520_v25  ;;  %v12117_v8 = vsel %vm8552_vm12, 4294967295, %v12116_v8  ;;  %v8564_v53 = vld [vmem:[#allocation5 + $0x28] sm:$0xff]  ;;  %v4777_v54 = vsel %vm169_vm2, 1.0, %v11874_v50 }
  0xcf   :  { %12118 = vst [vmem:[#allocation188_spill] sm:$0xff] %v12117_v8  ;;  %12119 = vst [vmem:[#allocation189_spill] sm:$0xff] %v8557_v35  ;;  %6324 = vmatpush1.bf16.msk.msra.mxu1 %vm8552_vm12, %v11878_v58  ;;  %v729_v8 = vsub.f32 %v8536_v43, %v8557_v35  ;;  %6058 = vmatprep.subr.bf16.mxu0 %v6057_v44  ;;  %v8587_v23 = vsub.f32 %v4777_v54, %v4777_v54  ;;  %v8594_v44 = vand.u32 4294901760, %v8564_v53  ;;  %v12207_v43 = vld [vmem:[#allocation106_spill] sm:$0xff] }
  0xd0   :  { %v8567_v2 = vand.u32 4294901760, %v723_v42  ;;  %v4780_v42 = vsel %vm172_vm13, 1.0, %v11874_v50  ;;  %vm8580_vm12 = vmpackc.low %vm172_vm13, %vm169_vm2  ;;  %12123 = vst [vmem:[#allocation191_spill] sm:$0xff] %v8584_v32  ;;  %vm11489_vm6 = vcmp.eq.s32.totalorder %v7060_v1, %v8515_v47  ;;  %v8602_v35 = vsub.f32 %v553_v15, %v8584_v32 }
  0xd1   :  { %v12121_v36 = vsel %vm8580_vm12, 4294967295, %v12120_v36  ;;  %v8589_v24 = vsub.f32 %v4780_v42, %v4780_v42  ;;  %12124 = vst [vmem:[#allocation192_spill] sm:$0xff] %v8594_v44  ;;  %v8596_v0 = vand.u32 4294901760, %v729_v8  ;;  %6486 = vmatprep.subr.msk.bf16.mxu1 %vm8580_vm12, %v11878_v58  ;;  %vm11488_vm13 = vcmp.eq.s32.totalorder %v7069_v4, %v8515_v47 }
  0xd2   :  { %12122 = vst [vmem:[#allocation190_spill] sm:$0xff] %v12121_v36  ;;  %725 = vmatprep.mubr.f32.mxu1 %v8567_v2  ;;  %6060 = vmatpush1.bf16.msra.mxu0 %v6059_v62  ;;  %12126 = vst [vmem:[#allocation194_spill] sm:$0xff] %v8602_v35  ;;  %v4729_v62 = vsel %vm11489_vm6, 1.0, %v11874_v50  ;;  %v4732_v54 = vsel %vm11488_vm13, 1.0, %v11874_v50  ;;  %v6061_v42 = vpack.c.bf16 %v7489_v26, %v7487_v52  ;;  %v8622_v32 = vand.u32 4294901760, %v8602_v35  ;;  %v12150_v36 = vld [vmem:[#allocation84_spill] sm:$0xff] }
  0xd3   :  { %12125 = vst [vmem:[#allocation193_spill] sm:$0xff] %v8596_v0  ;;  %v8614_v8 = vsub.f32 %v4729_v62, %v4729_v62  ;;  %v6063_v15 = vpack.c.bf16 %v7506_v3, %v7504_v28  ;;  %731 = vmatmul.mubr.f32.gmra.mrb[4].mxu1 %v8596_v0  ;;  %v8624_v25 = vsub.f32 %v4732_v54, %v4732_v54  ;;  %v12128_v3 = vld [vmem:[#allocation16_spill] sm:$0xff] }
  0xd4   :  { %12127 = vst [vmem:[#allocation195_spill] sm:$0xff] %v8622_v32  ;;  %vm11508_vm2 = vcmp.eq.s32.totalorder %v7599_v48, %v8515_v47  ;;  %vm11506_vm13 = vcmp.eq.s32.totalorder %v7602_v41, %v8515_v47  ;;  %2064 = vmatprep.mubr.f32.mxu1 %v11874_v50  ;;  %6062 = vmatprep.subr.bf16.mxu0 %v6061_v42  ;;  %v12147_v41 = vld [vmem:[#allocation18_spill] sm:$0xff] }
  0xd5   :  { %v4783_v62 = vsel %vm11508_vm2, 1.0, %v11874_v50  ;;  %v4786_v54 = vsel %vm11506_vm13, 1.0, %v11874_v50  ;;  %vm11507_vm6 = vcmp.eq.s32.totalorder %v7072_v5, %v8515_v47  ;;  %vm11511_vm15 = vcmp.eq.s32.totalorder %v12128_v3, %v8515_v47 }
  0xd6   :  { %v2068_v28 = vsub.f32 %v8602_v35, %v8622_v32  ;;  %6064 = vmatpush1.bf16.msra.mxu0 %v6063_v15  ;;  %v8645_v42 = vsub.f32 %v4783_v62, %v4783_v62  ;;  %v8647_v26 = vsub.f32 %v4786_v54, %v4786_v54  ;;  %v4735_v52 = vsel %vm11507_vm6, 1.0, %v11874_v50  ;;  %v12131_v15 = vld [vmem:[#allocation77_spill] sm:$0xff]  ;;  %v12132_v62 = vld [vmem:[#allocation79_spill] sm:$0xff] }
  0xd7   :  { %v4738_v27 = vsel %vm11511_vm15, 1.0, %v11874_v50  ;;  %v8657_v40 = vsub.f32 %v4735_v52, %v4735_v52  ;;  %v6065_v32 = vpack.c.bf16 %v12130_v16, %v12129_v39  ;;  %v6067_v35 = vpack.c.bf16 %v12132_v62, %v12131_v15  ;;  %v12140_v16 = vld [vmem:[#allocation88_spill] sm:$0xff] }
  0xd8   :  { %v8663_v54 = vand.u32 4294901760, %v2068_v28  ;;  %vm12134_vm13 = vcmp.eq.s32.totalorder %v7060_v1, %v8515_v47  ;;  %vm12135_vm6 = vcmp.eq.s32.totalorder %v7069_v4, %v8515_v47  ;;  %v8675_v52 = vsub.f32 %v4738_v27, %v4738_v27 }
  0xd9   :  { %vm8671_vm2 = vmpackc.low %vm12135_vm6, %vm12134_vm13  ;;  %vm11534_vm15 = vcmp.eq.s32.totalorder %v12139_v37, %v8515_v47  ;;  %vm11533_vm7 = vcmp.eq.s32.totalorder %v12140_v16, %v8515_v47  ;;  %vm12141_vm12 = vcmp.eq.s32.totalorder %v7599_v48, %v8515_v47  ;;  %v12143_v28 = vmov 0  ;;  %6066 = vmatprep.subr.bf16.mxu0 %v6065_v32  ;;  %v12146_v48 = vld [vmem:[#allocation17_spill] sm:$0xff] }
  0xda   :  { %12133 = vst [vmem:[#allocation16_spill] sm:$0xff] %v8663_v54  ;;  %v12137_v38 = vsel %vm8671_vm2, 4294967295, %v12136_v38  ;;  %vm8687_vm14 = vmpackc.low %vm12142_vm3, %vm12141_vm12  ;;  %v4789_v27 = vsel %vm11534_vm15, 1.0, %v11874_v50  ;;  %v4792_v4 = vsel %vm11533_vm7, 1.0, %v11874_v50  ;;  %vm11532_vm6 = vcmp.eq.s32.totalorder %v12146_v48, %v8515_v47  ;;  %2070 = vmatmul.mubr.f32.vlgmr.msra.gmra.mrb[6].mxu1 %v8663_v54  ;;  %6068 = vmatpush1.bf16.msra.mxu0 %v6067_v35 }
  0xdb   :  { %12138 = vst [vmem:[#allocation196_spill] sm:$0xff] %v12137_v38  ;;  %v12144_v28 = vsel %vm8687_vm14, 4294967295, %v12143_v28  ;;  %vm11531_vm3 = vcmp.eq.s32.totalorder %v12147_v41, %v8515_v47  ;;  %v8704_v32 = vsub.f32 %v4789_v27, %v4789_v27  ;;  %v8706_v1 = vsub.f32 %v4792_v4, %v4792_v4  ;;  %6488 = vmatpush3.bf16.msk.msra.mxu1 %vm8671_vm2, %v11878_v58  ;;  %v12148_v4 = vld [vmem:[#allocation81_spill] sm:$0xff]  ;;  %v12149_v27 = vld [vmem:[#allocation83_spill] sm:$0xff] }
  0xdc   :  { %12145 = vst [vmem:[#allocation87_spill] sm:$0xff] %v12144_v28  ;;  %v4741_v62 = vsel %vm11532_vm6, 1.0, %v11874_v50  ;;  %v4744_v15 = vsel %vm11531_vm3, 1.0, %v11874_v50  ;;  %v6069_v39 = vpack.c.bf16 %v12149_v27, %v12148_v4  ;;  %v6071_v29 = vpack.c.bf16 %v12151_v51, %v12150_v36  ;;  %6490 = vmatprep.subr.msk.bf16.mxu1 %vm8687_vm14, %v11878_v58  ;;  %v12158_v27 = vld [vmem:[#allocation96_spill] sm:$0xff]  ;;  %v12159_v51 = vld [vmem:[#allocation19_spill] sm:$0xff]  ;;  %2075 = vmatprep.mubr.f32.mxu1 %v11874_v50 }
  0xdd   :  { %v8719_v54 = vsub.f32 %v4741_v62, %v4741_v62  ;;  %v8721_v35 = vsub.f32 %v4744_v15, %v4744_v15  ;;  %vm12152_vm12 = vcmp.eq.s32.totalorder %v7072_v5, %v8515_v47  ;;  %vm12153_vm13 = vcmp.eq.s32.totalorder %v12128_v3, %v8515_v47  ;;  %v12157_v15 = vld [vmem:[#allocation95_spill] sm:$0xff]  ;;  %v12160_v36 = vld [vmem:[#allocation20_spill] sm:$0xff] }
  0xde   :  { %vm8736_vm3 = vmpackc.low %vm12153_vm13, %vm12152_vm12  ;;  %v12154_v62 = vmov 0  ;;  %vm11561_vm6 = vcmp.eq.s32.totalorder %v12157_v15, %v8515_v47  ;;  %vm11560_vm7 = vcmp.eq.s32.totalorder %v12158_v27, %v8515_v47  ;;  %vm11559_vm15 = vcmp.eq.s32.totalorder %v12159_v51, %v8515_v47  ;;  %6070 = vmatprep.subr.bf16.mxu0 %v6069_v39 }
  0xdf   :  { %v12155_v62 = vsel %vm8736_vm3, 4294967295, %v12154_v62  ;;  %vm11558_vm14 = vcmp.eq.s32.totalorder %v12160_v36, %v8515_v47  ;;  %vm12161_vm2 = vcmp.eq.s32.totalorder %v12139_v37, %v8515_v47  ;;  %vm12162_vm12 = vcmp.eq.s32.totalorder %v12140_v16, %v8515_v47  ;;  %6072 = vmatpush1.bf16.msra.mxu0 %v6071_v29  ;;  %6492 = vmatpush3.bf16.msk.msra.mxu1 %vm8736_vm3, %v11878_v58  ;;  %v12170_v29 = vld [vmem:[#allocation103_spill] sm:$0xff] }
  0xe0   :  { %12156 = vst [vmem:[#allocation88_spill] sm:$0xff] %v12155_v62  ;;  %vm8754_vm13 = vmpackc.low %vm12162_vm12, %vm12161_vm2  ;;  %v12163_v3 = vmov 0  ;;  %v4795_v5 = vsel %vm11561_vm6, 1.0, %v11874_v50  ;;  %v4798_v4 = vsel %vm11560_vm7, 1.0, %v11874_v50  ;;  %v4747_v37 = vsel %vm11559_vm15, 1.0, %v11874_v50  ;;  %6074 = vmatprep.subr.bf16.mxu0 %v6073_v20  ;;  %v12184_v20 = vld [vmem:[#allocation97_spill] sm:$0xff] }
  0xe1   :  { %v12164_v3 = vsel %vm8754_vm13, 4294967295, %v12163_v3  ;;  %v4750_v39 = vsel %vm11558_vm14, 1.0, %v11874_v50  ;;  %v8775_v16 = vsub.f32 %v4795_v5, %v4795_v5  ;;  %v8777_v28 = vsub.f32 %v4798_v4, %v4798_v4  ;;  %v12171_v5 = vld [vmem:[#allocation104_spill] sm:$0xff]  ;;  %6494 = vmatprep.subr.msk.bf16.mxu1 %vm8754_vm13, %v11878_v58 }
  0xe2   :  { %12165 = vst [vmem:[#allocation17_spill] sm:$0xff] %v12164_v3  ;;  %v8779_v38 = vsub.f32 %v4747_v37, %v4747_v37  ;;  %v8781_v31 = vsub.f32 %v4750_v39, %v4750_v39  ;;  %v6075_v57 = vpack.c.bf16 %v12169_v13, %v12168_v12  ;;  %vm11581_vm2 = vcmp.eq.s32.totalorder %v12170_v29, %v8515_v47  ;;  %v12177_v13 = vld [vmem:[#allocation23_spill] sm:$0xff] }
  0xe3   :  { %vm11580_vm12 = vcmp.eq.s32.totalorder %v12171_v5, %v8515_v47  ;;  %vm12172_vm14 = vcmp.eq.s32.totalorder %v12146_v48, %v8515_v47  ;;  %vm12173_vm15 = vcmp.eq.s32.totalorder %v12147_v41, %v8515_v47  ;;  %v12174_v4 = vmov 0  ;;  %v12178_v48 = vld [vmem:[#allocation24_spill] sm:$0xff] }
  0xe4   :  { %vm8803_vm7 = vmpackc.low %vm12173_vm15, %vm12172_vm14  ;;  %v4801_v37 = vsel %vm11581_vm2, 1.0, %v11874_v50  ;;  %v4804_v39 = vsel %vm11580_vm12, 1.0, %v11874_v50  ;;  %vm11579_vm6 = vcmp.eq.s32.totalorder %v12177_v13, %v8515_v47  ;;  %vm11578_vm13 = vcmp.eq.s32.totalorder %v12178_v48, %v8515_v47  ;;  %6076 = vmatpush1.bf16.msra.mxu0 %v6075_v57  ;;  %v12190_v57 = vld [vmem:[#allocation25_spill] sm:$0xff] }
  0xe5   :  { %v12175_v4 = vsel %vm8803_vm7, 4294967295, %v12174_v4  ;;  %vm12179_vm14 = vcmp.eq.s32.totalorder %v12157_v15, %v8515_v47  ;;  %vm12180_vm15 = vcmp.eq.s32.totalorder %v12158_v27, %v8515_v47  ;;  %v12181_v41 = vmov 0  ;;  %6496 = vmatpush3.bf16.msk.msra.mxu1 %vm8803_vm7, %v11878_v58 }
  0xe6   :  { %12176 = vst [vmem:[#allocation18_spill] sm:$0xff] %v12175_v4  ;;  %vm8825_vm3 = vmpackc.low %vm12180_vm15, %vm12179_vm14  ;;  %v8829_v12 = vsub.f32 %v4801_v37, %v4801_v37  ;;  %v8831_v21 = vsub.f32 %v4804_v39, %v4804_v39  ;;  %v4753_v22 = vsel %vm11579_vm6, 1.0, %v11874_v50  ;;  %v4756_v15 = vsel %vm11578_vm13, 1.0, %v11874_v50  ;;  %v12185_v37 = vld [vmem:[#allocation99_spill] sm:$0xff]  ;;  %v12186_v39 = vld [vmem:[#allocation100_spill] sm:$0xff] }
  0xe7   :  { %v12182_v41 = vsel %vm8825_vm3, 4294967295, %v12181_v41  ;;  %v8841_v27 = vsub.f32 %v4753_v22, %v4753_v22  ;;  %v8843_v3 = vsub.f32 %v4756_v15, %v4756_v15  ;;  %v6077_v62 = vpack.c.bf16 %v12185_v37, %v12184_v20  ;;  %v12191_v22 = vld [vmem:[#allocation26_spill] sm:$0xff]  ;;  %6498 = vmatprep.subr.msk.bf16.mxu1 %vm8825_vm3, %v11878_v58 }
  0xe8   :  { %12183 = vst [vmem:[#allocation95_spill] sm:$0xff] %v12182_v41  ;;  %v6079_v45 = vpack.c.bf16 %v12187_v55, %v12186_v39  ;;  %vm11600_vm15 = vcmp.eq.s32.totalorder %v12189_v60, %v8515_v47  ;;  %vm12192_vm12 = vcmp.eq.s32.totalorder %v12159_v51, %v8515_v47  ;;  %vm12193_vm2 = vcmp.eq.s32.totalorder %v12160_v36, %v8515_v47 }
  0xe9   :  { %vm8869_vm14 = vmpackc.low %vm12193_vm2, %vm12192_vm12  ;;  %v12194_v15 = vmov 0  ;;  %6078 = vmatprep.subr.bf16.mxu0 %v6077_v62  ;;  %vm12197_vm13 = vcmp.eq.s32.totalorder %v12188_v61, %v8515_v47  ;;  %v4810_v39 = vsel %vm11600_vm15, 1.0, %v11874_v50  ;;  %vm12198_vm6 = vcmp.eq.s32.totalorder %v12190_v57, %v8515_v47 }
  0xea   :  { %v12195_v15 = vsel %vm8869_vm14, 4294967295, %v12194_v15  ;;  %v4807_v55 = vsel %vm12197_vm13, 1.0, %v11874_v50  ;;  %v4759_v36 = vsel %vm12198_vm6, 1.0, %v11874_v50  ;;  %vm12199_vm2 = vcmp.eq.s32.totalorder %v12191_v22, %v8515_v47  ;;  %6080 = vmatpush1.bf16.msra.mxu0 %v6079_v45  ;;  %6500 = vmatpush3.bf16.msk.msra.mxu1 %vm8869_vm14, %v11878_v58 }
  0xeb   :  { %12196 = vst [vmem:[#allocation96_spill] sm:$0xff] %v12195_v15  ;;  %v4762_v51 = vsel %vm12199_vm2, 1.0, %v11874_v50  ;;  %vm12200_vm12 = vcmp.eq.s32.totalorder %v12170_v29, %v8515_v47  ;;  %vm12201_vm13 = vcmp.eq.s32.totalorder %v12171_v5, %v8515_v47  ;;  %v12202_v62 = vmov 0  ;;  %v12208_v29 = vld [vmem:[#allocation108_spill] sm:$0xff]  ;;  %v12210_v5 = vld [vmem:[#allocation119_spill] sm:$0xff]  ;;  %v12232_v15 = vld [vmem:[#allocation117_spill] sm:$0xff] }
  0xec   :  { %vm8895_vm3 = vmpackc.low %vm12201_vm13, %vm12200_vm12  ;;  %v8899_v37 = vsub.f32 %v4807_v55, %v4807_v55  ;;  %v8901_v20 = vsub.f32 %v4810_v39, %v4810_v39  ;;  %v8903_v41 = vsub.f32 %v4759_v36, %v4759_v36  ;;  %v8905_v4 = vsub.f32 %v4762_v51, %v4762_v51  ;;  %v12213_v36 = vld [vmem:[#allocation27_spill] sm:$0xff] }
  0xed   :  { %v12203_v62 = vsel %vm8895_vm3, 4294967295, %v12202_v62  ;;  %v6081_v59 = vpack.c.bf16 %v12207_v43, %v12206_v46  ;;  %v6083_v0 = vpack.c.bf16 %v12209_v56, %v12208_v29  ;;  %vm11599_vm6 = vcmp.eq.s32.totalorder %v12210_v5, %v8515_v47  ;;  %6502 = vmatprep.subr.msk.bf16.mxu1 %vm8895_vm3, %v11878_v58  ;;  %v12221_v56 = vld [vmem:[#allocation28_spill] sm:$0xff]  ;;  %v559_v29 = vld [vmem:[#allocation5 + $0x40] sm:$0xff] }
  0xee   :  { %12204 = vst [vmem:[#allocation19_spill] sm:$0xff] %v12203_v62  ;;  %12205 = vst [vmem:[#allocation20_spill] sm:$0xff] %v8905_v4  ;;  %vm11603_vm2 = vcmp.eq.s32.totalorder %v12211_v14, %v8515_v47  ;;  %v4813_v55 = vsel %vm11599_vm6, 1.0, %v11874_v50  ;;  %v8928_v39 = vsub.f32 %v8564_v53, %v8594_v44  ;;  %vm11614_vm12 = vcmp.eq.s32.totalorder %v12213_v36, %v8515_v47  ;;  %v12228_v43 = vld [vmem:[#allocation113_spill] sm:$0xff]  ;;  %v12229_v46 = vld [vmem:[#allocation114_spill] sm:$0xff] }
  0xef   :  { %v4816_v45 = vsel %vm11603_vm2, 1.0, %v11874_v50  ;;  %vm12214_vm13 = vcmp.eq.s32.totalorder %v12177_v13, %v8515_v47  ;;  %vm12215_vm6 = vcmp.eq.s32.totalorder %v12178_v48, %v8515_v47  ;;  %v12216_v51 = vmov 0  ;;  %6082 = vmatprep.subr.bf16.mxu0 %v6081_v59  ;;  %v12234_v4 = vld [vmem:[#allocation128_spill] sm:$0xff] }
  0xf0   :  { %12212 = vst [vmem:[#allocation103_spill] sm:$0xff] %v8928_v39  ;;  %vm8941_vm15 = vmpackc.low %vm12215_vm6, %vm12214_vm13  ;;  %v8945_v53 = vsub.f32 %v4813_v55, %v4813_v55  ;;  %v8947_v44 = vsub.f32 %v4816_v45, %v4816_v45  ;;  %vm11613_vm2 = vcmp.eq.s32.totalorder %v12221_v56, %v8515_v47  ;;  %v4765_v13 = vsel %vm11614_vm12, 1.0, %v11874_v50  ;;  %6084 = vmatpush1.bf16.msra.mxu0 %v6083_v0 }
  0xf1   :  { %v12217_v51 = vsel %vm8941_vm15, 4294967295, %v12216_v51  ;;  %vm12222_vm6 = vcmp.eq.s32.totalorder %v12188_v61, %v8515_v47  ;;  %vm12223_vm13 = vcmp.eq.s32.totalorder %v12189_v60, %v8515_v47  ;;  %v12224_v59 = vmov 0  ;;  %v12231_v60 = vld [vmem:[#allocation116_spill] sm:$0xff]  ;;  %6504 = vmatpush3.bf16.msk.msra.mxu1 %vm8941_vm15, %v11878_v58 }
  0xf2   :  { %12218 = vst [vmem:[#allocation104_spill] sm:$0xff] %v12217_v51  ;;  %12219 = vst [vmem:[#allocation23_spill] sm:$0xff] %v8945_v53  ;;  %v8966_v48 = vand.u32 4294901760, %v8928_v39  ;;  %v4768_v55 = vsel %vm11613_vm2, 1.0, %v11874_v50  ;;  %v8972_v45 = vsub.f32 %v4765_v13, %v4765_v13  ;;  %v6085_v61 = vpack.c.bf16 %v12229_v46, %v12228_v43  ;;  %v12233_v53 = vld [vmem:[#allocation127_spill] sm:$0xff] }
  0xf3   :  { %12220 = vst [vmem:[#allocation24_spill] sm:$0xff] %v8947_v44  ;;  %vm8961_vm3 = vmpackc.low %vm12223_vm13, %vm12222_vm6  ;;  %v8976_v62 = vsub.f32 %v4768_v55, %v4768_v55  ;;  %v6087_v44 = vpack.c.bf16 %v12232_v15, %v12231_v60  ;;  %vm11622_vm6 = vcmp.eq.s32.totalorder %v12233_v53, %v8515_v47  ;;  %vm11621_vm13 = vcmp.eq.s32.totalorder %v12234_v4, %v8515_v47  ;;  %v12243_v60 = vld [vmem:[#allocation30_spill] sm:$0xff]  ;;  %v12244_v46 = vld [vmem:[#allocation31_spill] sm:$0xff] }
  0xf4   :  { %v12225_v59 = vsel %vm8961_vm3, 4294967295, %v12224_v59  ;;  %12227 = vst [vmem:[#allocation112_spill] sm:$0xff] %v8966_v48  ;;  %v2079_v13 = vsub.f32 %v8928_v39, %v8966_v48  ;;  %6086 = vmatprep.subr.bf16.mxu0 %v6085_v61  ;;  %v4819_v0 = vsel %vm11622_vm6, 1.0, %v11874_v50  ;;  %v4822_v55 = vsel %vm11621_vm13, 1.0, %v11874_v50  ;;  %6506 = vmatprep.subr.msk.bf16.mxu1 %vm8961_vm3, %v11878_v58 }
  0xf5   :  { %12226 = vst [vmem:[#allocation111_spill] sm:$0xff] %v12225_v59  ;;  %12230 = vst [vmem:[#allocation25_spill] sm:$0xff] %v8976_v62  ;;  %v8997_v15 = vand.u32 4294901760, %v559_v29  ;;  %vm12236_vm2 = vcmp.eq.s32.totalorder %v12190_v57, %v8515_v47  ;;  %vm12237_vm12 = vcmp.eq.s32.totalorder %v12191_v22, %v8515_v47  ;;  %v12238_v61 = vmov 0  ;;  %6088 = vmatpush1.bf16.msra.mxu0 %v6087_v44  ;;  %v12253_v59 = vld [vmem:[#allocation123_spill] sm:$0xff] }
  0xf6   :  { %vm9008_vm15 = vmpackc.low %vm12237_vm12, %vm12236_vm2  ;;  %v9012_v48 = vsub.f32 %v4819_v0, %v4819_v0  ;;  %v9014_v39 = vsub.f32 %v4822_v55, %v4822_v55  ;;  %vm163_vm13 = vcmp.eq.s32.totalorder %v12243_v60, %v8515_v47  ;;  %vm11637_vm6 = vcmp.eq.s32.totalorder %v12244_v46, %v8515_v47 }
  0xf7   :  { %12235 = vst [vmem:[#allocation26_spill] sm:$0xff] %v8997_v15  ;;  %v12239_v61 = vsel %vm9008_vm15, 4294967295, %v12238_v61  ;;  %vm12245_vm3 = vcmp.eq.s32.totalorder %v12210_v5, %v8515_v47  ;;  %vm12246_vm14 = vcmp.eq.s32.totalorder %v12211_v14, %v8515_v47  ;;  %v12247_v57 = vmov 0  ;;  %6508 = vmatpush3.bf16.msk.msra.mxu1 %vm9008_vm15, %v11878_v58 }
  0xf8   :  { %12240 = vst [vmem:[#allocation119_spill] sm:$0xff] %v12239_v61  ;;  %12241 = vst [vmem:[#allocation120_spill] sm:$0xff] %v9012_v48  ;;  %v9030_v22 = vand.u32 4294901760, %v2079_v13  ;;  %v9033_v0 = vsub.f32 %v559_v29, %v8997_v15  ;;  %v4771_v55 = vsel %vm163_vm13, 1.0, %v11874_v50  ;;  %v4774_v5 = vsel %vm11637_vm6, 1.0, %v11874_v50  ;;  %v12252_v13 = vld [vmem:[#allocation121_spill] sm:$0xff] }
  0xf9   :  { %12242 = vst [vmem:[#allocation27_spill] sm:$0xff] %v9014_v39  ;;  %vm9026_vm2 = vmpackc.low %vm12246_vm14, %vm12245_vm3  ;;  %v9043_v14 = vsub.f32 %v4771_v55, %v4771_v55  ;;  %v9045_v43 = vsub.f32 %v4774_v5, %v4774_v5  ;;  %v6089_v51 = vpack.c.bf16 %v12253_v59, %v12252_v13  ;;  %v12254_v29 = vld [vmem:[#allocation124_spill] sm:$0xff]  ;;  %v12255_v15 = vld [vmem:[#allocation125_spill] sm:$0xff]  ;;  %vm12257_vm3 = vcmp.eq.s32.totalorder %v12213_v36, %v8515_v47 }
  0xfa   :  { %v12248_v57 = vsel %vm9026_vm2, 4294967295, %v12247_v57  ;;  %12250 = vst [vmem:[#allocation127_spill] sm:$0xff] %v9030_v22  ;;  %12251 = vst [vmem:[#allocation128_spill] sm:$0xff] %v9033_v0  ;;  %v6091_v39 = vpack.c.bf16 %v12255_v15, %v12254_v29  ;;  %v9055_v48 = vand.u32 4294901760, %v9033_v0  ;;  %6510 = vmatprep.subr.msk.bf16.mxu1 %vm9026_vm2, %v11878_v58  ;;  %2081 = vmatmul.mubr.f32.gmra.mrb[8].mxu1 %v9030_v22  ;;  %v12259_v5 = vmov 0  ;;  %v12303_v13 = vld [vmem:[#allocation53_spill] sm:$0xff] }
  0xfb   :  { %12249 = vst [vmem:[#allocation28_spill] sm:$0xff] %v12248_v57  ;;  %vm12258_vm14 = vcmp.eq.s32.totalorder %v12221_v56, %v8515_v47  ;;  %v6093_v55 = vpack.c.bf16 %v8045_v34, %v8043_v30  ;;  %v6095_v62 = vpack.c.bf16 %v8126_v7, %v8067_v18  ;;  %2086 = vmatprep.mubr.f32.mxu1 %v11874_v50  ;;  %v12264_v56 = vmov 0  ;;  %v12305_v57 = vld [vmem:[#allocation56_spill] sm:$0xff] }
  0xfc   :  { %12256 = vst [vmem:[#allocation30_spill] sm:$0xff] %v9055_v48  ;;  %vm9070_vm12 = vmpackc.low %vm12258_vm14, %vm12257_vm3  ;;  %vm12262_vm6 = vcmp.eq.s32.totalorder %v12233_v53, %v8515_v47  ;;  %vm12263_vm3 = vcmp.eq.s32.totalorder %v12234_v4, %v8515_v47  ;;  %v2090_v36 = vsub.f32 %v9033_v0, %v9055_v48  ;;  %6090 = vmatprep.subr.bf16.mxu0 %v6089_v51  ;;  %v12267_v44 = vand.u32 4294901760, %v8587_v23 }
  0xfd   :  { %v12260_v5 = vsel %vm9070_vm12, 4294967295, %v12259_v5  ;;  %vm9087_vm14 = vmpackc.low %vm12263_vm3, %vm12262_vm6  ;;  %v12268_v7 = vand.u32 4294901760, %v8589_v24  ;;  %6092 = vmatpush1.bf16.msra.mxu0 %v6091_v39  ;;  %v12269_v4 = vand.u32 4294901760, %v8614_v8  ;;  %v12270_v30 = vand.u32 4294901760, %v8624_v25  ;;  %6512 = vmatpush3.bf16.msk.msra.mxu1 %vm9070_vm12, %v11878_v58 }
  0xfe   :  { %12261 = vst [vmem:[#allocation31_spill] sm:$0xff] %v12260_v5  ;;  %v12265_v56 = vsel %vm9087_vm14, 4294967295, %v12264_v56  ;;  %v3179_v22 = vsub.f32 %v8587_v23, %v12267_v44  ;;  %v12271_v51 = vand.u32 4294901760, %v8645_v42  ;;  %v11652_v44 = vand.u32 4294901760, %v8657_v40  ;;  %6094 = vmatprep.subr.bf16.mxu0 %v6093_v55  ;;  %6514 = vmatprep.subr.msk.bf16.mxu1 %vm9087_vm14, %v11878_v58 }
  0xff   :  { %12266 = vst [vmem:[#allocation197_spill] sm:$0xff] %v12265_v56  ;;  %v3186_v18 = vsub.f32 %v8589_v24, %v12268_v7  ;;  %v3067_v34 = vsub.f32 %v8614_v8, %v12269_v4  ;;  %v3074_v48 = vsub.f32 %v8624_v25, %v12270_v30  ;;  %v9113_v7 = vand.u32 4294901760, %v2090_v36 }
 0x100   :  { %v3193_v0 = vsub.f32 %v8645_v42, %v12271_v51  ;;  %v3180_v39 = vand.u32 4294901760, %v3179_v22  ;;  %v12273_v4 = vand.u32 4294901760, %v8647_v26  ;;  %vm12274_vm6 = vcmp.eq.s32.totalorder %v12244_v46, %v8515_v47 }
 0x101   :  { %12272 = vst [vmem:[#allocation198_spill] sm:$0xff] %v9113_v7  ;;  %v3187_v53 = vand.u32 4294901760, %v3186_v18  ;;  %vm9127_vm3 = vmpackc.low %vm12274_vm6, %vm163_vm13  ;;  %v12275_v30 = vmov 0  ;;  %v3068_v18 = vand.u32 4294901760, %v3067_v34  ;;  %v3075_v22 = vand.u32 4294901760, %v3074_v48  ;;  %2092 = vmatmul.mubr.f32.gmra.mrb[10].mxu1 %v9113_v7  ;;  %6096 = vmatpush1.bf16.msra.mxu0 %v6095_v62 }
 0x102   :  { %v3200_v15 = vsub.f32 %v8647_v26, %v12273_v4  ;;  %v12276_v30 = vsel %vm9127_vm3, 4294967295, %v12275_v30  ;;  %v3194_v55 = vand.u32 4294901760, %v3193_v0  ;;  %v3081_v36 = vsub.f32 %v8657_v40, %v11652_v44  ;;  %3022 = vmatprep.mubr.f32.mxu1 %v8159_v9  ;;  %6516 = vmatpush3.bf16.msk.msra.mxu1 %vm9127_vm3, %v11878_v58 }
 0x103   :  { %12277 = vst [vmem:[#allocation199_spill] sm:$0xff] %v12276_v30  ;;  %v6517_v51 = vpack.c.bf16 %v3187_v53, %v3180_v39  ;;  %v11649_v60 = vand.u32 4294901760, %v8675_v52  ;;  %v6097_v46 = vpack.c.bf16 %v8150_v49, %v8148_v11  ;;  %v6519_v47 = vpack.c.bf16 %v3075_v22, %v3068_v18  ;;  %v12298_v49 = vld [vmem:[#allocation27_spill] sm:$0xff] }
 0x104   :  { %v3201_v4 = vand.u32 4294901760, %v3200_v15  ;;  %v3082_v34 = vand.u32 4294901760, %v3081_v36  ;;  %v6099_v48 = vpack.c.bf16 %v8162_v6, %v8157_v10  ;;  %v11648_v0 = vand.u32 4294901760, %v8704_v32 }
 0x105   :  { %v3088_v53 = vsub.f32 %v8675_v52, %v11649_v60  ;;  %6098 = vmatprep.subr.bf16.mxu0 %v6097_v46  ;;  %v11650_v9 = vand.u32 4294901760, %v8706_v1  ;;  %v11651_v62 = vand.u32 4294901760, %v8719_v54  ;;  %6518 = vmatprep.subr.bf16.mxu1 %v6517_v51  ;;  %v11653_v18 = vand.u32 4294901760, %v8721_v35 }
 0x106   :  { %v6521_v15 = vpack.c.bf16 %v3201_v4, %v3194_v55  ;;  %v3207_v39 = vsub.f32 %v8704_v32, %v11648_v0  ;;  %v11655_v22 = vand.u32 4294901760, %v8775_v16  ;;  %v11657_v55 = vand.u32 4294901760, %v8777_v28  ;;  %3028 = vmatmul.mubr.f32.vlgmr.msra.gmra.mrb[12].mxu1 %v8164_v17  ;;  %6100 = vmatpush1.bf16.msra.mxu0 %v6099_v48  ;;  %v12288_v17 = vld [vmem:[#allocation24_spill] sm:$0xff] }
 0x107   :  { %v3089_v36 = vand.u32 4294901760, %v3088_v53  ;;  %v3214_v4 = vsub.f32 %v8706_v1, %v11650_v9  ;;  %v3095_v46 = vsub.f32 %v8719_v54, %v11651_v62  ;;  %v3102_v60 = vsub.f32 %v8721_v35, %v11653_v18  ;;  %6520 = vmatpush3.bf16.msra.mxu1 %v6519_v47  ;;  %6102 = vmatprep.subr.msk.bf16.mxu0 %vm7121_vm4, %v11878_v58 }
 0x108   :  { %v3208_v0 = vand.u32 4294901760, %v3207_v39  ;;  %v3221_v53 = vsub.f32 %v8775_v16, %v11655_v22  ;;  %v3228_v9 = vsub.f32 %v8777_v28, %v11657_v55  ;;  %v12279_v48 = vand.u32 4294901760, %v8779_v38  ;;  %6522 = vmatprep.subr.bf16.mxu1 %v6521_v15  ;;  %3037 = vmatprep.mubr.f32.mxu1 %v8506_v33 }
 0x109   :  { %v6523_v62 = vpack.c.bf16 %v3089_v36, %v3082_v34  ;;  %v3215_v44 = vand.u32 4294901760, %v3214_v4  ;;  %v3096_v51 = vand.u32 4294901760, %v3095_v46  ;;  %v3103_v18 = vand.u32 4294901760, %v3102_v60  ;;  %1343 = vmatmul.mubr.f32.vlgmr.msra.gmra.mrb[0].mxu0 %v8107_v19 }
 0x10a   :  { %v3109_v39 = vsub.f32 %v8779_v38, %v12279_v48  ;;  %v3222_v7 = vand.u32 4294901760, %v3221_v53  ;;  %v3229_v22 = vand.u32 4294901760, %v3228_v9  ;;  %v11663_v6 = vand.u32 4294901760, %v8781_v31  ;;  %6104 = vmatpush1.bf16.msk.msra.mxu0 %vm7144_vm5, %v11878_v58  ;;  %3043 = vmatmul.mubr.f32.gmra.mrb[14].mxu1 %v8517_v63 }
 0x10b   :  { %v6525_v47 = vpack.c.bf16 %v3215_v44, %v3208_v0  ;;  %v11660_v36 = vand.u32 4294901760, %v8829_v12  ;;  %v11658_v4 = vand.u32 4294901760, %v8831_v21  ;;  %v6527_v46 = vpack.c.bf16 %v3103_v18, %v3096_v51  ;;  %6524 = vmatpush3.bf16.msra.mxu1 %v6523_v62  ;;  %6106 = vmatprep.subr.msk.bf16.mxu0 %vm7161_vm10, %v11878_v58 }
 0x10c   :  { %v3110_v34 = vand.u32 4294901760, %v3109_v39  ;;  %v6529_v60 = vpack.c.bf16 %v3229_v22, %v3222_v7  ;;  %v3116_v15 = vsub.f32 %v8781_v31, %v11663_v6  ;;  %v11659_v33 = vand.u32 4294901760, %v8841_v27  ;;  %3052 = vmatprep.mubr.f32.mxu1 %v8567_v2  ;;  %v12286_v6 = vld [vmem:[#allocation20_spill] sm:$0xff] }
 0x10d   :  { %v3235_v0 = vsub.f32 %v8829_v12, %v11660_v36  ;;  %v3242_v7 = vsub.f32 %v8831_v21, %v11658_v4  ;;  %v11662_v9 = vand.u32 4294901760, %v8843_v3  ;;  %v11661_v18 = vand.u32 4294901760, %v8899_v37  ;;  %6526 = vmatprep.subr.bf16.mxu1 %v6525_v47 }
 0x10e   :  { %v3117_v22 = vand.u32 4294901760, %v3116_v15  ;;  %v3123_v63 = vsub.f32 %v8841_v27, %v11659_v33  ;;  %v11664_v62 = vand.u32 4294901760, %v8901_v20  ;;  %v11666_v51 = vand.u32 4294901760, %v8903_v41  ;;  %v12282_v15 = vld [vmem:[#allocation172_spill] sm:$0xff]  ;;  %6108 = vmatpush1.bf16.msk.msra.mxu0 %vm7178_vm11, %v11878_v58 }
 0x10f   :  { %v3236_v53 = vand.u32 4294901760, %v3235_v0  ;;  %v3243_v48 = vand.u32 4294901760, %v3242_v7  ;;  %v3130_v39 = vsub.f32 %v8843_v3, %v11662_v9  ;;  %v3249_v47 = vsub.f32 %v8899_v37, %v11661_v18  ;;  %1350 = vmatprep.mubr.f32.mxu0 %v12282_v15  ;;  %v12284_v7 = vld [vmem:[#allocation193_spill] sm:$0xff]  ;;  %6528 = vmatpush3.bf16.msra.mxu1 %v6527_v46 }
 0x110   :  { %v6531_v4 = vpack.c.bf16 %v3117_v22, %v3110_v34  ;;  %v3124_v36 = vand.u32 4294901760, %v3123_v63  ;;  %v3256_v2 = vsub.f32 %v8901_v20, %v11664_v62  ;;  %v3137_v0 = vsub.f32 %v8903_v41, %v11666_v51  ;;  %3058 = vmatmul.mubr.f32.gmra.mrb[16].mxu1 %v12284_v7  ;;  %6110 = vmatprep.subr.msk.bf16.mxu0 %vm7201_vm0, %v11878_v58  ;;  %v12287_v62 = vld [vmem:[#allocation23_spill] sm:$0xff]  ;;  %v12289_v51 = vld [vmem:[#allocation134_spill] sm:$0xff] }
 0x111   :  { %v6533_v18 = vpack.c.bf16 %v3243_v48, %v3236_v53  ;;  %v3131_v9 = vand.u32 4294901760, %v3130_v39  ;;  %v3250_v22 = vand.u32 4294901760, %v3249_v47  ;;  %v11667_v63 = vand.u32 4294901760, %v12286_v6  ;;  %6530 = vmatprep.subr.bf16.mxu1 %v6529_v60  ;;  %3288 = vmatprep.mubr.f32.mxu1 %v12289_v51  ;;  %v12290_v48 = vld [vmem:[#allocation25_spill] sm:$0xff] }
 0x112   :  { %v3257_v33 = vand.u32 4294901760, %v3256_v2  ;;  %v3138_v44 = vand.u32 4294901760, %v3137_v0  ;;  %v11668_v55 = vand.u32 4294901760, %v12287_v62  ;;  %v11670_v10 = vand.u32 4294901760, %v12288_v17  ;;  %v12291_v47 = vld [vmem:[#allocation173_spill] sm:$0xff]  ;;  %6112 = vmatpush1.bf16.msk.msra.mxu0 %vm7212_vm1, %v11878_v58 }
 0x113   :  { %v6535_v7 = vpack.c.bf16 %v3131_v9, %v3124_v36  ;;  %v3144_v46 = vsub.f32 %v12286_v6, %v11667_v63  ;;  %1353 = vmatmul.mubr.f32.gmra.mrb[2].mxu0 %v12291_v47  ;;  %v12293_v9 = vld [vmem:[#allocation120_spill] sm:$0xff]  ;;  %v12294_v53 = vld [vmem:[#allocation181_spill] sm:$0xff]  ;;  %6532 = vmatpush3.bf16.msra.mxu1 %v6531_v4  ;;  %v3164_v34 = vand.u32 4294901760, %v9043_v14  ;;  %vm12304_vm13 = vnez %v12303_v13 }
 0x114   :  { %v6537_v2 = vpack.c.bf16 %v3257_v33, %v3250_v22  ;;  %v3263_v0 = vsub.f32 %v12287_v62, %v11668_v55  ;;  %v3270_v36 = vsub.f32 %v12288_v17, %v11670_v10  ;;  %1360 = vmatprep.mubr.f32.mxu0 %v12294_v53  ;;  %6114 = vmatprep.subr.msk.bf16.mxu0 %vm7249_vm8, %v11878_v58  ;;  %v12296_v33 = vand.u32 4294901760, %v8972_v45 }
 0x115   :  { %v3145_v39 = vand.u32 4294901760, %v3144_v46  ;;  %v12297_v55 = vand.u32 4294901760, %v12290_v48  ;;  %v11672_v10 = vand.u32 4294901760, %v12298_v49  ;;  %6534 = vmatprep.subr.bf16.mxu1 %v6533_v18  ;;  %v12299_v4 = vand.u32 4294901760, %v12293_v9  ;;  %v12302_v18 = vld [vmem:[#allocation139_spill] sm:$0xff] }
 0x116   :  { %v3151_v22 = vsub.f32 %v8972_v45, %v12296_v33  ;;  %v3264_v63 = vand.u32 4294901760, %v3263_v0  ;;  %v3271_v11 = vand.u32 4294901760, %v3270_v36  ;;  %v12300_v33 = vld [vmem:[#allocation187_spill] sm:$0xff]  ;;  %6116 = vmatpush1.bf16.msk.msra.mxu0 %vm7270_vm9, %v11878_v58  ;;  %vm12306_vm6 = vnez %v12305_v57  ;;  %v12355_v57 = vld [vmem:[#allocation78_spill] sm:$0xff] }
 0x117   :  { %v3158_v60 = vsub.f32 %v12290_v48, %v12297_v55  ;;  %v3277_v46 = vsub.f32 %v12293_v9, %v12299_v4  ;;  %v3284_v29 = vsub.f32 %v12298_v49, %v11672_v10  ;;  %1363 = vmatmul.mubr.f32.gmra.mrb[4].mxu0 %v12300_v33  ;;  %v3171_v55 = vand.u32 4294901760, %v9045_v43  ;;  %6536 = vmatpush3.bf16.msra.mxu1 %v6535_v7 }
 0x118   :  { %1500 = vmatprep.mubr.f32.mxu0 %v12302_v18  ;;  %v6539_v0 = vpack.c.bf16 %v3145_v39, %v3138_v44  ;;  %v3152_v36 = vand.u32 4294901760, %v3151_v22  ;;  %6118 = vmatprep.subr.msk.bf16.mxu0 %vm12304_vm13, %v11878_v58  ;;  %v3165_v10 = vsub.f32 %v9043_v14, %v3164_v34  ;;  %v6541_v30 = vpack.c.bf16 %v3271_v11, %v3264_v63  ;;  %v12309_v11 = vld [vmem:[#allocation62_spill] sm:$0xff] }
 0x119   :  { %v3159_v4 = vand.u32 4294901760, %v3158_v60  ;;  %6538 = vmatprep.subr.bf16.mxu1 %v6537_v2  ;;  %v3278_v56 = vand.u32 4294901760, %v3277_v46  ;;  %v3285_v5 = vand.u32 4294901760, %v3284_v29  ;;  %v3172_v59 = vsub.f32 %v9045_v43, %v3171_v55  ;;  %v12307_v60 = vld [vmem:[#allocation59_spill] sm:$0xff]  ;;  %v12311_v63 = vld [vmem:[#allocation66_spill] sm:$0xff] }
 0x11a   :  { %6120 = vmatpush1.bf16.msk.msra.mxu0 %vm12306_vm6, %v11878_v58  ;;  %v3166_v7 = vand.u32 4294901760, %v3165_v10  ;;  %vm12308_vm9 = vnez %v12307_v60  ;;  %vm12310_vm13 = vnez %v12309_v11  ;;  %vm12312_vm8 = vnez %v12311_v63 }
 0x11b   :  { %6540 = vmatpush3.bf16.msra.mxu1 %v6539_v0  ;;  %v6543_v44 = vpack.c.bf16 %v3159_v4, %v3152_v36  ;;  %v3173_v39 = vand.u32 4294901760, %v3172_v59  ;;  %6122 = vmatprep.subr.msk.bf16.mxu0 %vm12308_vm9, %v11878_v58  ;;  %v6545_v22 = vpack.c.bf16 %v3285_v5, %v3278_v56  ;;  %v6549_v10 = vpack.c.bf16 %v8589_v24, %v8587_v23 }
 0x11c   :  { %6542 = vmatprep.subr.bf16.mxu1 %v6541_v30  ;;  %v12313_v59 = vand.u32 4294901760, %v8587_v23  ;;  %v12314_v2 = vand.u32 4294901760, %v8589_v24  ;;  %v12315_v5 = vand.u32 4294901760, %v8614_v8  ;;  %v12316_v56 = vand.u32 4294901760, %v8624_v25  ;;  %v12321_v24 = vld [vmem:[#allocation68_spill] sm:$0xff] }
 0x11d   :  { %v6547_v29 = vpack.c.bf16 %v3173_v39, %v3166_v7  ;;  %v12317_v0 = vand.u32 4294901760, %v8645_v42  ;;  %v12318_v36 = vand.u32 4294901760, %v8647_v26  ;;  %v12320_v23 = vand.u32 4294901760, %v8675_v52 }
 0x11e   :  { %6124 = vmatpush1.bf16.msk.msra.mxu0 %vm12310_vm13, %v11878_v58  ;;  %v9296_v30 = vpack.c.bf16 %v12314_v2, %v12313_v59  ;;  %v9302_v46 = vpack.c.bf16 %v12316_v56, %v12315_v5  ;;  %v12323_v39 = vand.u32 4294901760, %v8704_v32  ;;  %v12325_v2 = vand.u32 4294901760, %v8719_v54 }
 0x11f   :  { %6544 = vmatpush3.bf16.msra.mxu1 %v6543_v44  ;;  %6126 = vmatprep.subr.msk.bf16.mxu0 %vm12312_vm8, %v11878_v58  ;;  %v9308_v4 = vpack.c.bf16 %v12318_v36, %v12317_v0  ;;  %v12319_v44 = vand.u32 4294901760, %v8657_v40  ;;  %vm12322_vm8 = vnez %v12321_v24  ;;  %v12326_v5 = vand.u32 4294901760, %v8721_v35  ;;  %v12327_v36 = vld [vmem:[#allocation71_spill] sm:$0xff] }
 0x120   :  { %6546 = vmatprep.subr.bf16.mxu1 %v6545_v22  ;;  %v12324_v22 = vand.u32 4294901760, %v8706_v1  ;;  %v6551_v0 = vpack.c.bf16 %v8624_v25, %v8614_v8  ;;  %vm12328_vm13 = vnez %v12327_v36  ;;  %v12332_v24 = vand.u32 4294901760, %v8781_v31 }
 0x121   :  { %v9314_v7 = vpack.c.bf16 %v12320_v23, %v12319_v44  ;;  %v9329_v56 = vpack.c.bf16 %v12326_v5, %v12325_v2  ;;  %v12329_v44 = vand.u32 4294901760, %v8775_v16  ;;  %v12330_v23 = vand.u32 4294901760, %v8777_v28 }
 0x122   :  { %6128 = vmatpush1.bf16.msk.msra.mxu0 %vm12322_vm8, %v11878_v58  ;;  %v9323_v59 = vpack.c.bf16 %v12324_v22, %v12323_v39  ;;  %v12331_v22 = vand.u32 4294901760, %v8779_v38  ;;  %v6553_v25 = vpack.c.bf16 %v8647_v26, %v8645_v42  ;;  %v12333_v8 = vand.u32 4294901760, %v8829_v12 }
 0x123   :  { %6548 = vmatpush3.bf16.msra.mxu1 %v6547_v29  ;;  %6130 = vmatprep.subr.msk.bf16.mxu0 %vm12328_vm13, %v11878_v58  ;;  %v9340_v39 = vpack.c.bf16 %v12330_v23, %v12329_v44  ;;  %v12334_v29 = vand.u32 4294901760, %v8831_v21  ;;  %v12336_v36 = vand.u32 4294901760, %v8841_v27  ;;  %v12337_v44 = vand.u32 4294901760, %v8843_v3 }
 0x124   :  { %v9346_v2 = vpack.c.bf16 %v12332_v24, %v12331_v22  ;;  %6550 = vmatprep.subr.bf16.mxu1 %v6549_v10  ;;  %v12339_v63 = vand.u32 4294901760, %v8899_v37  ;;  %v12340_v24 = vand.u32 4294901760, %v8901_v20  ;;  %v12342_v26 = vand.u32 4294901760, %v8903_v41 }
 0x125   :  { %v9354_v5 = vpack.c.bf16 %v12334_v29, %v12333_v8  ;;  %v9360_v23 = vpack.c.bf16 %v12337_v44, %v12336_v36  ;;  %v12343_v42 = vand.u32 4294901760, %v12286_v6  ;;  %v12345_v8 = vld [vmem:[#allocation137_spill] sm:$0xff]  ;;  %v12346_v29 = vld [vmem:[#allocation74_spill] sm:$0xff]  ;;  %v12348_v36 = vand.u32 4294901760, %v12287_v62 }
 0x126   :  { %v9366_v10 = vpack.c.bf16 %v12340_v24, %v12339_v63  ;;  %3290 = vmatmul.mubr.f32.vlgmr.msra.gmra.mrb[18].mxu1 %v12345_v8  ;;  %vm12347_vm13 = vnez %v12346_v29  ;;  %v12349_v44 = vand.u32 4294901760, %v12288_v17  ;;  %v12351_v63 = vld [vmem:[#allocation167_spill] sm:$0xff]  ;;  %v6555_v24 = vpack.c.bf16 %v8675_v52, %v8657_v40 }
 0x127   :  { %12335 = vst [vmem:[#allocation172_spill] sm:$0xff] %v9354_v5  ;;  %12338 = vst [vmem:[#allocation193_spill] sm:$0xff] %v9360_v23  ;;  %v9372_v22 = vpack.c.bf16 %v12343_v42, %v12342_v26  ;;  %6132 = vmatpush1.bf16.msk.msra.mxu0 %vm12347_vm13, %v11878_v58  ;;  %6552 = vmatpush3.bf16.msra.mxu1 %v6551_v0  ;;  %v12352_v26 = vand.u32 4294901760, %v8972_v45  ;;  %v12353_v42 = vand.u32 4294901760, %v12290_v48  ;;  %vm12356_vm13 = vnez %v12355_v57  ;;  %v12361_v52 = vld [vmem:[#allocation171_spill] sm:$0xff]  ;;  %v12506_v23 = vld [vmem:[#allocation58_spill] sm:$0xff] }
 0x128   :  { %12341 = vst [vmem:[#allocation20_spill] sm:$0xff] %v9366_v10  ;;  %v9382_v11 = vpack.c.bf16 %v12349_v44, %v12348_v36  ;;  %3295 = vmatprep.mubr.f32.mxu1 %v12351_v63  ;;  %6554 = vmatprep.subr.bf16.mxu1 %v6553_v25  ;;  %v6557_v29 = vpack.c.bf16 %v8706_v1, %v8704_v32  ;;  %v12357_v0 = vand.u32 4294901760, %v12293_v9  ;;  %v12358_v36 = vand.u32 4294901760, %v12298_v49  ;;  %v12364_v1 = vld [vmem:[#allocation174_spill] sm:$0xff] }
 0x129   :  { %12344 = vst [vmem:[#allocation23_spill] sm:$0xff] %v9372_v22  ;;  %v9391_v60 = vpack.c.bf16 %v12353_v42, %v12352_v26  ;;  %6134 = vmatprep.subr.msk.bf16.mxu0 %vm12356_vm13, %v11878_v58  ;;  %v9404_v40 = vpack.c.bf16 %v3171_v55, %v3164_v34  ;;  %v12362_v26 = vld [vmem:[#allocation80_spill] sm:$0xff]  ;;  %v6559_v32 = vpack.c.bf16 %v8721_v35, %v8719_v54  ;;  %v12365_v42 = vld [vmem:[#allocation82_spill] sm:$0xff]  ;;  %v12367_v34 = vld [vmem:[#allocation183_spill] sm:$0xff]  ;;  %v12507_v5 = vand.u32 4294901760, %v12506_v23 }
 0x12a   :  { %12350 = vst [vmem:[#allocation24_spill] sm:$0xff] %v9382_v11  ;;  %v9402_v44 = vpack.c.bf16 %v12358_v36, %v12357_v0  ;;  %3297 = vmatmul.mubr.f32.gmra.mrb[20].mxu1 %v12361_v52  ;;  %vm12363_vm8 = vnez %v12362_v26  ;;  %v6561_v25 = vpack.c.bf16 %v8777_v28, %v8775_v16  ;;  %vm12366_vm13 = vnez %v12365_v42  ;;  %v12368_v55 = vld [vmem:[#allocation86_spill] sm:$0xff]  ;;  %v12370_v54 = vld [vmem:[#allocation91_spill] sm:$0xff]  ;;  %v12445_v52 = vld [vmem:[#allocation196_spill] sm:$0xff] }
 0x12b   :  { %12354 = vst [vmem:[#allocation134_spill] sm:$0xff] %v9391_v60  ;;  %12360 = vst [vmem:[#allocation173_spill] sm:$0xff] %v9404_v40  ;;  %6136 = vmatpush1.bf16.msk.msra.mxu0 %vm12363_vm8, %v11878_v58  ;;  %6556 = vmatpush3.bf16.msra.mxu1 %v6555_v24  ;;  %vm12369_vm9 = vnez %v12368_v55  ;;  %v6563_v24 = vpack.c.bf16 %v8781_v31, %v8779_v38  ;;  %vm12371_vm8 = vnez %v12370_v54  ;;  %v12372_v35 = vld [vmem:[#allocation138_spill] sm:$0xff]  ;;  %v12379_v0 = vld [vmem:[#allocation107_spill] sm:$0xff] }
 0x12c   :  { %12359 = vst [vmem:[#allocation25_spill] sm:$0xff] %v9402_v44  ;;  %3302 = vmatprep.mubr.f32.mxu1 %v12364_v1  ;;  %6558 = vmatprep.subr.bf16.mxu1 %v6557_v29  ;;  %v6565_v28 = vpack.c.bf16 %v8831_v21, %v8829_v12  ;;  %v12373_v16 = vld [vmem:[#allocation94_spill] sm:$0xff]  ;;  %v6567_v29 = vpack.c.bf16 %v8843_v3, %v8841_v27  ;;  %v12410_v54 = vld [vmem:[#allocation156_spill] sm:$0xff]  ;;  %v12479_v44 = vld [vmem:[#allocation49_spill] sm:$0xff] }
 0x12d   :  { %6138 = vmatprep.subr.msk.bf16.mxu0 %vm12366_vm13, %v11878_v58  ;;  %vm12374_vm13 = vnez %v12373_v16  ;;  %v12375_v38 = vld [vmem:[#allocation98_spill] sm:$0xff]  ;;  %v6569_v31 = vpack.c.bf16 %v8901_v20, %v8899_v37  ;;  %v6571_v21 = vpack.c.bf16 %v12286_v6, %v8903_v41  ;;  %v6573_v3 = vpack.c.bf16 %v12288_v17, %v12287_v62  ;;  %v12383_v37 = vld [vmem:[#allocation115_spill] sm:$0xff]  ;;  %v12483_v11 = vld [vmem:[#allocation52_spill] sm:$0xff] }
 0x12e   :  { %3304 = vmatmul.mubr.f32.gmra.mrb[22].mxu1 %v12367_v34  ;;  %v12377_v12 = vld [vmem:[#allocation102_spill] sm:$0xff]  ;;  %v6575_v20 = vpack.c.bf16 %v12290_v48, %v8972_v45  ;;  %v12385_v6 = vld [vmem:[#allocation135_spill] sm:$0xff]  ;;  %v6577_v62 = vpack.c.bf16 %v12298_v49, %v12293_v9  ;;  %v12390_v45 = vld [vmem:[#allocation21_spill] sm:$0xff]  ;;  %v12484_v22 = vand.u32 4294901760, %v12483_v11 }
 0x12f   :  { %6140 = vmatpush1.bf16.msk.msra.mxu0 %vm12369_vm9, %v11878_v58  ;;  %6560 = vmatpush3.bf16.msra.mxu1 %v6559_v32  ;;  %vm12376_vm9 = vnez %v12375_v38  ;;  %v12381_v27 = vld [vmem:[#allocation110_spill] sm:$0xff]  ;;  %v12388_v32 = vld [vmem:[#allocation136_spill] sm:$0xff]  ;;  %v12513_v23 = vld [vmem:[#allocation189_spill] sm:$0xff] }
 0x130   :  { %6142 = vmatprep.subr.msk.bf16.mxu0 %vm12371_vm8, %v11878_v58  ;;  %6562 = vmatprep.subr.bf16.mxu1 %v6561_v25  ;;  %vm12378_vm8 = vnez %v12377_v12  ;;  %v12386_v41 = vld [vmem:[#allocation22_spill] sm:$0xff] }
 0x131   :  { %3439 = vmatprep.mubr.f32.mxu1 %v12372_v35  ;;  %vm12389_vm6 = vcmp.eq.s32.totalorder %v12388_v32, %v12386_v41  ;;  %v12395_v35 = vld [vmem:[#allocation149_spill] sm:$0xff]  ;;  %v12403_v12 = vld [vmem:[#allocation122_spill] sm:$0xff] }
 0x132   :  { %v4827_v17 = vsel %vm12389_vm6, 1.0, %v11874_v50  ;;  %vm12396_vm6 = vcmp.eq.s32.totalorder %v12395_v35, %v12386_v41 }
 0x133   :  { %6144 = vmatpush1.bf16.msk.msra.mxu0 %vm12374_vm13, %v11878_v58  ;;  %6564 = vmatpush3.bf16.msra.mxu1 %v6563_v24  ;;  %vm12380_vm13 = vnez %v12379_v0  ;;  %v12393_v24 = vld [vmem:[#allocation148_spill] sm:$0xff]  ;;  %v4833_v49 = vsel %vm12396_vm6, 1.0, %v11874_v50  ;;  %v6579_v0 = vpack.c.bf16 %v9045_v43, %v9043_v14 }
 0x134   :  { %6146 = vmatprep.subr.msk.bf16.mxu0 %vm12376_vm9, %v11878_v58  ;;  %6566 = vmatprep.subr.bf16.mxu1 %v6565_v28  ;;  %vm12382_vm9 = vnez %v12381_v27  ;;  %vm12397_vm1 = vcmp.eq.s32.totalorder %v12393_v24, %v12390_v45  ;;  %v9522_v14 = vsub.f32 %v4833_v49, %v4833_v49  ;;  %v12413_v49 = vld [vmem:[#allocation126_spill] sm:$0xff] }
 0x135   :  { %v4829_v9 = vsel %vm12397_vm1, 1.0, %v11874_v50  ;;  %vm12404_vm1 = vnez %v12403_v12 }
 0x136   :  { %v9524_v12 = vsub.f32 %v4829_v9, %v4829_v9 }
 0x137   :  { %6148 = vmatpush1.bf16.msk.msra.mxu0 %vm12378_vm8, %v11878_v58  ;;  %6568 = vmatpush3.bf16.msra.mxu1 %v6567_v29  ;;  %vm12384_vm8 = vnez %v12383_v37  ;;  %v12401_v37 = vld [vmem:[#allocation152_spill] sm:$0xff] }
 0x138   :  { %6150 = vmatprep.subr.msk.bf16.mxu0 %vm12380_vm13, %v11878_v58  ;;  %6570 = vmatprep.subr.bf16.mxu1 %v6569_v31  ;;  %vm12387_vm13 = vcmp.eq.s32.totalorder %v12385_v6, %v12386_v41  ;;  %v12399_v31 = vld [vmem:[#allocation118_spill] sm:$0xff] }
 0x139   :  { %v4824_v36 = vsel %vm12387_vm13, 1.0, %v11874_v50  ;;  %vm12394_vm13 = vcmp.eq.s32.totalorder %v12393_v24, %v12386_v41 }
 0x13a   :  { %v4830_v28 = vsel %vm12394_vm13, 1.0, %v11874_v50  ;;  %vm12402_vm13 = vcmp.eq.s32.totalorder %v12401_v37, %v12386_v41 }
 0x13b   :  { %6152 = vmatpush1.bf16.msk.msra.mxu0 %vm12382_vm9, %v11878_v58  ;;  %6572 = vmatpush3.bf16.msra.mxu1 %v6571_v21  ;;  %vm12391_vm9 = vcmp.eq.s32.totalorder %v12385_v6, %v12390_v45  ;;  %v9495_v21 = vsub.f32 %v4824_v36, %v4824_v36  ;;  %v4836_v27 = vsel %vm12402_vm13, 1.0, %v11874_v50  ;;  %v12405_v36 = vld [vmem:[#allocation153_spill] sm:$0xff]  ;;  %v9520_v43 = vsub.f32 %v4830_v28, %v4830_v28 }
 0x13c   :  { %6154 = vmatprep.subr.msk.bf16.mxu0 %vm12384_vm8, %v11878_v58  ;;  %6574 = vmatprep.subr.bf16.mxu1 %v6573_v3  ;;  %v4823_v48 = vsel %vm12391_vm9, 1.0, %v11874_v50  ;;  %vm12392_vm8 = vcmp.eq.s32.totalorder %v12388_v32, %v12390_v45  ;;  %vm12398_vm9 = vcmp.eq.s32.totalorder %v12395_v35, %v12390_v45  ;;  %v9497_v3 = vsub.f32 %v4827_v17, %v4827_v17 }
 0x13d   :  { %v4826_v25 = vsel %vm12392_vm8, 1.0, %v11874_v50  ;;  %v4832_v29 = vsel %vm12398_vm9, 1.0, %v11874_v50  ;;  %vm12400_vm8 = vnez %v12399_v31  ;;  %v9508_v38 = vsub.f32 %v4823_v48, %v4823_v48 }
 0x13e   :  { %v9510_v31 = vsub.f32 %v4826_v25, %v4826_v25  ;;  %vm12406_vm6 = vcmp.eq.s32.totalorder %v12405_v36, %v12386_v41  ;;  %vm12407_vm9 = vcmp.eq.s32.totalorder %v12401_v37, %v12390_v45  ;;  %v9526_v48 = vsub.f32 %v4832_v29, %v4832_v29  ;;  %v12415_v29 = vld [vmem:[#allocation157_spill] sm:$0xff]  ;;  %v12429_v37 = vld [vmem:[#allocation35_spill] sm:$0xff] }
 0x13f   :  { %6156 = vmatpush1.bf16.msk.msra.mxu0 %vm12400_vm8, %v11878_v58  ;;  %6576 = vmatpush3.bf16.msra.mxu1 %v6575_v20  ;;  %v4839_v17 = vsel %vm12406_vm6, 1.0, %v11874_v50  ;;  %v4835_v20 = vsel %vm12407_vm9, 1.0, %v11874_v50  ;;  %v9528_v25 = vsub.f32 %v4836_v27, %v4836_v27  ;;  %vm12409_vm13 = vcmp.eq.s32.totalorder %v12405_v36, %v12390_v45 }
 0x140   :  { %6158 = vmatprep.subr.msk.bf16.mxu0 %vm12404_vm1, %v11878_v58  ;;  %6578 = vmatprep.subr.bf16.mxu1 %v6577_v62  ;;  %12408 = vst [vmem:[#allocation120_spill] sm:$0xff] %v9526_v48  ;;  %v4838_v16 = vsel %vm12409_vm13, 1.0, %v11874_v50  ;;  %vm12411_vm6 = vcmp.eq.s32.totalorder %v12410_v54, %v12386_v41  ;;  %vm12412_vm9 = vcmp.eq.s32.totalorder %v12410_v54, %v12390_v45  ;;  %vm12414_vm1 = vnez %v12413_v49  ;;  %v12418_v54 = vld [vmem:[#allocation129_spill] sm:$0xff]  ;;  %v12422_v49 = vld [vmem:[#allocation159_spill] sm:$0xff] }
 0x141   :  { %v4842_v62 = vsel %vm12411_vm6, 1.0, %v11874_v50  ;;  %v4841_v28 = vsel %vm12412_vm9, 1.0, %v11874_v50  ;;  %v9545_v27 = vsub.f32 %v4839_v17, %v4839_v17  ;;  %v9547_v9 = vsub.f32 %v4835_v20, %v4835_v20  ;;  %v12420_v17 = vld [vmem:[#allocation158_spill] sm:$0xff] }
 0x142   :  { %vm12416_vm13 = vcmp.eq.s32.totalorder %v12415_v29, %v12386_v41  ;;  %vm12417_vm6 = vcmp.eq.s32.totalorder %v12415_v29, %v12390_v45  ;;  %vm12419_vm9 = vnez %v12418_v54  ;;  %vm12423_vm8 = vcmp.eq.s32.totalorder %v12422_v49, %v12386_v41  ;;  %v12427_v54 = vld [vmem:[#allocation34_spill] sm:$0xff] }
 0x143   :  { %6160 = vmatpush1.bf16.msk.msra.mxu0 %vm12414_vm1, %v11878_v58  ;;  %v4845_v55 = vsel %vm12416_vm13, 1.0, %v11874_v50  ;;  %v4844_v42 = vsel %vm12417_vm6, 1.0, %v11874_v50  ;;  %6580 = vmatpush3.bf16.msra.mxu1 %v6579_v0  ;;  %vm12421_vm1 = vcmp.eq.s32.totalorder %v12420_v17, %v12386_v41  ;;  %v4851_v26 = vsel %vm12423_vm8, 1.0, %v11874_v50  ;;  %v12425_v0 = vld [vmem:[#allocation190_spill] sm:$0xff] }
 0x144   :  { %6162 = vmatprep.subr.msk.bf16.mxu0 %vm12419_vm9, %v11878_v58  ;;  %v4848_v20 = vsel %vm12421_vm1, 1.0, %v11874_v50  ;;  %vm12424_vm13 = vcmp.eq.s32.totalorder %v12420_v17, %v12390_v45  ;;  %vm12426_vm6 = vnez %v12425_v0  ;;  %v12428_v36 = vand.u32 4294901760, %v12427_v54  ;;  %v12435_v54 = vld [vmem:[#allocation162_spill] sm:$0xff] }
 0x145   :  { %v4847_v29 = vsel %vm12424_vm13, 1.0, %v11874_v50  ;;  %6582 = vmatprep.subr.msk.bf16.mxu1 %vm12426_vm6, %v11878_v58  ;;  %v12430_v57 = vand.u32 4294901760, %v12429_v37  ;;  %v9579_v24 = vsub.f32 %v4838_v16, %v4838_v16  ;;  %v9581_v32 = vsub.f32 %v4842_v62, %v4842_v62  ;;  %v12437_v16 = vld [vmem:[#allocation132_spill] sm:$0xff]  ;;  %v12441_v62 = vld [vmem:[#allocation37_spill] sm:$0xff] }
 0x146   :  { %v9583_v6 = vsub.f32 %v4841_v28, %v4841_v28  ;;  %vm12433_vm8 = vcmp.eq.s32.totalorder %v12422_v49, %v12390_v45  ;;  %v9589_v13 = vsub.f32 %v4845_v55, %v4845_v55  ;;  %v9591_v34 = vsub.f32 %v4844_v42, %v4844_v42  ;;  %3442 = vmatmul.mubr.f32.vlgmr.msra.gmra.mrb[24].mxu1 %v8107_v19  ;;  %v12439_v37 = vld [vmem:[#allocation36_spill] sm:$0xff] }
 0x147   :  { %v6165_v35 = vpack.c.bf16 %v12430_v57, %v12428_v36  ;;  %12431 = vst [vmem:[#allocation181_spill] sm:$0xff] %v9579_v24  ;;  %v4850_v17 = vsel %vm12433_vm8, 1.0, %v11874_v50  ;;  %vm12436_vm1 = vcmp.eq.s32.totalorder %v12435_v54, %v12386_v41  ;;  %vm12438_vm13 = vnez %v12437_v16  ;;  %3448 = vmatprep.mubr.f32.mxu1 %v12282_v15  ;;  %v12448_v16 = vld [vmem:[#allocation87_spill] sm:$0xff] }
 0x148   :  { %12432 = vst [vmem:[#allocation27_spill] sm:$0xff] %v9583_v6  ;;  %12434 = vst [vmem:[#allocation187_spill] sm:$0xff] %v9591_v34  ;;  %v4854_v57 = vsel %vm12436_vm1, 1.0, %v11874_v50  ;;  %6164 = vmatpush1.bf16.msk.msra.mxu0 %vm12438_vm13, %v11878_v58  ;;  %v12440_v36 = vand.u32 4294901760, %v12439_v37  ;;  %v12442_v28 = vand.u32 4294901760, %v12441_v62  ;;  %v9605_v55 = vsub.f32 %v4848_v20, %v4848_v20  ;;  %v12450_v37 = vld [vmem:[#allocation39_spill] sm:$0xff] }
 0x149   :  { %v9607_v42 = vsub.f32 %v4851_v26, %v4851_v26  ;;  %v9609_v1 = vsub.f32 %v4847_v29, %v4847_v29  ;;  %vm12446_vm8 = vnez %v12445_v52  ;;  %v9615_v19 = vsub.f32 %v4850_v17, %v4850_v17  ;;  %6166 = vmatprep.subr.bf16.mxu0 %v6165_v35  ;;  %v12456_v17 = vld [vmem:[#allocation142_spill] sm:$0xff]  ;;  %v12462_v35 = vld [vmem:[#allocation88_spill] sm:$0xff] }
 0x14a   :  { %v6167_v49 = vpack.c.bf16 %v12442_v28, %v12440_v36  ;;  %12443 = vst [vmem:[#allocation139_spill] sm:$0xff] %v9605_v55  ;;  %6584 = vmatpush3.bf16.msk.msra.mxu1 %vm12446_vm8, %v11878_v58  ;;  %vm12449_vm1 = vnez %v12448_v16  ;;  %v12451_v20 = vand.u32 4294901760, %v12450_v37  ;;  %v12452_v36 = vld [vmem:[#allocation40_spill] sm:$0xff]  ;;  %v11695_v29 = vand.u32 4294901760, %v9495_v21 }
 0x14b   :  { %12444 = vst [vmem:[#allocation138_spill] sm:$0xff] %v9609_v1  ;;  %12447 = vst [vmem:[#allocation22_spill] sm:$0xff] %v9615_v19  ;;  %6586 = vmatprep.subr.msk.bf16.mxu1 %vm12449_vm1, %v11878_v58  ;;  %v12453_v26 = vand.u32 4294901760, %v12452_v36  ;;  %v9626_v63 = vsub.f32 %v4854_v57, %v4854_v57  ;;  %vm12455_vm13 = vcmp.eq.s32.totalorder %v12435_v54, %v12390_v45  ;;  %1504 = vmatmul.mubr.f32.vlgmr.msra.gmra.mrb[0].mxu0 %v12456_v17 }
 0x14c   :  { %v4853_v15 = vsel %vm12455_vm13, 1.0, %v11874_v50  ;;  %3451 = vmatmul.mubr.f32.gmra.mrb[26].mxu1 %v12291_v47  ;;  %6168 = vmatpush1.bf16.msra.mxu0 %v6167_v49  ;;  %v2101_v16 = vsub.f32 %v9495_v21, %v11695_v29  ;;  %v12461_v54 = vand.u32 4294901760, %v9497_v3  ;;  %vm12463_vm13 = vnez %v12462_v35  ;;  %v12464_v47 = vld [vmem:[#allocation46_spill] sm:$0xff] }
 0x14d   :  { %v6169_v62 = vpack.c.bf16 %v12453_v26, %v12451_v20  ;;  %12454 = vst [vmem:[#allocation21_spill] sm:$0xff] %v9626_v63  ;;  %v12457_v20 = vld [vmem:[#allocation41_spill] sm:$0xff]  ;;  %v12459_v26 = vld [vmem:[#allocation42_spill] sm:$0xff]  ;;  %3457 = vmatprep.mubr.f32.mxu1 %v12294_v53  ;;  %v12465_v49 = vand.u32 4294901760, %v12464_v47  ;;  %v12469_v29 = vand.u32 4294901760, %v9510_v31  ;;  %v9664_v0 = vsub.f32 %v4853_v15, %v4853_v15  ;;  %v12477_v15 = vld [vmem:[#allocation48_spill] sm:$0xff] }
 0x14e   :  { %v12458_v36 = vand.u32 4294901760, %v12457_v20  ;;  %v12460_v28 = vand.u32 4294901760, %v12459_v26  ;;  %v2113_v52 = vsub.f32 %v9497_v3, %v12461_v54  ;;  %6588 = vmatpush3.bf16.msk.msra.mxu1 %vm12463_vm13, %v11878_v58  ;;  %v12466_v20 = vld [vmem:[#allocation47_spill] sm:$0xff]  ;;  %v12470_v54 = vld [vmem:[#allocation165_spill] sm:$0xff]  ;;  %v11700_v40 = vand.u32 4294901760, %v9520_v43 }
 0x14f   :  { %v12467_v37 = vand.u32 4294901760, %v12466_v20  ;;  %v2119_v8 = vsub.f32 %v9510_v31, %v12469_v29  ;;  %vm12471_vm9 = vcmp.eq.s32.totalorder %v12470_v54, %v12386_v41  ;;  %12472 = vst [vmem:[#allocation34_spill] sm:$0xff] %v9664_v0  ;;  %v12473_v53 = vld [vmem:[#allocation17_spill] sm:$0xff]  ;;  %6170 = vmatprep.subr.bf16.mxu0 %v6169_v62  ;;  %vm12475_vm11 = vcmp.eq.s32.totalorder %v12470_v54, %v12390_v45  ;;  %v12476_v29 = vld [vmem:[#allocation175_spill] sm:$0xff] }
 0x150   :  { %v6171_v57 = vpack.c.bf16 %v12460_v28, %v12458_v36  ;;  %v12468_v28 = vand.u32 4294901760, %v9508_v38  ;;  %v4857_v35 = vsel %vm12471_vm9, 1.0, %v11874_v50  ;;  %vm12474_vm0 = vnez %v12473_v53  ;;  %1512 = vmatprep.mubr.f32.mxu0 %v12476_v29  ;;  %3460 = vmatmul.mubr.f32.gmra.mrb[28].mxu1 %v12300_v33 }
 0x151   :  { %v6173_v26 = vpack.c.bf16 %v12467_v37, %v12465_v49  ;;  %6590 = vmatprep.subr.msk.bf16.mxu1 %vm12474_vm0, %v11878_v58  ;;  %v2102_v37 = vand.u32 4294901760, %v2101_v16  ;;  %v2114_v47 = vand.u32 4294901760, %v2113_v52  ;;  %v4856_v49 = vsel %vm12475_vm11, 1.0, %v11874_v50  ;;  %v12481_v52 = vld [vmem:[#allocation51_spill] sm:$0xff]  ;;  %3564 = vmatprep.mubr.f32.mxu1 %v12302_v18 }
 0x152   :  { %v2107_v36 = vsub.f32 %v9508_v38, %v12468_v28  ;;  %v2120_v28 = vand.u32 4294901760, %v2119_v8  ;;  %6172 = vmatpush1.bf16.msra.mxu0 %v6171_v57  ;;  %v12478_v53 = vand.u32 4294901760, %v12477_v15  ;;  %v12480_v62 = vand.u32 4294901760, %v12479_v44  ;;  %6592 = vmatpush3.bf16.msk.msra.mxu1 %vm8803_vm7, %v11878_v58 }
 0x153   :  { %v12482_v60 = vand.u32 4294901760, %v12481_v52  ;;  %v9684_v10 = vpack.c.bf16 %v2114_v47, %v2102_v37  ;;  %6174 = vmatprep.subr.bf16.mxu0 %v6173_v26  ;;  %v2125_v44 = vsub.f32 %v9520_v43, %v11700_v40  ;;  %v11701_v57 = vand.u32 4294901760, %v9524_v12  ;;  %v12492_v37 = vld [vmem:[#allocation168_spill] sm:$0xff] }
 0x154   :  { %v2108_v20 = vand.u32 4294901760, %v2107_v36  ;;  %v6175_v16 = vpack.c.bf16 %v12480_v62, %v12478_v53  ;;  %v11699_v36 = vand.u32 4294901760, %v9522_v14  ;;  %v11702_v11 = vand.u32 4294901760, %v9526_v48  ;;  %v12490_v53 = vld [vmem:[#allocation95_spill] sm:$0xff]  ;;  %v12497_v62 = vld [vmem:[#allocation54_spill] sm:$0xff] }
 0x155   :  { %v6177_v54 = vpack.c.bf16 %v12484_v22, %v12482_v60  ;;  %12485 = vst [vmem:[#allocation35_spill] sm:$0xff] %v9684_v10  ;;  %v9697_v60 = vsub.f32 %v4857_v35, %v4857_v35  ;;  %v9699_v22 = vsub.f32 %v4856_v49, %v4856_v49  ;;  %vm12491_vm11 = vnez %v12490_v53  ;;  %v12502_v53 = vld [vmem:[#allocation96_spill] sm:$0xff] }
 0x156   :  { %v9690_v33 = vpack.c.bf16 %v2120_v28, %v2108_v20  ;;  %6594 = vmatprep.subr.msk.bf16.mxu1 %vm12491_vm11, %v11878_v58  ;;  %v2137_v26 = vsub.f32 %v9522_v14, %v11699_v36  ;;  %vm12493_vm9 = vcmp.eq.s32.totalorder %v12492_v37, %v12386_v41  ;;  %v12494_v20 = vld [vmem:[#allocation178_spill] sm:$0xff]  ;;  %v2126_v35 = vand.u32 4294901760, %v2125_v44  ;;  %6176 = vmatpush1.bf16.msra.mxu0 %v6175_v16  ;;  %v12499_v36 = vld [vmem:[#allocation55_spill] sm:$0xff]  ;;  %v12501_v44 = vld [vmem:[#allocation185_spill] sm:$0xff] }
 0x157   :  { %12488 = vst [vmem:[#allocation37_spill] sm:$0xff] %v9697_v60  ;;  %12489 = vst [vmem:[#allocation39_spill] sm:$0xff] %v9699_v22  ;;  %v4860_v47 = vsel %vm12493_vm9, 1.0, %v11874_v50  ;;  %1516 = vmatmul.mubr.f32.gmra.mrb[2].mxu0 %v12494_v20  ;;  %v2131_v49 = vsub.f32 %v9524_v12, %v11701_v57  ;;  %v2143_v18 = vsub.f32 %v9526_v48, %v11702_v11  ;;  %v12495_v28 = vld [vmem:[#allocation170_spill] sm:$0xff]  ;;  %v12498_v52 = vand.u32 4294901760, %v12497_v62  ;;  %v12504_v11 = vld [vmem:[#allocation57_spill] sm:$0xff] }
 0x158   :  { %12487 = vst [vmem:[#allocation36_spill] sm:$0xff] %v9690_v33  ;;  %vm12496_vm11 = vcmp.eq.s32.totalorder %v12495_v28, %v12386_v41  ;;  %v12500_v40 = vand.u32 4294901760, %v12499_v36  ;;  %1524 = vmatprep.mubr.f32.mxu0 %v12501_v44  ;;  %v2138_v10 = vand.u32 4294901760, %v2137_v26  ;;  %v11705_v57 = vand.u32 4294901760, %v9528_v25  ;;  %6178 = vmatprep.subr.bf16.mxu0 %v6177_v54  ;;  %v12509_v26 = vld [vmem:[#allocation19_spill] sm:$0xff] }
 0x159   :  { %v4863_v15 = vsel %vm12496_vm11, 1.0, %v11874_v50  ;;  %vm12503_vm9 = vnez %v12502_v53  ;;  %v12505_v8 = vand.u32 4294901760, %v12504_v11  ;;  %v2132_v48 = vand.u32 4294901760, %v2131_v49  ;;  %v12516_v49 = vld [vmem:[#allocation60_spill] sm:$0xff]  ;;  %v12536_v53 = vld [vmem:[#allocation67_spill] sm:$0xff] }
 0x15a   :  { %v6179_v33 = vpack.c.bf16 %v12500_v40, %v12498_v52  ;;  %6596 = vmatpush3.bf16.msk.msra.mxu1 %vm12503_vm9, %v11878_v58  ;;  %v2144_v62 = vand.u32 4294901760, %v2143_v18  ;;  %v11706_v36 = vand.u32 4294901760, %v9545_v27  ;;  %v9737_v40 = vsub.f32 %v4860_v47, %v4860_v47  ;;  %v12521_v47 = vld [vmem:[#allocation104_spill] sm:$0xff] }
 0x15b   :  { %v6181_v16 = vpack.c.bf16 %v12507_v5, %v12505_v8  ;;  %vm12510_vm11 = vnez %v12509_v26  ;;  %v9742_v52 = vpack.c.bf16 %v2138_v10, %v2126_v35  ;;  %v2149_v54 = vsub.f32 %v9528_v25, %v11705_v57  ;;  %1528 = vmatmul.mubr.f32.gmra.mrb[4].mxu0 %v12513_v23  ;;  %v12518_v57 = vld [vmem:[#allocation61_spill] sm:$0xff] }
 0x15c   :  { %12508 = vst [vmem:[#allocation40_spill] sm:$0xff] %v9737_v40  ;;  %6598 = vmatprep.subr.msk.bf16.mxu1 %vm12510_vm11, %v11878_v58  ;;  %vm12512_vm9 = vcmp.eq.s32.totalorder %v12492_v37, %v12390_v45  ;;  %v9753_v8 = vpack.c.bf16 %v2144_v62, %v2132_v48  ;;  %v2161_v10 = vsub.f32 %v9545_v27, %v11706_v36  ;;  %v12517_v18 = vand.u32 4294901760, %v12516_v49 }
 0x15d   :  { %12511 = vst [vmem:[#allocation142_spill] sm:$0xff] %v9742_v52  ;;  %v4859_v5 = vsel %vm12512_vm9, 1.0, %v11874_v50  ;;  %vm12515_vm11 = vcmp.eq.s32.totalorder %v12495_v28, %v12390_v45  ;;  %6180 = vmatpush1.bf16.msra.mxu0 %v6179_v33  ;;  %v12519_v11 = vand.u32 4294901760, %v12518_v57  ;;  %1791 = vmatprep.mubr.f32.mxu0 %v12289_v51  ;;  %v2150_v48 = vand.u32 4294901760, %v2149_v54  ;;  %v12525_v33 = vld [vmem:[#allocation64_spill] sm:$0xff] }
 0x15e   :  { %12514 = vst [vmem:[#allocation41_spill] sm:$0xff] %v9753_v8  ;;  %v4862_v35 = vsel %vm12515_vm11, 1.0, %v11874_v50  ;;  %v12520_v62 = vand.u32 4294901760, %v9547_v9  ;;  %vm12522_vm9 = vnez %v12521_v47  ;;  %6182 = vmatprep.subr.bf16.mxu0 %v6181_v16  ;;  %v12523_v8 = vld [vmem:[#allocation63_spill] sm:$0xff]  ;;  %v12526_v37 = vand.u32 4294901760, %v12525_v33 }
 0x15f   :  { %v6183_v52 = vpack.c.bf16 %v12519_v11, %v12517_v18  ;;  %6600 = vmatpush3.bf16.msk.msra.mxu1 %vm12522_vm9, %v11878_v58  ;;  %v12524_v28 = vand.u32 4294901760, %v12523_v8  ;;  %v2162_v26 = vand.u32 4294901760, %v2161_v10  ;;  %v12527_v57 = vand.u32 4294901760, %v9579_v24  ;;  %v12530_v47 = vld [vmem:[#allocation111_spill] sm:$0xff] }
 0x160   :  { %v2155_v36 = vsub.f32 %v9547_v9, %v12520_v62  ;;  %v11711_v54 = vand.u32 4294901760, %v9581_v32  ;;  %v9782_v18 = vsub.f32 %v4863_v15, %v4863_v15  ;;  %v9784_v62 = vsub.f32 %v4859_v5, %v4859_v5  ;;  %v12534_v5 = vld [vmem:[#allocation65_spill] sm:$0xff] }
 0x161   :  { %v6185_v49 = vpack.c.bf16 %v12526_v37, %v12524_v28  ;;  %v2167_v11 = vsub.f32 %v9579_v24, %v12527_v57  ;;  %vm12531_vm11 = vnez %v12530_v47  ;;  %v11712_v8 = vand.u32 4294901760, %v9589_v13  ;;  %6184 = vmatpush1.bf16.msra.mxu0 %v6183_v52 }
 0x162   :  { %12528 = vst [vmem:[#allocation42_spill] sm:$0xff] %v9782_v18  ;;  %12529 = vst [vmem:[#allocation46_spill] sm:$0xff] %v9784_v62  ;;  %6602 = vmatprep.subr.msk.bf16.mxu1 %vm12531_vm11, %v11878_v58  ;;  %v2156_v16 = vand.u32 4294901760, %v2155_v36  ;;  %v9790_v33 = vpack.c.bf16 %v2162_v26, %v2150_v48  ;;  %v2173_v28 = vsub.f32 %v9581_v32, %v11711_v54  ;;  %v11714_v10 = vand.u32 4294901760, %v9583_v6  ;;  %v12538_v48 = vld [vmem:[#allocation69_spill] sm:$0xff]  ;;  %v12545_v26 = vld [vmem:[#allocation182_spill] sm:$0xff] }
 0x163   :  { %v2168_v37 = vand.u32 4294901760, %v2167_v11  ;;  %v9796_v15 = vsub.f32 %v4862_v35, %v4862_v35  ;;  %v12535_v57 = vand.u32 4294901760, %v12534_v5  ;;  %v12537_v47 = vand.u32 4294901760, %v12536_v53  ;;  %6604 = vmatpush3.bf16.msk.msra.mxu1 %vm9008_vm15, %v11878_v58  ;;  %6186 = vmatprep.subr.bf16.mxu0 %v6185_v49  ;;  %v12540_v11 = vld [vmem:[#allocation70_spill] sm:$0xff] }
 0x164   :  { %12532 = vst [vmem:[#allocation47_spill] sm:$0xff] %v9790_v33  ;;  %v2185_v36 = vsub.f32 %v9589_v13, %v11712_v8  ;;  %v12539_v35 = vand.u32 4294901760, %v12538_v48  ;;  %v12541_v52 = vand.u32 4294901760, %v12540_v11  ;;  %v2174_v53 = vand.u32 4294901760, %v2173_v28  ;;  %6606 = vmatprep.subr.msk.bf16.mxu1 %vm9026_vm2, %v11878_v58  ;;  %v12552_v33 = vld [vmem:[#allocation73_spill] sm:$0xff] }
 0x165   :  { %12533 = vst [vmem:[#allocation175_spill] sm:$0xff] %v9796_v15  ;;  %v6187_v24 = vpack.c.bf16 %v12537_v47, %v12535_v57  ;;  %v9813_v5 = vpack.c.bf16 %v2168_v37, %v2156_v16  ;;  %v2179_v47 = vsub.f32 %v9583_v6, %v11714_v10  ;;  %v12543_v57 = vld [vmem:[#allocation180_spill] sm:$0xff]  ;;  %vm12546_vm15 = vcmp.eq.s32.totalorder %v12545_v26, %v12386_v41 }
 0x166   :  { %v6189_v54 = vpack.c.bf16 %v12541_v52, %v12539_v35  ;;  %vm12544_vm11 = vcmp.eq.s32.totalorder %v12543_v57, %v12386_v41  ;;  %v4869_v49 = vsel %vm12546_vm15, 1.0, %v11874_v50  ;;  %v2186_v16 = vand.u32 4294901760, %v2185_v36  ;;  %v12550_v10 = vld [vmem:[#allocation72_spill] sm:$0xff] }
 0x167   :  { %12542 = vst [vmem:[#allocation48_spill] sm:$0xff] %v9813_v5  ;;  %v4866_v8 = vsel %vm12544_vm11, 1.0, %v11874_v50  ;;  %v12548_v37 = vand.u32 4294901760, %v9591_v34  ;;  %vm12549_vm9 = vcmp.eq.s32.totalorder %v12543_v57, %v12390_v45  ;;  %v2180_v11 = vand.u32 4294901760, %v2179_v47  ;;  %6188 = vmatpush1.bf16.msra.mxu0 %v6187_v24  ;;  %6608 = vmatpush3.bf16.msk.msra.mxu1 %vm9070_vm12, %v11878_v58  ;;  %v12556_v47 = vld [vmem:[#allocation75_spill] sm:$0xff]  ;;  %v12558_v57 = vld [vmem:[#allocation76_spill] sm:$0xff] }
 0x168   :  { %v4865_v35 = vsel %vm12549_vm9, 1.0, %v11874_v50  ;;  %v12551_v5 = vand.u32 4294901760, %v12550_v10  ;;  %v12553_v48 = vand.u32 4294901760, %v12552_v33  ;;  %v9842_v61 = vpack.c.bf16 %v2186_v16, %v2174_v53  ;;  %6190 = vmatprep.subr.bf16.mxu0 %v6189_v54  ;;  %6610 = vmatprep.subr.msk.bf16.mxu1 %vm9087_vm14, %v11878_v58 }
 0x169   :  { %v2191_v28 = vsub.f32 %v9591_v34, %v12548_v37  ;;  %v11723_v37 = vand.u32 4294901760, %v9609_v1  ;;  %v12557_v52 = vand.u32 4294901760, %v12556_v47  ;;  %v12559_v41 = vand.u32 4294901760, %v12558_v57  ;;  %v12713_v34 = vld [vmem:[#allocation148_spill] sm:$0xff] }
 0x16a   :  { %v6191_v36 = vpack.c.bf16 %v12553_v48, %v12551_v5  ;;  %12554 = vst [vmem:[#allocation49_spill] sm:$0xff] %v9842_v61  ;;  %v12560_v10 = vand.u32 4294901760, %v9605_v55  ;;  %v12561_v5 = vand.u32 4294901760, %v9607_v42  ;;  %v11724_v48 = vand.u32 4294901760, %v9615_v19 }
 0x16b   :  { %v2192_v6 = vand.u32 4294901760, %v2191_v28  ;;  %v6193_v24 = vpack.c.bf16 %v12559_v41, %v12557_v52  ;;  %v9859_v16 = vsub.f32 %v4866_v8, %v4866_v8  ;;  %vm12563_vm15 = vcmp.eq.s32.totalorder %v12545_v26, %v12390_v45  ;;  %v12570_v26 = vld [vmem:[#allocation79_spill] sm:$0xff]  ;;  %6612 = vmatpush3.bf16.msk.msra.mxu1 %vm9127_vm3, %v11878_v58 }
 0x16c   :  { %v2197_v33 = vsub.f32 %v9605_v55, %v12560_v10  ;;  %v2209_v53 = vsub.f32 %v9607_v42, %v12561_v5  ;;  %v4868_v54 = vsel %vm12563_vm15, 1.0, %v11874_v50  ;;  %v2203_v52 = vsub.f32 %v9609_v1, %v11723_v37  ;;  %6192 = vmatpush1.bf16.msra.mxu0 %v6191_v36  ;;  %v12568_v5 = vld [vmem:[#allocation77_spill] sm:$0xff]  ;;  %6614 = vmatprep.subr.bf16.mxu1 %v9296_v30 }
 0x16d   :  { %12562 = vst [vmem:[#allocation51_spill] sm:$0xff] %v9859_v16  ;;  %v9868_v28 = vpack.c.bf16 %v2192_v6, %v2180_v11  ;;  %v9873_v41 = vsub.f32 %v4869_v49, %v4869_v49  ;;  %v2215_v10 = vsub.f32 %v9615_v19, %v11724_v48  ;;  %v9878_v45 = vsub.f32 %v4865_v35, %v4865_v35  ;;  %v12585_v49 = vld [vmem:[#allocation90_spill] sm:$0xff]  ;;  %v12797_v19 = vld [vmem:[#allocation35_spill] sm:$0xff] }
 0x16e   :  { %v2198_v47 = vand.u32 4294901760, %v2197_v33  ;;  %v2210_v8 = vand.u32 4294901760, %v2209_v53  ;;  %v12569_v61 = vand.u32 4294901760, %v12568_v5  ;;  %v12571_v6 = vand.u32 4294901760, %v12570_v26  ;;  %6194 = vmatprep.subr.bf16.mxu0 %v6193_v24  ;;  %v12575_v53 = vld [vmem:[#allocation81_spill] sm:$0xff]  ;;  %3568 = vmatmul.mubr.f32.vlgmr.msra.gmra.mrb[30].mxu1 %v12456_v17 }
 0x16f   :  { %12565 = vst [vmem:[#allocation52_spill] sm:$0xff] %v9868_v28  ;;  %12566 = vst [vmem:[#allocation178_spill] sm:$0xff] %v9873_v41  ;;  %v2204_v28 = vand.u32 4294901760, %v2203_v52  ;;  %v11725_v50 = vand.u32 4294901760, %v9626_v63  ;;  %v9885_v37 = vsub.f32 %v4868_v54, %v4868_v54  ;;  %v2216_v35 = vand.u32 4294901760, %v2215_v10  ;;  %v12581_v10 = vld [vmem:[#allocation85_spill] sm:$0xff]  ;;  %6616 = vmatpush3.bf16.msra.mxu1 %v9302_v46  ;;  %3575 = vmatprep.mubr.f32.mxu1 %v12476_v29 }
 0x170   :  { %12567 = vst [vmem:[#allocation54_spill] sm:$0xff] %v9878_v45  ;;  %v6195_v11 = vpack.c.bf16 %v12571_v6, %v12569_v61  ;;  %v9890_v33 = vpack.c.bf16 %v2210_v8, %v2198_v47  ;;  %v12576_v26 = vand.u32 4294901760, %v12575_v53  ;;  %v12577_v61 = vld [vmem:[#allocation83_spill] sm:$0xff]  ;;  %v11735_v6 = vand.u32 4294901760, %v9664_v0  ;;  %v12579_v47 = vld [vmem:[#allocation84_spill] sm:$0xff]  ;;  %6618 = vmatprep.subr.bf16.mxu1 %v9308_v4 }
 0x171   :  { %12572 = vst [vmem:[#allocation55_spill] sm:$0xff] %v9885_v37  ;;  %v12578_v52 = vand.u32 4294901760, %v12577_v61  ;;  %v2221_v54 = vsub.f32 %v9626_v63, %v11725_v50  ;;  %v11734_v24 = vand.u32 4294901760, %v9699_v22  ;;  %v12580_v8 = vand.u32 4294901760, %v12579_v47 }
 0x172   :  { %12574 = vst [vmem:[#allocation185_spill] sm:$0xff] %v9890_v33  ;;  %v12582_v48 = vand.u32 4294901760, %v12581_v10  ;;  %v12583_v33 = vld [vmem:[#allocation89_spill] sm:$0xff]  ;;  %v12586_v53 = vand.u32 4294901760, %v12585_v49  ;;  %v9911_v61 = vpack.c.bf16 %v2216_v35, %v2204_v28  ;;  %6196 = vmatpush1.bf16.msra.mxu0 %v6195_v11  ;;  %v2227_v47 = vsub.f32 %v9664_v0, %v11735_v6  ;;  %v12588_v28 = vld [vmem:[#allocation92_spill] sm:$0xff]  ;;  %3579 = vmatmul.mubr.f32.gmra.mrb[32].mxu1 %v12494_v20 }
 0x173   :  { %v6197_v5 = vpack.c.bf16 %v12578_v52, %v12576_v26  ;;  %v12584_v30 = vand.u32 4294901760, %v12583_v33  ;;  %v12587_v26 = vand.u32 4294901760, %v9697_v60  ;;  %v2222_v50 = vand.u32 4294901760, %v2221_v54  ;;  %v12590_v35 = vld [vmem:[#allocation93_spill] sm:$0xff]  ;;  %6620 = vmatpush3.bf16.msra.mxu1 %v9314_v7  ;;  %3586 = vmatprep.mubr.f32.mxu1 %v12501_v44 }
 0x174   :  { %v6199_v36 = vpack.c.bf16 %v12582_v48, %v12580_v8  ;;  %v2239_v48 = vsub.f32 %v9699_v22, %v11734_v24  ;;  %v11733_v49 = vand.u32 4294901760, %v9737_v40  ;;  %v12589_v33 = vand.u32 4294901760, %v12588_v28  ;;  %6622 = vmatprep.subr.bf16.mxu1 %v9323_v59  ;;  %v12635_v24 = vld [vmem:[#allocation187_spill] sm:$0xff] }
 0x175   :  { %v6201_v57 = vpack.c.bf16 %v12586_v53, %v12584_v30  ;;  %v2233_v52 = vsub.f32 %v9697_v60, %v12587_v26  ;;  %v12591_v17 = vand.u32 4294901760, %v12590_v35  ;;  %v11732_v8 = vand.u32 4294901760, %v9782_v18  ;;  %6198 = vmatprep.subr.bf16.mxu0 %v6197_v5  ;;  %v12592_v26 = vld [vmem:[#allocation97_spill] sm:$0xff]  ;;  %v12594_v35 = vld [vmem:[#allocation99_spill] sm:$0xff] }
 0x176   :  { %v11731_v10 = vand.u32 4294901760, %v9784_v62  ;;  %v2228_v30 = vand.u32 4294901760, %v2227_v47  ;;  %v2240_v53 = vand.u32 4294901760, %v2239_v48  ;;  %v2245_v46 = vsub.f32 %v9737_v40, %v11733_v49  ;;  %6200 = vmatpush1.bf16.msra.mxu0 %v6199_v36  ;;  %3590 = vmatmul.mubr.f32.gmra.mrb[34].mxu1 %v12513_v23  ;;  %v12634_v49 = vld [vmem:[#allocation27_spill] sm:$0xff] }
 0x177   :  { %v6203_v11 = vpack.c.bf16 %v12591_v17, %v12589_v33  ;;  %v2234_v54 = vand.u32 4294901760, %v2233_v52  ;;  %v11726_v29 = vand.u32 4294901760, %v9796_v15  ;;  %v12593_v28 = vand.u32 4294901760, %v12592_v26  ;;  %6202 = vmatprep.subr.bf16.mxu0 %v6201_v57  ;;  %6624 = vmatpush3.bf16.msra.mxu1 %v9329_v56  ;;  %v12604_v56 = vld [vmem:[#allocation108_spill] sm:$0xff] }
 0x178   :  { %v12595_v33 = vand.u32 4294901760, %v12594_v35  ;;  %v2257_v4 = vsub.f32 %v9782_v18, %v11732_v8  ;;  %v2251_v5 = vsub.f32 %v9784_v62, %v11731_v10  ;;  %v9950_v47 = vpack.c.bf16 %v2240_v53, %v2228_v30  ;;  %6626 = vmatprep.subr.bf16.mxu1 %v9340_v39  ;;  %3756 = vmatprep.mubr.f32.mxu1 %v12289_v51  ;;  %v12608_v39 = vld [vmem:[#allocation113_spill] sm:$0xff]  ;;  %v12779_v18 = vld [vmem:[#allocation118_spill] sm:$0xff] }
 0x179   :  { %v9941_v17 = vpack.c.bf16 %v2234_v54, %v2222_v50  ;;  %v2246_v48 = vand.u32 4294901760, %v2245_v46  ;;  %v2263_v26 = vsub.f32 %v9796_v15, %v11726_v29  ;;  %v11730_v50 = vand.u32 4294901760, %v9859_v16  ;;  %v12596_v46 = vld [vmem:[#allocation100_spill] sm:$0xff] }
 0x17a   :  { %v6205_v52 = vpack.c.bf16 %v12595_v33, %v12593_v28  ;;  %v2258_v54 = vand.u32 4294901760, %v2257_v4  ;;  %v2252_v28 = vand.u32 4294901760, %v2251_v5  ;;  %v11729_v35 = vand.u32 4294901760, %v9873_v41  ;;  %v12598_v33 = vld [vmem:[#allocation101_spill] sm:$0xff]  ;;  %6204 = vmatpush1.bf16.msra.mxu0 %v6203_v11 }
 0x17b   :  { %v11727_v20 = vand.u32 4294901760, %v9878_v45  ;;  %v2264_v36 = vand.u32 4294901760, %v2263_v26  ;;  %v2269_v30 = vsub.f32 %v9859_v16, %v11730_v50  ;;  %v11728_v53 = vand.u32 4294901760, %v9885_v37  ;;  %6628 = vmatpush3.bf16.msra.mxu1 %v9346_v2  ;;  %v12623_v50 = vld [vmem:[#allocation181_spill] sm:$0xff]  ;;  %v12767_v16 = vld [vmem:[#allocation110_spill] sm:$0xff] }
 0x17c   :  { %v12597_v7 = vand.u32 4294901760, %v12596_v46  ;;  %v12599_v44 = vand.u32 4294901760, %v12598_v33  ;;  %v9969_v5 = vpack.c.bf16 %v2258_v54, %v2246_v48  ;;  %v2281_v29 = vsub.f32 %v9873_v41, %v11729_v35  ;;  %6206 = vmatprep.subr.bf16.mxu0 %v6205_v52  ;;  %v12600_v54 = vld [vmem:[#allocation105_spill] sm:$0xff]  ;;  %v12602_v33 = vld [vmem:[#allocation106_spill] sm:$0xff] }
 0x17d   :  { %v2275_v59 = vsub.f32 %v9878_v45, %v11727_v20  ;;  %v9978_v57 = vpack.c.bf16 %v2264_v36, %v2252_v28  ;;  %v2270_v26 = vand.u32 4294901760, %v2269_v30  ;;  %v2287_v46 = vsub.f32 %v9885_v37, %v11728_v53  ;;  %v12606_v53 = vld [vmem:[#allocation109_spill] sm:$0xff]  ;;  %v12735_v48 = vld [vmem:[#allocation86_spill] sm:$0xff] }
 0x17e   :  { %v6207_v4 = vpack.c.bf16 %v12599_v44, %v12597_v7  ;;  %v12601_v7 = vand.u32 4294901760, %v12600_v54  ;;  %v12603_v44 = vand.u32 4294901760, %v12602_v33  ;;  %v2282_v23 = vand.u32 4294901760, %v2281_v29  ;;  %v12733_v29 = vld [vmem:[#allocation157_spill] sm:$0xff]  ;;  %v12757_v45 = vld [vmem:[#allocation102_spill] sm:$0xff] }
 0x17f   :  { %v2276_v11 = vand.u32 4294901760, %v2275_v59  ;;  %v2288_v36 = vand.u32 4294901760, %v2287_v46  ;;  %v12605_v52 = vand.u32 4294901760, %v12604_v56  ;;  %v12607_v54 = vand.u32 4294901760, %v12606_v53  ;;  %v12614_v53 = vld [vmem:[#allocation116_spill] sm:$0xff] }
 0x180   :  { %v6209_v20 = vpack.c.bf16 %v12603_v44, %v12601_v7  ;;  %v9994_v30 = vpack.c.bf16 %v2282_v23, %v2270_v26  ;;  %6208 = vmatpush1.bf16.msra.mxu0 %v6207_v4  ;;  %v12609_v59 = vand.u32 4294901760, %v12608_v39  ;;  %v12610_v7 = vld [vmem:[#allocation114_spill] sm:$0xff]  ;;  %v12612_v4 = vld [vmem:[#allocation120_spill] sm:$0xff] }
 0x181   :  { %v6211_v35 = vpack.c.bf16 %v12607_v54, %v12605_v52  ;;  %v10000_v33 = vpack.c.bf16 %v2288_v36, %v2276_v11  ;;  %v12611_v46 = vand.u32 4294901760, %v12610_v7  ;;  %v12613_v23 = vld [vmem:[#allocation172_spill] sm:$0xff]  ;;  %v12615_v11 = vand.u32 4294901760, %v12614_v53  ;;  %v12616_v36 = vld [vmem:[#allocation117_spill] sm:$0xff] }
 0x182   :  { %6210 = vmatprep.subr.bf16.mxu0 %v6209_v20  ;;  %6630 = vmatprep.subr.bf16.mxu1 %v12613_v23  ;;  %v12617_v56 = vand.u32 4294901760, %v12616_v36  ;;  %v12618_v20 = vld [vmem:[#allocation193_spill] sm:$0xff]  ;;  %v12625_v53 = vld [vmem:[#allocation124_spill] sm:$0xff] }
 0x183   :  { %v6213_v26 = vpack.c.bf16 %v12611_v46, %v12609_v59  ;;  %6632 = vmatpush3.bf16.msra.mxu1 %v12618_v20  ;;  %v12619_v54 = vld [vmem:[#allocation121_spill] sm:$0xff]  ;;  %v12621_v59 = vld [vmem:[#allocation123_spill] sm:$0xff]  ;;  %v12626_v36 = vand.u32 4294901760, %v12625_v53  ;;  %v12724_v23 = vld [vmem:[#allocation80_spill] sm:$0xff] }
 0x184   :  { %6212 = vmatpush1.bf16.msra.mxu0 %v6211_v35  ;;  %v6215_v52 = vpack.c.bf16 %v12617_v56, %v12615_v11  ;;  %v12620_v39 = vand.u32 4294901760, %v12619_v54  ;;  %v12622_v7 = vand.u32 4294901760, %v12621_v59  ;;  %v12624_v35 = vld [vmem:[#allocation20_spill] sm:$0xff]  ;;  %v12627_v11 = vld [vmem:[#allocation125_spill] sm:$0xff]  ;;  %v12630_v54 = vld [vmem:[#allocation130_spill] sm:$0xff] }
 0x185   :  { %6214 = vmatprep.subr.bf16.mxu0 %v6213_v26  ;;  %6634 = vmatprep.subr.bf16.mxu1 %v12624_v35  ;;  %v12628_v56 = vand.u32 4294901760, %v12627_v11  ;;  %v12629_v26 = vld [vmem:[#allocation23_spill] sm:$0xff]  ;;  %v12631_v59 = vand.u32 4294901760, %v12630_v54  ;;  %v12637_v53 = vld [vmem:[#allocation133_spill] sm:$0xff]  ;;  %v12732_v44 = vld [vmem:[#allocation156_spill] sm:$0xff] }
 0x186   :  { %v6217_v46 = vpack.c.bf16 %v12622_v7, %v12620_v39  ;;  %v12632_v39 = vld [vmem:[#allocation131_spill] sm:$0xff]  ;;  %v12638_v11 = vand.u32 4294901760, %v12637_v53  ;;  %v12647_v53 = vld [vmem:[#allocation145_spill] sm:$0xff] }
 0x187   :  { %v6219_v10 = vpack.c.bf16 %v12628_v56, %v12626_v36  ;;  %6636 = vmatpush3.bf16.msra.mxu1 %v12629_v26  ;;  %v12633_v7 = vand.u32 4294901760, %v12632_v39  ;;  %v12639_v36 = vld [vmem:[#allocation141_spill] sm:$0xff]  ;;  %v12642_v54 = vld [vmem:[#allocation143_spill] sm:$0xff] }
 0x188   :  { %6216 = vmatpush1.bf16.msra.mxu0 %v6215_v52  ;;  %v12636_v52 = vld [vmem:[#allocation24_spill] sm:$0xff]  ;;  %v12640_v56 = vand.u32 4294901760, %v12639_v36  ;;  %v12643_v39 = vand.u32 4294901760, %v12642_v54  ;;  %v12648_v36 = vand.u32 4294901760, %v12647_v53  ;;  %v12714_v54 = vld [vmem:[#allocation149_spill] sm:$0xff] }
 0x189   :  { %6218 = vmatprep.subr.bf16.mxu0 %v6217_v46  ;;  %v6221_v8 = vpack.c.bf16 %v12633_v7, %v12631_v59  ;;  %6638 = vmatprep.subr.bf16.mxu1 %v12636_v52  ;;  %v12641_v46 = vld [vmem:[#allocation134_spill] sm:$0xff]  ;;  %v12644_v59 = vld [vmem:[#allocation144_spill] sm:$0xff]  ;;  %v12723_v26 = vld [vmem:[#allocation153_spill] sm:$0xff] }
 0x18a   :  { %v6223_v6 = vpack.c.bf16 %v12640_v56, %v12638_v11  ;;  %v12645_v7 = vand.u32 4294901760, %v12644_v59  ;;  %v12649_v11 = vld [vmem:[#allocation146_spill] sm:$0xff]  ;;  %v12653_v59 = vld [vmem:[#allocation137_spill] sm:$0xff]  ;;  %v12722_v52 = vld [vmem:[#allocation152_spill] sm:$0xff] }
 0x18b   :  { %6640 = vmatpush3.bf16.msra.mxu1 %v12641_v46  ;;  %v12650_v56 = vand.u32 4294901760, %v12649_v11  ;;  %v12674_v11 = vld [vmem:[#allocation44_spill] sm:$0xff]  ;;  %v12717_v46 = vmov 0 }
 0x18c   :  { %6220 = vmatpush1.bf16.msra.mxu0 %v6219_v10  ;;  %v6225_v20 = vpack.c.bf16 %v12645_v7, %v12643_v39  ;;  %v12646_v10 = vld [vmem:[#allocation25_spill] sm:$0xff]  ;;  %v12662_v7 = vld [vmem:[#allocation174_spill] sm:$0xff] }
 0x18d   :  { %6222 = vmatprep.subr.bf16.mxu0 %v6221_v8  ;;  %6642 = vmatprep.subr.bf16.mxu1 %v12646_v10  ;;  %v6227_v35 = vpack.c.bf16 %v12650_v56, %v12648_v36  ;;  %v12651_v8 = vld [vmem:[#allocation173_spill] sm:$0xff]  ;;  %v12655_v10 = vld [vmem:[#allocation167_spill] sm:$0xff]  ;;  %v10086_v56 = vpop.f32.mrb[0].mxu1  ;;  %v12667_v39 = vld [vmem:[#allocation38_spill] sm:$0xff] }
 0x18e   :  { %12660 = vst [vmem:[#allocation57_spill] sm:$0xff] %v10086_v56  ;;  %v10094_v53 = vpop.f32.mrb[1].mxu1  ;;  %v12670_v36 = vld [vmem:[#allocation43_spill] sm:$0xff] }
 0x18f   :  { %6644 = vmatpush3.bf16.msra.mxu1 %v12651_v8  ;;  %12663 = vst [vmem:[#allocation58_spill] sm:$0xff] %v10094_v53  ;;  %v12666_v8 = vld [vmem:[#allocation183_spill] sm:$0xff] }
 0x190   :  { %6224 = vmatpush1.bf16.msra.mxu0 %v6223_v6  ;;  %6646 = vmatprep.subr.msk.bf16.mxu1 %vm12426_vm6, %v11878_v58  ;;  %v12676_v6 = vld [vmem:[#allocation96_spill] sm:$0xff] }
 0x191   :  { %6226 = vmatprep.subr.bf16.mxu0 %v6225_v20  ;;  %v12672_v20 = vld [vmem:[#allocation95_spill] sm:$0xff] }
 0x192   :  { %3758 = vmatmul.mubr.f32.vlgmr.msra.gmra.mrb[36].mxu1 %v12653_v59 }
 0x193   :  { %6648 = vmatpush3.bf16.msk.msra.mxu1 %vm12446_vm8, %v11878_v58  ;;  %3763 = vmatprep.mubr.f32.mxu1 %v12655_v10 }
 0x194   :  { %6228 = vmatpush1.bf16.msra.mxu0 %v6227_v35  ;;  %6650 = vmatprep.subr.msk.bf16.mxu1 %vm12449_vm1, %v11878_v58  ;;  %v12658_v35 = vld [vmem:[#allocation171_spill] sm:$0xff] }
 0x195   :  { %6230 = vmatprep.subr.msk.bf16.mxu0 %vm7121_vm4, %v11878_v58  ;;  %vm12668_vm4 = vnez %v12667_v39  ;;  %v12680_v39 = vld [vmem:[#allocation19_spill] sm:$0xff] }
 0x196   :  { %3765 = vmatmul.mubr.f32.gmra.mrb[38].mxu1 %v12658_v35  ;;  %vm12681_vm8 = vnez %v12680_v39  ;;  %v12690_v39 = vld [vmem:[#allocation56_spill] sm:$0xff] }
 0x197   :  { %1793 = vmatmul.mubr.f32.vlgmr.msra.gmra.mrb[0].mxu0 %v12653_v59  ;;  %6652 = vmatpush3.bf16.msk.msra.mxu1 %vm12463_vm13, %v11878_v58  ;;  %vm12691_vm15 = vnez %v12690_v39  ;;  %v11736_v39 = vmov 0.0|0.0  }
 0x198   :  { %6232 = vmatpush1.bf16.msk.msra.mxu0 %vm7144_vm5, %v11878_v58  ;;  %3770 = vmatprep.mubr.f32.mxu1 %v12662_v7  ;;  %vm12671_vm5 = vnez %v12670_v36  ;;  %v12678_v36 = vld [vmem:[#allocation45_spill] sm:$0xff] }
 0x199   :  { %6654 = vmatprep.subr.msk.bf16.mxu1 %vm12474_vm0, %v11878_v58  ;;  %6234 = vmatprep.subr.msk.bf16.mxu0 %vm7161_vm10, %v11878_v58  ;;  %vm12673_vm0 = vnez %v12672_v20  ;;  %vm12675_vm10 = vnez %v12674_v11  ;;  %vm12679_vm6 = vnez %v12678_v36  ;;  %v12682_v20 = vld [vmem:[#allocation50_spill] sm:$0xff]  ;;  %v12684_v11 = vld [vmem:[#allocation104_spill] sm:$0xff]  ;;  %v12688_v36 = vld [vmem:[#allocation111_spill] sm:$0xff] }
 0x19a   :  { %1799 = vmatprep.mubr.f32.mxu0 %v12655_v10  ;;  %3772 = vmatmul.mubr.f32.gmra.mrb[40].mxu1 %v12666_v8  ;;  %vm12683_vm1 = vnez %v12682_v20  ;;  %vm12685_vm13 = vnez %v12684_v11  ;;  %vm12689_vm11 = vnez %v12688_v36  ;;  %v12692_v20 = vld [vmem:[#allocation119_spill] sm:$0xff]  ;;  %v12699_v36 = vld [vmem:[#allocation66_spill] sm:$0xff]  ;;  %v12704_v11 = vld [vmem:[#allocation136_spill] sm:$0xff] }
 0x19b   :  { %6656 = vmatpush3.bf16.msk.msra.mxu1 %vm8803_vm7, %v11878_v58  ;;  %3874 = vmatprep.mubr.f32.mxu1 %v12289_v51  ;;  %vm12677_vm7 = vnez %v12676_v6  ;;  %v12686_v6 = vld [vmem:[#allocation53_spill] sm:$0xff] }
 0x19c   :  { %6236 = vmatpush1.bf16.msk.msra.mxu0 %vm12668_vm4, %v11878_v58  ;;  %6658 = vmatprep.subr.msk.bf16.mxu1 %vm12673_vm0, %v11878_v58  ;;  %vm12687_vm9 = vnez %v12686_v6  ;;  %vm12693_vm4 = vnez %v12692_v20  ;;  %v12697_v6 = vld [vmem:[#allocation62_spill] sm:$0xff]  ;;  %v12702_v20 = vld [vmem:[#allocation184_spill] sm:$0xff] }
 0x19d   :  { %6238 = vmatprep.subr.msk.bf16.mxu0 %vm12671_vm5, %v11878_v58  ;;  %1801 = vmatmul.mubr.f32.gmra.mrb[2].mxu0 %v12658_v35  ;;  %vm12698_vm0 = vnez %v12697_v6  ;;  %v12705_v6 = vld [vmem:[#allocation68_spill] sm:$0xff] }
 0x19e   :  { %1807 = vmatprep.mubr.f32.mxu0 %v12662_v7 }
 0x19f   :  { %6660 = vmatpush3.bf16.msk.msra.mxu1 %vm12677_vm7, %v11878_v58 }
 0x1a0   :  { %6240 = vmatpush1.bf16.msk.msra.mxu0 %vm12675_vm10, %v11878_v58  ;;  %6662 = vmatprep.subr.msk.bf16.mxu1 %vm12681_vm8, %v11878_v58  ;;  %vm12700_vm10 = vnez %v12699_v36  ;;  %v12708_v36 = vld [vmem:[#allocation71_spill] sm:$0xff]  ;;  %vm226_vm8 = vcmp.eq.s32.totalorder %v12714_v54, %v12702_v20  ;;  %v12751_v54 = vmov 0 }
 0x1a1   :  { %6242 = vmatprep.subr.msk.bf16.mxu0 %vm12679_vm6, %v11878_v58  ;;  %1809 = vmatmul.mubr.f32.gmra.mrb[4].mxu0 %v12666_v8  ;;  %vm12706_vm6 = vnez %v12705_v6  ;;  %v12710_v6 = vmov 0  ;;  %v10247_v2 = vpop.f32.mrb[2].mxu1 }
 0x1a2   :  { %1944 = vmatprep.mubr.f32.mxu0 %v12289_v51  ;;  %v12694_v51 = vld [vmem:[#allocation59_spill] sm:$0xff]  ;;  %12731 = vst [vmem:[#allocation63_spill] sm:$0xff] %v10247_v2  ;;  %v10253_v28 = vpop.f32.mrb[3].mxu1 }
 0x1a3   :  { %6664 = vmatpush3.bf16.msk.msra.mxu1 %vm12685_vm13, %v11878_v58  ;;  %vm12695_vm5 = vnez %v12694_v51  ;;  %v12703_v51 = vld [vmem:[#allocation135_spill] sm:$0xff]  ;;  %12734 = vst [vmem:[#allocation64_spill] sm:$0xff] %v10253_v28 }
 0x1a4   :  { %6244 = vmatpush1.bf16.msk.msra.mxu0 %vm12683_vm1, %v11878_v58  ;;  %6666 = vmatprep.subr.msk.bf16.mxu1 %vm12689_vm11, %v11878_v58  ;;  %vm217_vm7 = vcmp.eq.s32.totalorder %v12703_v51, %v12702_v20  ;;  %vm229_vm11 = vcmp.eq.s32.totalorder %v12722_v52, %v12702_v20  ;;  %v12738_v28 = vld [vmem:[#allocation91_spill] sm:$0xff]  ;;  %v12741_v51 = vmov 0  ;;  %v12764_v52 = vld [vmem:[#allocation168_spill] sm:$0xff] }
 0x1a5   :  { %6246 = vmatprep.subr.msk.bf16.mxu0 %vm12687_vm9, %v11878_v58 }
 0x1a7   :  { %6668 = vmatpush3.bf16.msk.msra.mxu1 %vm12693_vm4, %v11878_v58  ;;  %vm12725_vm4 = vnez %v12724_v23  ;;  %v12729_v23 = vld [vmem:[#allocation82_spill] sm:$0xff] }
 0x1a8   :  { %6248 = vmatpush1.bf16.msk.msra.mxu0 %vm12691_vm15, %v11878_v58  ;;  %6670 = vmatprep.subr.msk.bf16.mxu1 %vm9026_vm2, %v11878_v58  ;;  %vm220_vm2 = vcmp.eq.s32.totalorder %v12704_v11, %v12702_v20  ;;  %vm232_vm15 = vcmp.eq.s32.totalorder %v12723_v26, %v12702_v20  ;;  %v12744_v11 = vld [vmem:[#allocation158_spill] sm:$0xff] }
 0x1a9   :  { %6250 = vmatprep.subr.msk.bf16.mxu0 %vm12695_vm5, %v11878_v58  ;;  %vm10240_vm5 = vmpackc.low %vm232_vm15, %vm229_vm11 }
 0x1ab   :  { %6672 = vmatpush3.bf16.msk.msra.mxu1 %vm9070_vm12, %v11878_v58  ;;  %vm12709_vm12 = vnez %v12708_v36  ;;  %v12715_v36 = vld [vmem:[#allocation74_spill] sm:$0xff] }
 0x1ac   :  { %6252 = vmatpush1.bf16.msk.msra.mxu0 %vm12698_vm0, %v11878_v58  ;;  %6674 = vmatprep.subr.msk.bf16.mxu1 %vm9087_vm14, %v11878_v58  ;;  %vm10191_vm14 = vmpackc.low %vm220_vm2, %vm217_vm7  ;;  %vm12716_vm1 = vnez %v12715_v36  ;;  %v12720_v36 = vld [vmem:[#allocation78_spill] sm:$0xff]  ;;  %vm12730_vm0 = vnez %v12729_v23 }
 0x1ad   :  { %6254 = vmatprep.subr.msk.bf16.mxu0 %vm12700_vm10, %v11878_v58  ;;  %v12711_v6 = vsel %vm10191_vm14, 4294967295, %v12710_v6  ;;  %vm12721_vm9 = vnez %v12720_v36  ;;  %v12726_v36 = vmov 0  ;;  %vm235_vm10 = vcmp.eq.s32.totalorder %v12732_v44, %v12702_v20 }
 0x1ae   :  { %12712 = vst [vmem:[#allocation189_spill] sm:$0xff] %v12711_v6  ;;  %v12727_v36 = vsel %vm10240_vm5, 4294967295, %v12726_v36 }
 0x1af   :  { %6676 = vmatpush3.bf16.msk.msra.mxu1 %vm9127_vm3, %v11878_v58  ;;  %vm223_vm3 = vcmp.eq.s32.totalorder %v12713_v34, %v12702_v20  ;;  %12728 = vst [vmem:[#allocation61_spill] sm:$0xff] %v12727_v36  ;;  %v12746_v36 = vld [vmem:[#allocation94_spill] sm:$0xff] }
 0x1b0   :  { %6256 = vmatpush1.bf16.msk.msra.mxu0 %vm12706_vm6, %v11878_v58  ;;  %6677 = vmatprep.subr.bf16.mxu1 %v11736_v39  ;;  %vm10214_vm13 = vmpackc.low %vm226_vm8, %vm223_vm3  ;;  %vm238_vm6 = vcmp.eq.s32.totalorder %v12733_v29, %v12702_v20 }
 0x1b1   :  { %6258 = vmatprep.subr.msk.bf16.mxu0 %vm12709_vm12, %v11878_v58  ;;  %v12718_v46 = vsel %vm10214_vm13, 4294967295, %v12717_v46  ;;  %vm12736_vm12 = vnez %v12735_v48  ;;  %v12740_v48 = vmov 0.0|0.0  }
 0x1b2   :  { %3876 = vmatmul.mubr.f32.vlgmr.msra.gmra.mrb[42].mxu1 %v12653_v59  ;;  %12719 = vst [vmem:[#allocation60_spill] sm:$0xff] %v12718_v46 }
 0x1b3   :  { %6679 = vmatpush3.bf16.msk.msra.mxu1 %vm10191_vm14, %v11878_v58  ;;  %3881 = vmatprep.mubr.f32.mxu1 %v12655_v10 }
 0x1b4   :  { %6260 = vmatpush1.bf16.msk.msra.mxu0 %vm12716_vm1, %v11878_v58  ;;  %6680 = vmatprep.subr.bf16.mxu1 %v11736_v39  ;;  %vm12739_vm1 = vnez %v12738_v28  ;;  %v12745_v28 = vld [vmem:[#allocation159_spill] sm:$0xff] }
 0x1b5   :  { %6262 = vmatprep.subr.msk.bf16.mxu0 %vm12721_vm9, %v11878_v58  ;;  %vm241_vm9 = vcmp.eq.s32.totalorder %v12744_v11, %v12702_v20 }
 0x1b6   :  { %3883 = vmatmul.mubr.f32.gmra.mrb[44].mxu1 %v12658_v35 }
 0x1b7   :  { %6682 = vmatpush3.bf16.msk.msra.mxu1 %vm10214_vm13, %v11878_v58  ;;  %3888 = vmatprep.mubr.f32.mxu1 %v12662_v7 }
 0x1b8   :  { %6264 = vmatpush1.bf16.msk.msra.mxu0 %vm12725_vm4, %v11878_v58  ;;  %6683 = vmatprep.subr.bf16.mxu1 %v11736_v39  ;;  %v12737_v39 = vmov 0.0   ;;  %vm244_vm4 = vcmp.eq.s32.totalorder %v12745_v28, %v12702_v20 }
 0x1b9   :  { %6266 = vmatprep.subr.msk.bf16.mxu0 %vm12730_vm0, %v11878_v58  ;;  %v4825_v23 = vsel %vm217_vm7, 1.0, %v12737_v39  ;;  %v4828_v2 = vsel %vm220_vm2, 1.0, %v12737_v39  ;;  %vm10280_vm7 = vmpackc.low %vm238_vm6, %vm235_vm10  ;;  %vm11766_vm2 = vmmov 0   ;;  %vm12747_vm0 = vnez %v12746_v36  ;;  %v10311_v36 = vpop.f32.mrb[4].mxu1 }
 0x1ba   :  { %3890 = vmatmul.mubr.f32.gmra.mrb[46].mxu1 %v12666_v8  ;;  %v12742_v51 = vsel %vm10280_vm7, 4294967295, %v12741_v51  ;;  %v10290_v53 = vsub.f32 %v4825_v23, %v4825_v23  ;;  %v10292_v56 = vsub.f32 %v4828_v2, %v4828_v2  ;;  %v4831_v46 = vsel %vm223_vm3, 1.0, %v12737_v39  ;;  %v12748_v2 = vld [vmem:[#allocation98_spill] sm:$0xff]  ;;  %12750 = vst [vmem:[#allocation67_spill] sm:$0xff] %v10311_v36  ;;  %vm10320_vm3 = vmpackc.low %vm244_vm4, %vm241_vm9  ;;  %v10324_v34 = vpop.f32.mrb[5].mxu1 }
 0x1bb   :  { %6685 = vmatpush3.bf16.msk.msra.mxu1 %vm10240_vm5, %v11878_v58  ;;  %12743 = vst [vmem:[#allocation65_spill] sm:$0xff] %v12742_v51  ;;  %5695 = vmatprep.mubr.msk.f32.mxu1 %vm11766_vm2, %v12737_v39  ;;  %v4834_v6 = vsel %vm226_vm8, 1.0, %v12737_v39  ;;  %v12752_v54 = vsel %vm10320_vm3, 4294967295, %v12751_v54  ;;  %12754 = vst [vmem:[#allocation70_spill] sm:$0xff] %v10324_v34  ;;  %v12755_v23 = vld [vmem:[#allocation162_spill] sm:$0xff]  ;;  %v10330_v36 = vsub.f32 %v4831_v46, %v4831_v46  ;;  %v12759_v34 = vld [vmem:[#allocation107_spill] sm:$0xff] }
 0x1bc   :  { %6268 = vmatpush1.bf16.msk.msra.mxu0 %vm12736_vm12, %v11878_v58  ;;  %6686 = vmatprep.subr.bf16.mxu1 %v12740_v48  ;;  %vm12749_vm12 = vnez %v12748_v2  ;;  %12753 = vst [vmem:[#allocation69_spill] sm:$0xff] %v12752_v54  ;;  %vm247_vm8 = vcmp.eq.s32.totalorder %v12755_v23, %v12702_v20  ;;  %v12756_v2 = vld [vmem:[#allocation165_spill] sm:$0xff]  ;;  %v10332_v51 = vsub.f32 %v4834_v6, %v4834_v6  ;;  %v4837_v46 = vsel %vm229_vm11, 1.0, %v12737_v39  ;;  %v10368_v26 = vpop.f32.mrb[6].mxu1 }
 0x1bd   :  { %6270 = vmatprep.subr.msk.bf16.mxu0 %vm12739_vm1, %v11878_v58  ;;  %vm250_vm1 = vcmp.eq.s32.totalorder %v12756_v2, %v12702_v20  ;;  %v12761_v6 = vmov 0  ;;  %vm253_vm11 = vcmp.eq.s32.totalorder %v12764_v52, %v12702_v20  ;;  %12766 = vst [vmem:[#allocation73_spill] sm:$0xff] %v10368_v26  ;;  %v10373_v37 = vpop.f32.mrb[7].mxu1  ;;  %v12770_v54 = vand.u32 4294901760, %v10290_v53 }
 0x1be   :  { %12769 = vst [vmem:[#allocation31_spill] sm:$0xff] %v10373_v37  ;;  %v12771_v62 = vand.u32 4294901760, %v10292_v56  ;;  %v10383_v0 = vsub.f32 %v4837_v46, %v4837_v46  ;;  %v12774_v46 = vmov 0  ;;  %v4849_v44 = vsel %vm241_vm9, 1.0, %v12737_v39 }
 0x1bf   :  { %6688 = vmatpush3.bf16.msk.msra.mxu1 %vm10280_vm7, %v11878_v58  ;;  %v4010_v41 = vsub.f32 %v10290_v53, %v12770_v54  ;;  %v4846_v54 = vsel %vm238_vm6, 1.0, %v12737_v39  ;;  %v4852_v29 = vsel %vm244_vm4, 1.0, %v12737_v39  ;;  %v12781_v11 = vand.u32 4294901760, %v10330_v36 }
 0x1c0   :  { %6272 = vmatpush1.bf16.msk.msra.mxu0 %vm12747_vm0, %v11878_v58  ;;  %6689 = vmatprep.subr.bf16.mxu1 %v12740_v48  ;;  %vm12758_vm0 = vnez %v12757_v45  ;;  %v4840_v45 = vsel %vm232_vm15, 1.0, %v12737_v39  ;;  %vm12768_vm15 = vnez %v12767_v16  ;;  %v4017_v15 = vsub.f32 %v10292_v56, %v12771_v62  ;;  %v12772_v16 = vld [vmem:[#allocation115_spill] sm:$0xff] }
 0x1c1   :  { %6274 = vmatprep.subr.msk.bf16.mxu0 %vm12749_vm12, %v11878_v58  ;;  %vm12760_vm12 = vnez %v12759_v34  ;;  %v12765_v34 = vld [vmem:[#allocation170_spill] sm:$0xff]  ;;  %v10385_v26 = vsub.f32 %v4840_v45, %v4840_v45  ;;  %v4843_v62 = vsel %vm235_vm10, 1.0, %v12737_v39  ;;  %v12777_v45 = vld [vmem:[#allocation180_spill] sm:$0xff]  ;;  %v4011_v40 = vand.u32 4294901760, %v4010_v41 }
 0x1c2   :  { %vm259_vm10 = vcmp.eq.s32.totalorder %v12777_v45, %v12702_v20  ;;  %v4018_v37 = vand.u32 4294901760, %v4017_v15  ;;  %v12782_v22 = vand.u32 4294901760, %v10332_v51  ;;  %v10433_v63 = vsub.f32 %v4843_v62, %v4843_v62  ;;  %v12788_v15 = vld [vmem:[#allocation126_spill] sm:$0xff] }
 0x1c3   :  { %6691 = vmatpush3.bf16.msk.msra.mxu1 %vm10320_vm3, %v11878_v58  ;;  %v10435_v60 = vsub.f32 %v4846_v54, %v4846_v54  ;;  %v10456_v62 = vsub.f32 %v4849_v44, %v4849_v44  ;;  %v10458_v54 = vsub.f32 %v4852_v29, %v4852_v29  ;;  %v12790_v29 = vld [vmem:[#allocation129_spill] sm:$0xff]  ;;  %v12792_v23 = vand.u32 4294901760, %v10383_v0 }
 0x1c4   :  { %6276 = vmatpush1.bf16.msk.msra.mxu0 %vm12758_vm0, %v11878_v58  ;;  %6692 = vmatprep.subr.bf16.mxu1 %v12740_v48  ;;  %vm10360_vm0 = vmpackc.low %vm250_vm1, %vm247_vm8  ;;  %v4031_v28 = vsub.f32 %v10332_v51, %v12782_v22  ;;  %v12785_v22 = vmov 0  ;;  %v6702_v41 = vpack.c.bf16 %v4018_v37, %v4011_v40  ;;  %v12793_v40 = vand.u32 4294901760, %v10385_v26 }
 0x1c5   :  { %6278 = vmatprep.subr.msk.bf16.mxu0 %vm12760_vm12, %v11878_v58  ;;  %v12762_v6 = vsel %vm10360_vm0, 4294967295, %v12761_v6  ;;  %vm256_vm12 = vcmp.eq.s32.totalorder %v12765_v34, %v12702_v20  ;;  %v4038_v2 = vsub.f32 %v10383_v0, %v12792_v23  ;;  %v12794_v23 = vld [vmem:[#allocation16_spill] sm:$0xff]  ;;  %v12798_v55 = vand.u32 4294901760, %v10433_v63 }
 0x1c6   :  { %12763 = vst [vmem:[#allocation72_spill] sm:$0xff] %v12762_v6  ;;  %vm10408_vm2 = vmpackc.low %vm256_vm12, %vm253_vm11  ;;  %v4024_v6 = vsub.f32 %v10330_v36, %v12781_v11  ;;  %v4855_v11 = vsel %vm247_vm8, 1.0, %v12737_v39  ;;  %v4032_v44 = vand.u32 4294901760, %v4031_v28  ;;  %v4045_v37 = vsub.f32 %v10385_v26, %v12793_v40  ;;  %v12795_v40 = vld [vmem:[#allocation132_spill] sm:$0xff] }
 0x1c7   :  { %6694 = vmatpush3.bf16.msk.msra.mxu1 %vm10360_vm0, %v11878_v58  ;;  %v12775_v46 = vsel %vm10408_vm2, 4294967295, %v12774_v46  ;;  %v10486_v28 = vsub.f32 %v4855_v11, %v4855_v11  ;;  %vm12796_vm8 = vnez %v12795_v40  ;;  %v4039_v11 = vand.u32 4294901760, %v4038_v2 }
 0x1c8   :  { %6280 = vmatpush1.bf16.msk.msra.mxu0 %vm12768_vm15, %v11878_v58  ;;  %vm12773_vm15 = vnez %v12772_v16  ;;  %6695 = vmatprep.subr.bf16.mxu1 %v12740_v48  ;;  %12776 = vst [vmem:[#allocation75_spill] sm:$0xff] %v12775_v46  ;;  %v12778_v16 = vld [vmem:[#allocation182_spill] sm:$0xff]  ;;  %v4025_v46 = vand.u32 4294901760, %v4024_v6  ;;  %v11787_v6 = vand.u32 4294901760, %v10456_v62  ;;  %v4052_v52 = vsub.f32 %v10433_v63, %v12798_v55 }
 0x1c9   :  { %6282 = vmatprep.subr.msk.bf16.mxu0 %vm12773_vm15, %v11878_v58  ;;  %vm262_vm6 = vcmp.eq.s32.totalorder %v12778_v16, %v12702_v20  ;;  %vm12780_vm15 = vnez %v12779_v18  ;;  %v12783_v18 = vld [vmem:[#allocation122_spill] sm:$0xff]  ;;  %v4867_v55 = vsel %vm259_vm10, 1.0, %v12737_v39 }
 0x1ca   :  { %vm12784_vm9 = vnez %v12783_v18  ;;  %vm10452_vm4 = vmpackc.low %vm262_vm6, %vm259_vm10  ;;  %v4858_v18 = vsel %vm250_vm1, 1.0, %v12737_v39  ;;  %v6705_v1 = vpack.c.bf16 %v4032_v44, %v4025_v46  ;;  %v4864_v44 = vsel %vm256_vm12, 1.0, %v12737_v39 }
 0x1cb   :  { %6697 = vmatpush3.bf16.msk.msra.mxu1 %vm10408_vm2, %v11878_v58  ;;  %v12786_v22 = vsel %vm10452_vm4, 4294967295, %v12785_v22  ;;  %vm12800_vm1 = vmmov 0   ;;  %v4066_v34 = vsub.f32 %v10456_v62, %v11787_v6  ;;  %v10531_v45 = vsub.f32 %v4864_v44, %v4864_v44 }
 0x1cc   :  { %6284 = vmatpush1.bf16.msk.msra.mxu0 %vm12780_vm15, %v11878_v58  ;;  %6698 = vmatprep.subr.bf16.mxu1 %v12740_v48  ;;  %12787 = vst [vmem:[#allocation76_spill] sm:$0xff] %v12786_v22  ;;  %vm12789_vm15 = vnez %v12788_v15  ;;  %v10488_v22 = vsub.f32 %v4858_v18, %v4858_v18  ;;  %v11786_v15 = vand.u32 4294901760, %v10458_v54  ;;  %v4046_v18 = vand.u32 4294901760, %v4045_v37 }
 0x1cd   :  { %6286 = vmatprep.subr.msk.bf16.mxu0 %vm12784_vm9, %v11878_v58  ;;  %vm12791_vm9 = vnez %v12790_v29  ;;  %v4861_v29 = vsel %vm253_vm11, 1.0, %v12737_v39  ;;  %v11793_v37 = vand.u32 4294901760, %v10486_v28  ;;  %v4053_v40 = vand.u32 4294901760, %v4052_v52  ;;  %v12805_v52 = vld [vmem:[#allocation47_spill] sm:$0xff] }
 0x1ce   :  { %v4073_v2 = vsub.f32 %v10458_v54, %v11786_v15  ;;  %v12803_v15 = vld [vmem:[#allocation127_spill] sm:$0xff]  ;;  %v10540_v6 = vsub.f32 %v4867_v55, %v4867_v55  ;;  %v11788_v44 = vand.u32 4294901760, %v10531_v45 }
 0x1cf   :  { %6700 = vmatpush3.bf16.msk.msra.mxu1 %vm10452_vm4, %v11878_v58  ;;  %v4080_v20 = vsub.f32 %v10486_v28, %v11793_v37 }
 0x1d0   :  { %6288 = vmatpush1.bf16.msk.msra.mxu0 %vm12789_vm15, %v11878_v58  ;;  %6701 = vmatprep.subr.bf16.mxu1 %v12740_v48 }
 0x1d1   :  { %6290 = vmatprep.subr.msk.bf16.mxu0 %vm12791_vm9, %v11878_v58 }
 0x1d2   :  { %5696 = vmatmul.mubr.f32.vlgmr.msra.gmra.mrb[48].mxu1 %v12794_v23  ;;  %v12799_v23 = vand.u32 4294901760, %v10435_v60 }
 0x1d3   :  { %6703 = vmatpush3.bf16.msra.mxu1 %v6702_v41  ;;  %5698 = vmatprep.mubr.msk.f32.mxu1 %vm12800_vm1, %v12737_v39  ;;  %v10514_v41 = vsub.f32 %v4861_v29, %v4861_v29  ;;  %v11792_v29 = vand.u32 4294901760, %v10488_v22 }
 0x1d4   :  { %6292 = vmatpush1.bf16.msk.msra.mxu0 %vm12796_vm8, %v11878_v58  ;;  %v4059_v46 = vsub.f32 %v10435_v60, %v12799_v23  ;;  %6704 = vmatprep.subr.bf16.mxu1 %v12740_v48 }
 0x1d5   :  { %6326 = vmatprep.subr.bf16.mxu0 %v12797_v19  ;;  %v12801_v19 = vld [vmem:[#allocation36_spill] sm:$0xff]  ;;  %v4087_v16 = vsub.f32 %v10488_v22, %v11792_v29  ;;  %v12835_v29 = vld [vmem:[#allocation34_spill] sm:$0xff] }
 0x1d6   :  { %v4060_v23 = vand.u32 4294901760, %v4059_v46  ;;  %5699 = vmatmul.mubr.f32.gmra.mrb[50].mxu1 %v12803_v15  ;;  %v10556_v46 = vpop.f32.mrb[8].mxu1 }
 0x1d7   :  { %1946 = vmatmul.mubr.f32.vlgmr.msra.gmra.mrb[0].mxu0 %v12653_v59  ;;  %6706 = vmatpush3.bf16.msra.mxu1 %v6705_v1  ;;  %v6708_v59 = vpack.c.bf16 %v4046_v18, %v4039_v11  ;;  %v12804_v1 = vld [vmem:[#allocation41_spill] sm:$0xff]  ;;  %v4067_v11 = vand.u32 4294901760, %v4066_v34  ;;  %v4074_v18 = vand.u32 4294901760, %v4073_v2  ;;  %12806 = vst [vmem:[#allocation77_spill] sm:$0xff] %v10556_v46  ;;  %v10561_v55 = vpop.f32.mrb[9].mxu1  ;;  %v12808_v34 = vld [vmem:[#allocation198_spill] sm:$0xff] }
 0x1d8   :  { %6328 = vmatpush1.bf16.msra.mxu0 %v12801_v19  ;;  %1952 = vmatprep.mubr.f32.mxu0 %v12655_v10  ;;  %v12802_v19 = vld [vmem:[#allocation142_spill] sm:$0xff]  ;;  %v4870_v10 = vsel %vm262_vm6, 1.0, %v12737_v39  ;;  %12807 = vst [vmem:[#allocation79_spill] sm:$0xff] %v10561_v55 }
 0x1d9   :  { %6330 = vmatprep.subr.bf16.mxu0 %v12802_v19  ;;  %6707 = vmatprep.subr.bf16.mxu1 %v12740_v48  ;;  %v10553_v15 = vsub.f32 %v4870_v10, %v4870_v10  ;;  %v6714_v2 = vpack.c.bf16 %v4074_v18, %v4067_v11  ;;  %v12810_v19 = vld [vmem:[#allocation49_spill] sm:$0xff]  ;;  %v10579_v18 = vpop.f32.mrb[10].mxu1  ;;  %v12841_v55 = vld [vmem:[#allocation46_spill] sm:$0xff] }
 0x1da   :  { %5701 = vmatprep.mubr.msk.f32.mxu1 %vm12800_vm1, %v12737_v39  ;;  %12811 = vst [vmem:[#allocation81_spill] sm:$0xff] %v10579_v18  ;;  %v12840_v18 = vld [vmem:[#allocation175_spill] sm:$0xff] }
 0x1db   :  { %1954 = vmatmul.mubr.f32.gmra.mrb[2].mxu0 %v12658_v35  ;;  %6709 = vmatpush3.bf16.msra.mxu1 %v6708_v59  ;;  %v6711_v35 = vpack.c.bf16 %v4060_v23, %v4053_v40  ;;  %v12809_v59 = vld [vmem:[#allocation48_spill] sm:$0xff]  ;;  %v4081_v40 = vand.u32 4294901760, %v4080_v20  ;;  %v4088_v23 = vand.u32 4294901760, %v4087_v16  ;;  %v11790_v11 = vand.u32 4294901760, %v10553_v15  ;;  %v10581_v20 = vpop.f32.mrb[11].mxu1 }
 0x1dc   :  { %6332 = vmatpush1.bf16.msra.mxu0 %v12804_v1  ;;  %1960 = vmatprep.mubr.f32.mxu0 %v12662_v7  ;;  %v11789_v7 = vand.u32 4294901760, %v10514_v41  ;;  %v11791_v1 = vand.u32 4294901760, %v10540_v6  ;;  %12812 = vst [vmem:[#allocation83_spill] sm:$0xff] %v10581_v20  ;;  %v12842_v46 = vpack.c.bf16 %v12840_v18, %v12841_v55 }
 0x1dd   :  { %6334 = vmatprep.subr.bf16.mxu0 %v12805_v52  ;;  %6710 = vmatprep.subr.bf16.mxu1 %v12740_v48  ;;  %v6717_v16 = vpack.c.bf16 %v4088_v23, %v4081_v40 }
 0x1de   :  { %5702 = vmatmul.mubr.f32.gmra.mrb[52].mxu1 %v12808_v34  ;;  %v4094_v10 = vsub.f32 %v10514_v41, %v11789_v7  ;;  %v5335_v7 = vpop.f32.mrb[12].mxu1 }
 0x1df   :  { %1962 = vmatmul.mubr.f32.gmra.mrb[4].mxu0 %v12666_v8  ;;  %5736 = vmatprep.mubr.msk.f32.mxu1 %vm12800_vm1, %v12737_v39  ;;  %v4101_v8 = vsub.f32 %v10531_v45, %v11788_v44  ;;  %v4115_v44 = vsub.f32 %v10553_v15, %v11790_v11  ;;  %v5336_v40 = vpop.f32.mrb[13].mxu1 }
 0x1e0   :  { %6336 = vmatpush1.bf16.msra.mxu0 %v12809_v59  ;;  %2322 = vmatprep.mubr.f32.mxu0 %v12737_v39  ;;  %v4095_v52 = vand.u32 4294901760, %v4094_v10  ;;  %v12814_v59 = vld [vmem:[#allocation185_spill] sm:$0xff] }
 0x1e1   :  { %6712 = vmatpush3.bf16.msra.mxu1 %v6711_v35  ;;  %6338 = vmatprep.subr.bf16.mxu0 %v12810_v19  ;;  %v12813_v35 = vld [vmem:[#allocation52_spill] sm:$0xff]  ;;  %v4102_v34 = vand.u32 4294901760, %v4101_v8  ;;  %v4108_v19 = vsub.f32 %v10540_v6, %v11791_v1  ;;  %v4116_v10 = vand.u32 4294901760, %v4115_v44  ;;  %v10594_v8 = vadd.f32 %v5336_v40, %v5335_v7  ;;  %v12815_v44 = vld [vmem:[#allocation191_spill] sm:$0xff] }
 0x1e2   :  { %6713 = vmatprep.subr.bf16.mxu1 %v12740_v48  ;;  %v6726_v7 = vpack.c.bf16 %v10292_v56, %v10290_v53  ;;  %v6735_v40 = vpack.c.bf16 %v10435_v60, %v10433_v63  ;;  %v12834_v1 = vld [vmem:[#allocation39_spill] sm:$0xff] }
 0x1e3   :  { %v4109_v23 = vand.u32 4294901760, %v4108_v19  ;;  %v12821_v19 = vld [vmem:[#allocation26_spill] sm:$0xff]  ;;  %v12836_v37 = vpack.c.bf16 %v12834_v1, %v12835_v29 }
 0x1e4   :  { %6340 = vmatpush1.bf16.msra.mxu0 %v12813_v35  ;;  %v5338_v35 = vpop.f32.mrb[14].mxu1 }
 0x1e5   :  { %6715 = vmatpush3.bf16.msra.mxu1 %v6714_v2  ;;  %6342 = vmatprep.subr.bf16.mxu0 %v12814_v59  ;;  %v6720_v2 = vpack.c.bf16 %v4102_v34, %v4095_v52  ;;  %v5339_v59 = vpop.f32.mrb[15].mxu1  ;;  %v6723_v11 = vpack.c.bf16 %v4116_v10, %v4109_v23  ;;  %v12819_v52 = vpack.c.bf16 %v9522_v14, %v9520_v43 }
 0x1e6   :  { %6716 = vmatprep.subr.bf16.mxu1 %v12740_v48  ;;  %v12820_v34 = vpack.c.bf16 %v12612_v4, %v9524_v12  ;;  %v12823_v23 = vpack.c.bf16 %v12623_v50, %v9547_v9  ;;  %v6738_v10 = vpack.c.bf16 %v10458_v54, %v10456_v62 }
 0x1e8   :  { %6344 = vmatpush1.bf16.msra.mxu0 %v9911_v61  ;;  %v10599_v61 = vadd.f32 %v5339_v59, %v5338_v35  ;;  %v12824_v35 = vpack.c.bf16 %v9589_v13, %v9581_v32  ;;  %v12825_v59 = vpack.c.bf16 %v12635_v24, %v12634_v49 }
 0x1e9   :  { %6718 = vmatpush3.bf16.msra.mxu1 %v6717_v16  ;;  %6346 = vmatprep.subr.bf16.mxu0 %v9941_v17  ;;  %v5341_v16 = vpop.f32.mrb[16].mxu1 }
 0x1ea   :  { %6719 = vmatprep.subr.bf16.mxu1 %v12740_v48  ;;  %v5342_v17 = vpop.f32.mrb[17].mxu1 }
 0x1ec   :  { %6348 = vmatpush1.bf16.msra.mxu0 %v9950_v47  ;;  %v10606_v47 = vadd.f32 %v5342_v17, %v5341_v16  ;;  %v6741_v16 = vpack.c.bf16 %v10488_v22, %v10486_v28  ;;  %v12826_v17 = vld [vmem:[#allocation139_spill] sm:$0xff] }
 0x1ed   :  { %6721 = vmatpush3.bf16.msra.mxu1 %v6720_v2  ;;  %6350 = vmatprep.subr.bf16.mxu0 %v9969_v5  ;;  %v6729_v5 = vpack.c.bf16 %v10332_v51, %v10330_v36  ;;  %v12822_v2 = vpack.c.bf16 %v9545_v27, %v9528_v25 }
 0x1ee   :  { %6722 = vmatprep.subr.bf16.mxu1 %v12740_v48 }
 0x1f0   :  { %6352 = vmatpush1.bf16.msra.mxu0 %v9978_v57  ;;  %v12816_v57 = vpack.c.bf16 %v9497_v3, %v9495_v21 }
 0x1f1   :  { %6724 = vmatpush3.bf16.msra.mxu1 %v6723_v11  ;;  %6354 = vmatprep.subr.bf16.mxu0 %v9994_v30  ;;  %v12817_v30 = vpack.c.bf16 %v9510_v31, %v9508_v38  ;;  %v6732_v11 = vpack.c.bf16 %v10385_v26, %v10383_v0 }
 0x1f2   :  { %6725 = vmatprep.subr.bf16.mxu1 %v12740_v48 }
 0x1f4   :  { %5737 = vmatmul.mubr.f32.vlgmr.msra.gmra.mrb[48].mxu1 %v12815_v44  ;;  %6356 = vmatpush1.bf16.msra.mxu0 %v10000_v33  ;;  %v12818_v33 = vld [vmem:[#allocation192_spill] sm:$0xff] }
 0x1f5   :  { %6727 = vmatpush3.bf16.msra.mxu1 %v6726_v7  ;;  %6358 = vmatprep.subr.bf16.mxu0 %v12816_v57  ;;  %v12827_v7 = vpack.c.bf16 %v9607_v42, %v12826_v17 }
 0x1f6   :  { %6728 = vmatprep.subr.bf16.mxu1 %v12740_v48  ;;  %5739 = vmatprep.mubr.msk.f32.mxu1 %vm12800_vm1, %v12737_v39 }
 0x1f7   :  { %2324 = vmatmul.mubr.f32.vlgmr.msra.gmra.mrb[6].mxu0 %v12815_v44  ;;  %v12880_v44 = vld [vmem:[#allocation169_spill] sm:$0xff] }
 0x1f8   :  { %6360 = vmatpush1.bf16.msra.mxu0 %v12817_v30  ;;  %5740 = vmatmul.mubr.f32.gmra.mrb[50].mxu1 %v12818_v33  ;;  %v12828_v30 = vld [vmem:[#allocation22_spill] sm:$0xff] }
 0x1f9   :  { %6730 = vmatpush3.bf16.msra.mxu1 %v6729_v5  ;;  %6362 = vmatprep.subr.bf16.mxu0 %v12819_v52  ;;  %v5376_v5 = vpop.f32.mrb[18].mxu1 }
 0x1fa   :  { %6731 = vmatprep.subr.bf16.mxu1 %v12740_v48  ;;  %5742 = vmatprep.mubr.msk.f32.mxu1 %vm12800_vm1, %v12737_v39  ;;  %v5377_v57 = vpop.f32.mrb[19].mxu1 }
 0x1fb   :  { %2329 = vmatprep.mubr.f32.mxu0 %v12737_v39 }
 0x1fc   :  { %6364 = vmatpush1.bf16.msra.mxu0 %v12820_v34  ;;  %5743 = vmatmul.mubr.f32.gmra.mrb[52].mxu1 %v12821_v19  ;;  %v5378_v34 = vadd.f32 %v5377_v57, %v5376_v5  ;;  %v12837_v5 = vld [vmem:[#allocation42_spill] sm:$0xff]  ;;  %v12838_v57 = vld [vmem:[#allocation40_spill] sm:$0xff] }
 0x1fd   :  { %6733 = vmatpush3.bf16.msra.mxu1 %v6732_v11  ;;  %6366 = vmatprep.subr.bf16.mxu0 %v12822_v2  ;;  %v12829_v11 = vld [vmem:[#allocation138_spill] sm:$0xff]  ;;  %v12831_v2 = vld [vmem:[#allocation37_spill] sm:$0xff]  ;;  %v12839_v20 = vpack.c.bf16 %v12837_v5, %v12838_v57 }
 0x1fe   :  { %6734 = vmatprep.subr.bf16.mxu1 %v12740_v48  ;;  %5777 = vmatprep.mubr.msk.f32.mxu1 %vm12800_vm1, %v12737_v39  ;;  %v12830_v52 = vpack.c.bf16 %v12828_v30, %v12829_v11 }
 0x1ff   :  { %2331 = vmatmul.mubr.f32.gmra.mrb[8].mxu0 %v12818_v33  ;;  %v12847_v33 = vld [vmem:[#allocation55_spill] sm:$0xff] }
 0x200   :  { %6368 = vmatpush1.bf16.msra.mxu0 %v12823_v23  ;;  %2336 = vmatprep.mubr.f32.mxu0 %v12737_v39  ;;  %v12832_v23 = vld [vmem:[#allocation21_spill] sm:$0xff] }
 0x201   :  { %6736 = vmatpush3.bf16.msra.mxu1 %v6735_v40  ;;  %6370 = vmatprep.subr.bf16.mxu0 %v12824_v35  ;;  %v6744_v40 = vpack.c.bf16 %v10531_v45, %v10514_v41  ;;  %v3292_v35 = vadd.f32 %v5378_v34, %v10594_v8 }
 0x202   :  { %6737 = vmatprep.subr.bf16.mxu1 %v12740_v48 }
 0x203   :  { %2338 = vmatmul.mubr.f32.gmra.mrb[10].mxu0 %v12821_v19  ;;  %v12846_v19 = vld [vmem:[#allocation194_spill] sm:$0xff] }
 0x204   :  { %6372 = vmatpush1.bf16.msra.mxu0 %v12825_v59  ;;  %2472 = vmatprep.mubr.f32.mxu0 %v12737_v39  ;;  %v5379_v59 = vpop.f32.mrb[20].mxu1 }
 0x205   :  { %6739 = vmatpush3.bf16.msra.mxu1 %v6738_v10  ;;  %6374 = vmatprep.subr.bf16.mxu0 %v12827_v7  ;;  %v12833_v10 = vpack.c.bf16 %v12831_v2, %v12832_v23  ;;  %v5380_v7 = vpop.f32.mrb[21].mxu1 }
 0x206   :  { %6740 = vmatprep.subr.bf16.mxu1 %v12740_v48  ;;  %v5382_v8 = vpop.f32.mrb[22].mxu1 }
 0x207   :  { %v5383_v34 = vpop.f32.mrb[23].mxu1 }
 0x208   :  { %6376 = vmatpush1.bf16.msra.mxu0 %v12830_v52  ;;  %v5381_v52 = vadd.f32 %v5380_v7, %v5379_v59  ;;  %v12844_v59 = vld [vmem:[#allocation51_spill] sm:$0xff] }
 0x209   :  { %6742 = vmatpush3.bf16.msra.mxu1 %v6741_v16  ;;  %6378 = vmatprep.subr.bf16.mxu0 %v12833_v10  ;;  %v6747_v16 = vpack.c.bf16 %v10553_v15, %v10540_v6 }
 0x20a   :  { %6743 = vmatprep.subr.bf16.mxu1 %v12740_v48  ;;  %v3299_v10 = vadd.f32 %v5381_v52, %v10599_v61  ;;  %v12848_v61 = vld [vmem:[#allocation54_spill] sm:$0xff] }
 0x20b   :  { %v12849_v52 = vpack.c.bf16 %v12847_v33, %v12848_v61  ;;  %v12890_v33 = vld [vmem:[#allocation186_spill] sm:$0xff] }
 0x20c   :  { %6380 = vmatpush1.bf16.msra.mxu0 %v12836_v37  ;;  %v5384_v37 = vadd.f32 %v5383_v34, %v5382_v8  ;;  %v12857_v34 = vld [vmem:[#allocation150_spill] sm:$0xff]  ;;  %v12885_v8 = vld [vmem:[#allocation179_spill] sm:$0xff] }
 0x20d   :  { %6745 = vmatpush3.bf16.msra.mxu1 %v6744_v40  ;;  %6382 = vmatprep.subr.bf16.mxu0 %v12839_v20  ;;  %v12843_v40 = vld [vmem:[#allocation178_spill] sm:$0xff]  ;;  %vm12858_vm10 = vnez %v12857_v34 }
 0x20e   :  { %6746 = vmatprep.subr.bf16.mxu1 %v12740_v48  ;;  %v12845_v7 = vpack.c.bf16 %v12843_v40, %v12844_v59  ;;  %v3306_v20 = vadd.f32 %v5384_v37, %v10606_v47  ;;  %v12853_v47 = vld [vmem:[#allocation147_spill] sm:$0xff]  ;;  %v12861_v37 = vld [vmem:[#allocation128_spill] sm:$0xff] }
 0x20f   :  { %vm12854_vm12 = vnez %v12853_v47 }
 0x210   :  { %6384 = vmatpush1.bf16.msra.mxu0 %v12842_v46  ;;  %v12851_v46 = vld [vmem:[#allocation140_spill] sm:$0xff] }
 0x211   :  { %6748 = vmatpush3.bf16.msra.mxu1 %v6747_v16  ;;  %6386 = vmatprep.subr.bf16.mxu0 %v12845_v7  ;;  %vm12852_vm11 = vnez %v12851_v46  ;;  %v12855_v16 = vld [vmem:[#allocation103_spill] sm:$0xff] }
 0x212   :  { %6749 = vmatprep.subr.bf16.mxu1 %v12740_v48  ;;  %v12873_v7 = vld [vmem:[#allocation163_spill] sm:$0xff] }
 0x214   :  { %5778 = vmatmul.mubr.f32.vlgmr.msra.gmra.mrb[48].mxu1 %v12846_v19  ;;  %6388 = vmatpush1.bf16.msra.mxu0 %v12849_v52  ;;  %v12863_v52 = vld [vmem:[#allocation154_spill] sm:$0xff] }
 0x215   :  { %6751 = vmatpush3.bf16.msk.msra.mxu1 %vm10191_vm14, %v11878_v58  ;;  %6390 = vmatprep.subr.msk.bf16.mxu0 %vm12852_vm11, %v11878_v58  ;;  %vm12864_vm15 = vnez %v12863_v52  ;;  %v12868_v52 = vld [vmem:[#allocation160_spill] sm:$0xff] }
 0x216   :  { %6752 = vmatprep.subr.bf16.mxu1 %v12740_v48  ;;  %5780 = vmatprep.mubr.msk.f32.mxu1 %vm12800_vm1, %v12737_v39  ;;  %vm12869_vm8 = vnez %v12868_v52 }
 0x217   :  { %2475 = vmatmul.mubr.f32.vlgmr.msra.gmra.mrb[6].mxu0 %v12846_v19  ;;  %v12859_v19 = vld [vmem:[#allocation151_spill] sm:$0xff] }
 0x218   :  { %6392 = vmatpush1.bf16.msk.msra.mxu0 %vm12854_vm12, %v11878_v58  ;;  %5781 = vmatmul.mubr.f32.gmra.mrb[50].mxu1 %v12855_v16  ;;  %vm12860_vm6 = vnez %v12859_v19  ;;  %v12865_v19 = vld [vmem:[#allocation155_spill] sm:$0xff] }
 0x219   :  { %6754 = vmatpush3.bf16.msk.msra.mxu1 %vm10214_vm13, %v11878_v58  ;;  %6394 = vmatprep.subr.msk.bf16.mxu0 %vm12858_vm10, %v11878_v58  ;;  %vm12866_vm9 = vnez %v12865_v19  ;;  %v5417_v52 = vpop.f32.mrb[24].mxu1  ;;  %v12878_v19 = vld [vmem:[#allocation166_spill] sm:$0xff] }
 0x21a   :  { %6755 = vmatprep.subr.bf16.mxu1 %v12740_v48  ;;  %5783 = vmatprep.mubr.msk.f32.mxu1 %vm12800_vm1, %v12737_v39  ;;  %v5418_v34 = vpop.f32.mrb[25].mxu1 }
 0x21b   :  { %2480 = vmatprep.mubr.f32.mxu0 %v12737_v39 }
 0x21c   :  { %6396 = vmatpush1.bf16.msk.msra.mxu0 %vm12860_vm6, %v11878_v58  ;;  %5784 = vmatmul.mubr.f32.gmra.mrb[52].mxu1 %v12861_v37 }
 0x21d   :  { %6757 = vmatpush3.bf16.msk.msra.mxu1 %vm10240_vm5, %v11878_v58  ;;  %6398 = vmatprep.subr.msk.bf16.mxu0 %vm12864_vm15, %v11878_v58 }
 0x21e   :  { %6758 = vmatprep.subr.bf16.mxu1 %v12740_v48  ;;  %5818 = vmatprep.mubr.msk.f32.mxu1 %vm12800_vm1, %v12737_v39 }
 0x21f   :  { %2483 = vmatmul.mubr.f32.gmra.mrb[8].mxu0 %v12855_v16  ;;  %v12870_v16 = vld [vmem:[#allocation161_spill] sm:$0xff]  ;;  %v5420_v47 = vpop.f32.mrb[26].mxu1 }
 0x220   :  { %6400 = vmatpush1.bf16.msk.msra.mxu0 %vm12866_vm9, %v11878_v58  ;;  %2488 = vmatprep.mubr.f32.mxu0 %v12737_v39  ;;  %vm12871_vm15 = vnez %v12870_v16  ;;  %v5419_v16 = vadd.f32 %v5418_v34, %v5417_v52  ;;  %v5421_v46 = vpop.f32.mrb[27].mxu1  ;;  %v12883_v52 = vld [vmem:[#allocation176_spill] sm:$0xff] }
 0x221   :  { %6760 = vmatpush3.bf16.msk.msra.mxu1 %vm10280_vm7, %v11878_v58  ;;  %6402 = vmatprep.subr.msk.bf16.mxu0 %vm12869_vm8, %v11878_v58  ;;  %vm12874_vm7 = vnez %v12873_v7 }
 0x222   :  { %6761 = vmatprep.subr.bf16.mxu1 %v12740_v48  ;;  %v10770_v7 = vadd.f32 %v5419_v16, %v3292_v35 }
 0x223   :  { %2491 = vmatmul.mubr.f32.gmra.mrb[10].mxu0 %v12861_v37  ;;  %v12875_v37 = vld [vmem:[#allocation164_spill] sm:$0xff]  ;;  %v5423_v35 = vpop.f32.mrb[28].mxu1 }
 0x224   :  { %6404 = vmatpush1.bf16.msk.msra.mxu0 %vm12871_vm15, %v11878_v58  ;;  %2593 = vmatprep.mubr.f32.mxu0 %v12737_v39  ;;  %vm12876_vm8 = vnez %v12875_v37  ;;  %v5422_v37 = vadd.f32 %v5421_v46, %v5420_v47  ;;  %v5424_v16 = vpop.f32.mrb[29].mxu1  ;;  %v12887_v46 = vld [vmem:[#allocation76_spill] sm:$0xff]  ;;  %v12888_v47 = vand.u32 4294901760, %v10290_v53 }
 0x225   :  { %6763 = vmatpush3.bf16.msk.msra.mxu1 %vm10320_vm3, %v11878_v58  ;;  %6406 = vmatprep.subr.msk.bf16.mxu0 %vm12874_vm7, %v11878_v58  ;;  %vm12879_vm3 = vnez %v12878_v19  ;;  %vm12881_vm7 = vnez %v12880_v44  ;;  %v5425_v44 = vadd.f32 %v5424_v16, %v5423_v35  ;;  %v12894_v16 = vld [vmem:[#allocation195_spill] sm:$0xff]  ;;  %v12895_v53 = vld [vmem:[#allocation188_spill] sm:$0xff] }
 0x226   :  { %6764 = vmatprep.subr.bf16.mxu1 %v12740_v48  ;;  %v10782_v19 = vadd.f32 %v5422_v37, %v3299_v10  ;;  %v12892_v10 = vand.u32 4294901760, %v9495_v21  ;;  %v12893_v37 = vand.u32 4294901760, %v9497_v3  ;;  %v12899_v21 = vand.u32 4294901760, %v10330_v36  ;;  %v12905_v36 = vld [vmem:[#allocation112_spill] sm:$0xff] }
 0x227   :  { %v10802_v35 = vadd.f32 %v5425_v44, %v3306_v20  ;;  %v12900_v3 = vand.u32 4294901760, %v10332_v51  ;;  %v12901_v44 = vand.u32 4294901760, %v9520_v43  ;;  %v12902_v20 = vand.u32 4294901760, %v9522_v14 }
 0x228   :  { %6408 = vmatpush1.bf16.msk.msra.mxu0 %vm12876_vm8, %v11878_v58  ;;  %v12906_v43 = vand.u32 4294901760, %v10383_v0  ;;  %v12907_v14 = vand.u32 4294901760, %v10385_v26  ;;  %v12911_v0 = vand.u32 4294901760, %v12623_v50  ;;  %v12912_v26 = vld [vmem:[#allocation30_spill] sm:$0xff] }
 0x229   :  { %6766 = vmatpush3.bf16.msk.msra.mxu1 %vm10360_vm0, %v11878_v58  ;;  %6410 = vmatprep.subr.msk.bf16.mxu0 %vm12879_vm3, %v11878_v58  ;;  %vm12884_vm0 = vnez %v12883_v52  ;;  %vm12886_vm3 = vnez %v12885_v8  ;;  %v12889_v52 = vand.u32 4294901760, %v10292_v56  ;;  %v6421_v8 = vpack.c.bf16 %v12893_v37, %v12892_v10 }
 0x22a   :  { %6767 = vmatprep.subr.bf16.mxu1 %v12740_v48  ;;  %v12897_v56 = vand.u32 4294901760, %v9508_v38  ;;  %v6777_v10 = vpack.c.bf16 %v12900_v3, %v12899_v21  ;;  %v6425_v37 = vpack.c.bf16 %v12902_v20, %v12901_v44  ;;  %v12903_v38 = vand.u32 4294901760, %v9524_v12 }
 0x22b   :  { %v6774_v34 = vpack.c.bf16 %v12889_v52, %v12888_v47  ;;  %v12898_v52 = vand.u32 4294901760, %v9510_v31  ;;  %v12904_v31 = vand.u32 4294901760, %v12612_v4  ;;  %v12910_v12 = vand.u32 4294901760, %v9547_v9 }
 0x22c   :  { %6412 = vmatpush1.bf16.msk.msra.mxu0 %vm12881_vm7, %v11878_v58  ;;  %v12916_v21 = vand.u32 4294901760, %v9589_v13  ;;  %v12917_v9 = vand.u32 4294901760, %v12634_v49  ;;  %v12920_v13 = vand.u32 4294901760, %v10458_v54  ;;  %v12922_v44 = vand.u32 4294901760, %v9607_v42 }
 0x22d   :  { %6769 = vmatpush3.bf16.msk.msra.mxu1 %vm10408_vm2, %v11878_v58  ;;  %6414 = vmatprep.subr.msk.bf16.mxu0 %vm12884_vm0, %v11878_v58  ;;  %vm12891_vm0 = vnez %v12890_v33  ;;  %v6423_v47 = vpack.c.bf16 %v12898_v52, %v12897_v56  ;;  %v6427_v51 = vpack.c.bf16 %v12904_v31, %v12903_v38  ;;  %v12909_v56 = vand.u32 4294901760, %v9545_v27 }
 0x22e   :  { %6770 = vmatprep.subr.bf16.mxu1 %v12740_v48  ;;  %v6431_v4 = vpack.c.bf16 %v12911_v0, %v12910_v12  ;;  %v12914_v27 = vand.u32 4294901760, %v10435_v60  ;;  %v12924_v49 = vand.u32 4294901760, %v12828_v30  ;;  %v12926_v54 = vand.u32 4294901760, %v10488_v22 }
 0x22f   :  { %v12927_v42 = vand.u32 4294901760, %v12832_v23  ;;  %v12928_v38 = vand.u32 4294901760, %v12831_v2  ;;  %v12929_v30 = vand.u32 4294901760, %v12835_v29  ;;  %v12931_v22 = vand.u32 4294901760, %v10514_v41 }
 0x230   :  { %6416 = vmatpush1.bf16.msk.msra.mxu0 %vm12886_vm3, %v11878_v58  ;;  %v12933_v2 = vand.u32 4294901760, %v12838_v57  ;;  %v12936_v41 = vand.u32 4294901760, %v12840_v18  ;;  %v12937_v0 = vand.u32 4294901760, %v10540_v6  ;;  %v12938_v57 = vand.u32 4294901760, %v10553_v15 }
 0x231   :  { %6772 = vmatpush3.bf16.msk.msra.mxu1 %vm10452_vm4, %v11878_v58  ;;  %6418 = vmatprep.subr.msk.bf16.mxu0 %vm12891_vm0, %v11878_v58  ;;  %vm12896_vm4 = vnez %v12895_v53  ;;  %v6441_v31 = vpack.c.bf16 %v12928_v38, %v12927_v42  ;;  %v12967_v42 = vld [vmem:[#allocation72_spill] sm:$0xff]  ;;  %v12969_v38 = vld [vmem:[#allocation166_spill] sm:$0xff] }
 0x232   :  { %6773 = vmatprep.subr.bf16.mxu1 %v12740_v48 }
 0x234   :  { %5819 = vmatmul.mubr.f32.vlgmr.msra.gmra.mrb[48].mxu1 %v12894_v16  ;;  %6420 = vmatpush1.bf16.msk.msra.mxu0 %vm12896_vm4, %v11878_v58 }
 0x235   :  { %6775 = vmatpush3.bf16.msra.mxu1 %v6774_v34  ;;  %6422 = vmatprep.subr.bf16.mxu0 %v6421_v8  ;;  %v6780_v8 = vpack.c.bf16 %v12907_v14, %v12906_v43  ;;  %v12908_v34 = vand.u32 4294901760, %v9528_v25  ;;  %v12913_v25 = vand.u32 4294901760, %v10433_v63  ;;  %v12918_v63 = vand.u32 4294901760, %v12635_v24 }
 0x236   :  { %6776 = vmatprep.subr.bf16.mxu1 %v12740_v48  ;;  %5821 = vmatprep.mubr.msk.f32.mxu1 %vm12800_vm1, %v12737_v39  ;;  %v12923_v24 = vand.u32 4294901760, %v12829_v11  ;;  %v12932_v14 = vand.u32 4294901760, %v10531_v45 }
 0x237   :  { %2597 = vmatmul.mubr.f32.vlgmr.msra.gmra.mrb[6].mxu0 %v12894_v16  ;;  %v6429_v16 = vpack.c.bf16 %v12909_v56, %v12908_v34  ;;  %v6783_v52 = vpack.c.bf16 %v12914_v27, %v12913_v25  ;;  %v6435_v60 = vpack.c.bf16 %v12918_v63, %v12917_v9  ;;  %v12941_v27 = vand.u32 4294901760, %v12848_v61  ;;  %v12984_v61 = vld [vmem:[#allocation79_spill] sm:$0xff] }
 0x238   :  { %6424 = vmatpush1.bf16.msra.mxu0 %v6423_v47  ;;  %5822 = vmatmul.mubr.f32.gmra.mrb[50].mxu1 %v12905_v36  ;;  %v12915_v47 = vand.u32 4294901760, %v9581_v32  ;;  %v12919_v32 = vand.u32 4294901760, %v10456_v62  ;;  %v12925_v62 = vand.u32 4294901760, %v10486_v28  ;;  %v6792_v23 = vpack.c.bf16 %v12932_v14, %v12931_v22 }
 0x239   :  { %6778 = vmatpush3.bf16.msra.mxu1 %v6777_v10  ;;  %6426 = vmatprep.subr.bf16.mxu0 %v6425_v37  ;;  %v12921_v10 = vand.u32 4294901760, %v12826_v17  ;;  %v6439_v37 = vpack.c.bf16 %v12924_v49, %v12923_v24  ;;  %v12962_v24 = vld [vmem:[#allocation69_spill] sm:$0xff]  ;;  %v12964_v49 = vld [vmem:[#allocation163_spill] sm:$0xff] }
 0x23a   :  { %6779 = vmatprep.subr.bf16.mxu1 %v12740_v48  ;;  %5824 = vmatprep.mubr.msk.f32.mxu1 %vm12800_vm1, %v12737_v39  ;;  %v6433_v3 = vpack.c.bf16 %v12916_v21, %v12915_v47  ;;  %v6786_v50 = vpack.c.bf16 %v12920_v13, %v12919_v32  ;;  %v6789_v17 = vpack.c.bf16 %v12926_v54, %v12925_v62  ;;  %v12954_v13 = vld [vmem:[#allocation154_spill] sm:$0xff] }
 0x23b   :  { %2602 = vmatprep.mubr.f32.mxu0 %v12737_v39  ;;  %v6437_v20 = vpack.c.bf16 %v12922_v44, %v12921_v10  ;;  %v12957_v10 = vld [vmem:[#allocation65_spill] sm:$0xff]  ;;  %v12959_v44 = vld [vmem:[#allocation160_spill] sm:$0xff] }
 0x23c   :  { %6428 = vmatpush1.bf16.msra.mxu0 %v6427_v51  ;;  %5825 = vmatmul.mubr.f32.gmra.mrb[52].mxu1 %v12912_v26 }
 0x23d   :  { %6781 = vmatpush3.bf16.msra.mxu1 %v6780_v8  ;;  %6430 = vmatprep.subr.bf16.mxu0 %v6429_v16  ;;  %v12934_v8 = vand.u32 4294901760, %v12837_v5  ;;  %v12935_v16 = vand.u32 4294901760, %v12841_v55  ;;  %v6795_v5 = vpack.c.bf16 %v12938_v57, %v12937_v0  ;;  %v12977_v57 = vld [vmem:[#allocation57_spill] sm:$0xff] }
 0x23e   :  { %6782 = vmatprep.subr.bf16.mxu1 %v12740_v48  ;;  %5859 = vmatprep.mubr.msk.f32.mxu1 %vm12800_vm1, %v12737_v39 }
 0x23f   :  { %2606 = vmatmul.mubr.f32.gmra.mrb[8].mxu0 %v12905_v36  ;;  %v12930_v36 = vand.u32 4294901760, %v12834_v1  ;;  %v6445_v34 = vpack.c.bf16 %v12934_v8, %v12933_v2  ;;  %v6447_v12 = vpack.c.bf16 %v12936_v41, %v12935_v16  ;;  %v12994_v2 = vld [vmem:[#allocation15_spill] sm:$0xff] }
 0x240   :  { %6432 = vmatpush1.bf16.msra.mxu0 %v6431_v4  ;;  %2611 = vmatprep.mubr.f32.mxu0 %v12737_v39  ;;  %v12939_v4 = vand.u32 4294901760, %v12844_v59  ;;  %v12944_v59 = vld [vmem:[#allocation191_spill] sm:$0xff] }
 0x241   :  { %6784 = vmatpush3.bf16.msra.mxu1 %v6783_v52  ;;  %6434 = vmatprep.subr.bf16.mxu0 %v6433_v3  ;;  %v5458_v11 = vpop.f32.mrb[30].mxu1  ;;  %v6443_v43 = vpack.c.bf16 %v12930_v36, %v12929_v30  ;;  %v12942_v52 = vld [vmem:[#allocation55_spill] sm:$0xff] }
 0x242   :  { %6785 = vmatprep.subr.bf16.mxu1 %v12740_v48  ;;  %v5459_v51 = vpop.f32.mrb[31].mxu1  ;;  %v12943_v6 = vand.u32 4294901760, %v12942_v52  ;;  %v12981_v52 = vld [vmem:[#allocation63_spill] sm:$0xff] }
 0x243   :  { %2615 = vmatmul.mubr.f32.gmra.mrb[10].mxu0 %v12912_v26  ;;  %v5460_v28 = vadd.f32 %v5459_v51, %v5458_v11  ;;  %v12985_v3 = vld [vmem:[#allocation67_spill] sm:$0xff] }
 0x244   :  { %6436 = vmatpush1.bf16.msra.mxu0 %v6435_v60  ;;  %2781 = vmatprep.mubr.f32.mxu0 %v12737_v39  ;;  %v6451_v47 = vpack.c.bf16 %v12943_v6, %v12941_v27  ;;  %v12952_v60 = vld [vmem:[#allocation26_spill] sm:$0xff] }
 0x245   :  { %6787 = vmatpush3.bf16.msra.mxu1 %v6786_v50  ;;  %6438 = vmatprep.subr.bf16.mxu0 %v6437_v20  ;;  %v3570_v29 = vadd.f32 %v5460_v28, %v10770_v7  ;;  %v5461_v56 = vpop.f32.mrb[32].mxu1  ;;  %v12940_v7 = vand.u32 4294901760, %v12843_v40  ;;  %v12973_v28 = vld [vmem:[#allocation176_spill] sm:$0xff] }
 0x246   :  { %6788 = vmatprep.subr.bf16.mxu1 %v12740_v48  ;;  %v5462_v1 = vpop.f32.mrb[33].mxu1  ;;  %v40_v20 = vld [vmem:[#allocation2 + $0x1] ss:$8 sm:$0x7] }
 0x247   :  { %v5463_v45 = vadd.f32 %v5462_v1, %v5461_v56  ;;  %v6449_v26 = vpack.c.bf16 %v12940_v7, %v12939_v4  ;;  %v12978_v7 = vld [vmem:[#allocation58_spill] sm:$0xff] }
 0x248   :  { %6440 = vmatpush1.bf16.msra.mxu0 %v6439_v37 }
 0x249   :  { %6790 = vmatpush3.bf16.msra.mxu1 %v6789_v17  ;;  %6442 = vmatprep.subr.bf16.mxu0 %v6441_v31  ;;  %v3581_v55 = vadd.f32 %v5463_v45, %v10782_v19  ;;  %v5464_v25 = vpop.f32.mrb[34].mxu1 }
 0x24a   :  { %6791 = vmatprep.subr.bf16.mxu1 %v12740_v48  ;;  %v5465_v18 = vpop.f32.mrb[35].mxu1 }
 0x24b   :  { %v5466_v15 = vadd.f32 %v5465_v18, %v5464_v25  ;;  %v12980_v18 = vld [vmem:[#allocation31_spill] sm:$0xff] }
 0x24c   :  { %6444 = vmatpush1.bf16.msra.mxu0 %v6443_v43  ;;  %v12993_v43 = vld [vmem:[#allocation13_spill] sm:$0xff] }
 0x24d   :  { %6793 = vmatpush3.bf16.msra.mxu1 %v6792_v23  ;;  %6446 = vmatprep.subr.bf16.mxu0 %v6445_v34  ;;  %v3592_v40 = vadd.f32 %v5466_v15, %v10802_v35  ;;  %v12948_v35 = vld [vmem:[#allocation192_spill] sm:$0xff] }
 0x24e   :  { %6794 = vmatprep.subr.bf16.mxu1 %v12740_v48  ;;  %v12982_v15 = vld [vmem:[#allocation64_spill] sm:$0xff] }
 0x250   :  { %6448 = vmatpush1.bf16.msra.mxu0 %v6447_v12 }
 0x251   :  { %6796 = vmatpush3.bf16.msra.mxu1 %v6795_v5  ;;  %6450 = vmatprep.subr.bf16.mxu0 %v6449_v26  ;;  %v12979_v26 = vld [vmem:[#allocation73_spill] sm:$0xff] }
 0x252   :  { %6797 = vmatprep.subr.bf16.mxu1 %v12740_v48 }
 0x254   :  { %5860 = vmatmul.mubr.f32.vlgmr.msra.gmra.mrb[48].mxu1 %v12944_v59  ;;  %6452 = vmatpush1.bf16.msra.mxu0 %v6451_v47 }
 0x255   :  { %6799 = vmatpush3.bf16.msk.msra.mxu1 %vm10191_vm14, %v11878_v58  ;;  %6454 = vmatprep.subr.msk.bf16.mxu0 %vm12852_vm11, %v11878_v58  ;;  %vm12955_vm14 = vnez %v12954_v13  ;;  %vm12963_vm11 = vnez %v12962_v24  ;;  %v12987_v13 = vld [vmem:[#allocation81_spill] sm:$0xff] }
 0x256   :  { %6800 = vmatprep.subr.bf16.mxu1 %v12740_v48  ;;  %5862 = vmatprep.mubr.msk.f32.mxu1 %vm12800_vm1, %v12737_v39 }
 0x257   :  { %2783 = vmatmul.mubr.f32.vlgmr.msra.gmra.mrb[6].mxu0 %v12944_v59 }
 0x258   :  { %6456 = vmatpush1.bf16.msk.msra.mxu0 %vm12854_vm12, %v11878_v58  ;;  %5863 = vmatmul.mubr.f32.gmra.mrb[50].mxu1 %v12948_v35  ;;  %vm12965_vm12 = vnez %v12964_v49  ;;  %v12989_v49 = vld [vmem:[#allocation177_spill] sm:$0xff] }
 0x259   :  { %6802 = vmatpush3.bf16.msk.msra.mxu1 %vm10214_vm13, %v11878_v58  ;;  %6458 = vmatprep.subr.msk.bf16.mxu0 %vm12858_vm10, %v11878_v58  ;;  %vm12958_vm13 = vnez %v12957_v10  ;;  %vm12968_vm10 = vnez %v12967_v42  ;;  %v12988_v10 = vld [vmem:[#allocation83_spill] sm:$0xff]  ;;  %v12990_v42 = vld [vmem:[#allocation12_spill] sm:$0xff] }
 0x25a   :  { %6803 = vmatprep.subr.bf16.mxu1 %v12740_v48  ;;  %5865 = vmatprep.mubr.msk.f32.mxu1 %vm12800_vm1, %v12737_v39 }
 0x25b   :  { %2788 = vmatprep.mubr.f32.mxu0 %v12737_v39 }
 0x25c   :  { %6460 = vmatpush1.bf16.msk.msra.mxu0 %vm12860_vm6, %v11878_v58  ;;  %5866 = vmatmul.mubr.f32.gmra.mrb[52].mxu1 %v12952_v60  ;;  %vm12970_vm6 = vnez %v12969_v38  ;;  %v4625_v38 = vrot.slane %v40_v20, %v12990_v42 }
 0x25d   :  { %6805 = vmatpush3.bf16.msk.msra.mxu1 %vm10240_vm5, %v11878_v58  ;;  %6462 = vmatprep.subr.msk.bf16.mxu0 %vm12955_vm14, %v11878_v58  ;;  %vm12960_vm5 = vnez %v12959_v44 }
 0x25e   :  { %6806 = vmatprep.subr.bf16.mxu1 %v12740_v48  ;;  %5900 = vmatprep.mubr.msk.f32.mxu1 %vm12800_vm1, %v12737_v39  ;;  %vm4640_vm14 = vcmp.eq.s32.totalorder %v12994_v2, %v4625_v38 }
 0x25f   :  { %2790 = vmatmul.mubr.f32.gmra.mrb[8].mxu0 %v12948_v35 }
 0x260   :  { %6464 = vmatpush1.bf16.msk.msra.mxu0 %vm12866_vm9, %v11878_v58  ;;  %2795 = vmatprep.mubr.f32.mxu0 %v12737_v39 }
 0x261   :  { %6808 = vmatpush3.bf16.msk.msra.mxu1 %vm12958_vm13, %v11878_v58  ;;  %6466 = vmatprep.subr.msk.bf16.mxu0 %vm12960_vm5, %v11878_v58 }
 0x262   :  { %6809 = vmatprep.subr.bf16.mxu1 %v12740_v48 }
 0x263   :  { %2797 = vmatmul.mubr.f32.gmra.mrb[10].mxu0 %v12952_v60 }
 0x264   :  { %6468 = vmatpush1.bf16.msk.msra.mxu0 %vm12871_vm15, %v11878_v58  ;;  %2899 = vmatprep.mubr.f32.mxu0 %v12737_v39  ;;  %vm12974_vm15 = vnez %v12973_v28  ;;  %v4629_v28 = vrot.slane %v40_v20, %v12993_v43 }
 0x265   :  { %6811 = vmatpush3.bf16.msk.msra.mxu1 %vm12963_vm11, %v11878_v58  ;;  %6470 = vmatprep.subr.msk.bf16.mxu0 %vm12965_vm12, %v11878_v58  ;;  %v5499_v37 = vpop.f32.mrb[36].mxu1 }
 0x266   :  { %6812 = vmatprep.subr.bf16.mxu1 %v12740_v48  ;;  %v5500_v62 = vpop.f32.mrb[37].mxu1  ;;  %vm4641_vm13 = vcmp.eq.s32.totalorder %v12994_v2, %v4629_v28 }
 0x267   :  { %v5501_v17 = vadd.f32 %v5500_v62, %v5499_v37  ;;  %v4633_v37 = vrot.slane %v40_v20, %v12989_v49 }
 0x268   :  { %6472 = vmatpush1.bf16.msk.msra.mxu0 %vm12876_vm8, %v11878_v58 }
 0x269   :  { %6814 = vmatpush3.bf16.msk.msra.mxu1 %vm12968_vm10, %v11878_v58  ;;  %6474 = vmatprep.subr.msk.bf16.mxu0 %vm12970_vm6, %v11878_v58  ;;  %v3760_v31 = vadd.f32 %v5501_v17, %v3570_v29  ;;  %v5502_v11 = vpop.f32.mrb[38].mxu1 }
 0x26a   :  { %6815 = vmatprep.subr.bf16.mxu1 %v12740_v48  ;;  %v5503_v51 = vpop.f32.mrb[39].mxu1 }
 0x26b   :  { %v5504_v36 = vadd.f32 %v5503_v51, %v5502_v11  ;;  %v12992_v51 = vld [vmem:[#allocation14_spill] sm:$0xff] }
 0x26c   :  { %6476 = vmatpush1.bf16.msk.msra.mxu0 %vm12881_vm7, %v11878_v58  ;;  %vm12976_vm7 = vnez %v12887_v46  ;;  %vm4638_vm8 = vcmp.eq.s32.totalorder %v12992_v51, %v4629_v28 }
 0x26d   :  { %6817 = vmatpush3.bf16.msk.msra.mxu1 %vm10408_vm2, %v11878_v58  ;;  %6478 = vmatprep.subr.msk.bf16.mxu0 %vm12974_vm15, %v11878_v58  ;;  %v3767_v22 = vadd.f32 %v5504_v36, %v3581_v55  ;;  %v5505_v14 = vpop.f32.mrb[40].mxu1 }
 0x26e   :  { %6818 = vmatprep.subr.bf16.mxu1 %v12740_v48  ;;  %v5506_v23 = vpop.f32.mrb[41].mxu1 }
 0x26f   :  { %v5507_v8 = vadd.f32 %v5506_v23, %v5505_v14 }
 0x270   :  { %6480 = vmatpush1.bf16.msk.msra.mxu0 %vm12886_vm3, %v11878_v58  ;;  %vm4639_vm3 = vcmp.eq.s32.totalorder %v12992_v51, %v4633_v37 }
 0x271   :  { %6820 = vmatpush3.bf16.msk.msra.mxu1 %vm12976_vm7, %v11878_v58  ;;  %6482 = vmatprep.subr.msk.bf16.mxu0 %vm12891_vm0, %v11878_v58  ;;  %v3774_v34 = vadd.f32 %v5507_v8, %v3592_v40  ;;  %vm4642_vm0 = vcmp.eq.s32.totalorder %v12994_v2, %v4633_v37 }
 0x274   :  { %5901 = vmatmul.mubr.f32.vlgmr.msra.gmra.mrb[48].mxu1 %v12944_v59  ;;  %6484 = vmatpush1.bf16.msk.msra.mxu0 %vm12896_vm4, %v11878_v58 }
 0x275   :  { %5903 = vmatprep.mubr.msk.f32.mxu1 %vm12800_vm1, %v12737_v39 }
 0x277   :  { %2901 = vmatmul.mubr.f32.vlgmr.msra.gmra.mrb[6].mxu0 %v12944_v59  ;;  %v12983_v59 = vld [vmem:[#allocation77_spill] sm:$0xff] }
 0x278   :  { %5904 = vmatmul.mubr.f32.gmra.mrb[50].mxu1 %v12948_v35  ;;  %2906 = vmatprep.mubr.f32.mxu0 %v12737_v39 }
 0x279   :  { %5906 = vmatprep.mubr.msk.f32.mxu1 %vm12800_vm1, %v12737_v39  ;;  %vm4637_vm1 = vcmp.eq.s32.totalorder %v12992_v51, %v4625_v38 }
 0x27b   :  { %2908 = vmatmul.mubr.f32.gmra.mrb[8].mxu0 %v12948_v35 }
 0x27c   :  { %5907 = vmatmul.mubr.f32.gmra.mrb[52].mxu1 %v12952_v60  ;;  %2913 = vmatprep.mubr.f32.mxu0 %v12737_v39 }
 0x27f   :  { %2915 = vmatmul.mubr.f32.gmra.mrb[10].mxu0 %v12952_v60  ;;  %v12986_v60 = vld [vmem:[#allocation70_spill] sm:$0xff] }
 0x285   :  { %v5540_v58 = vpop.f32.mrb[42].mxu1 }
 0x286   :  { %v5541_v48 = vpop.f32.mrb[43].mxu1 }
 0x287   :  { %v5542_v33 = vadd.f32 %v5541_v48, %v5540_v58 }
 0x289   :  { %v5543_v46 = vpop.f32.mrb[44].mxu1  ;;  %v3878_v53 = vadd.f32 %v5542_v33, %v3760_v31  ;;  %v12991_v31 = vld [vmem:[#allocation11_spill] sm:$0xff] }
 0x28a   :  { %v5544_v29 = vpop.f32.mrb[45].mxu1  ;;  %vm4636_vm2 = vcmp.eq.s32.totalorder %v12991_v31, %v4633_v37  ;;  %vm4634_vm4 = vcmp.eq.s32.totalorder %v12991_v31, %v4625_v38  ;;  %vm4635_vm9 = vcmp.eq.s32.totalorder %v12991_v31, %v4629_v28 }
 0x28b   :  { %v5545_v56 = vadd.f32 %v5544_v29, %v5543_v46 }
 0x28d   :  { %v5546_v1 = vpop.f32.mrb[46].mxu1  ;;  %v3885_v16 = vadd.f32 %v5545_v56, %v3767_v22 }
 0x28e   :  { %v5547_v41 = vpop.f32.mrb[47].mxu1 }
 0x28f   :  { %v5548_v12 = vadd.f32 %v5547_v41, %v5546_v1 }
 0x291   :  { %v3892_v45 = vadd.f32 %v5548_v12, %v3774_v34 }
 0x2aa   :  { %v1947_v0 = vpop.f32.mrb[0].mxu0 }
 0x2ab   :  { %v6821_v5 = vadd.f32 %v1947_v0, %v12977_v57  ;;  %v1949_v4 = vpop.f32.mrb[1].mxu0 }
 0x2ac   :  { %v6824_v39 = vadd.f32 %v1949_v4, %v12978_v7 }
 0x2ad   :  { %v6822_v55 = vadd.f32 %v6821_v5, %v12979_v26 }
 0x2ae   :  { %v1955_v25 = vpop.f32.mrb[2].mxu0  ;;  %v6825_v27 = vadd.f32 %v6824_v39, %v12980_v18 }
 0x2af   :  { %v6827_v6 = vadd.f32 %v1955_v25, %v12981_v52  ;;  %v1957_v47 = vpop.f32.mrb[3].mxu0 }
 0x2b0   :  { %v6830_v40 = vadd.f32 %v1957_v47, %v12982_v15 }
 0x2b1   :  { %v6828_v19 = vadd.f32 %v6827_v6, %v12983_v59 }
 0x2b2   :  { %v1963_v21 = vpop.f32.mrb[4].mxu0  ;;  %v6831_v35 = vadd.f32 %v6830_v40, %v12984_v61 }
 0x2b3   :  { %v6833_v9 = vadd.f32 %v1963_v21, %v12985_v3  ;;  %v1965_v63 = vpop.f32.mrb[5].mxu0  ;;  %v42_v3 = vld [vmem:[#allocation2 + $0x2] ss:$8 sm:$0x7] }
 0x2b4   :  { %v6836_v32 = vadd.f32 %v1965_v63, %v12986_v60  ;;  %v7011_v60 = vmov 1966171168   ;;  %v50_v37 = vrot.slane %v42_v3, %v12993_v43 }
 0x2b5   :  { %v6834_v50 = vadd.f32 %v6833_v9, %v12987_v13 }
 0x2b6   :  { %v6837_v44 = vadd.f32 %v6836_v32, %v12988_v10  ;;  %v4684_v32 = vunpack.c.l.s4 %v7011_v60  ;;  %v54_v10 = vrot.slane %v42_v3, %v12989_v49 }
 0x347   :  { %v4606_v24 = vpop.f32.mrb[48].mxu1 }
 0x348   :  { %v6839_v62 = vadd.f32 %v4606_v24, %v3878_v53  ;;  %v5902_v54 = vpop.f32.mrb[49].mxu1 }
 0x349   :  { %v4685_v54 = vunpack.c.0.s8 %v4684_v32 }
 0x34a   :  { %v2902_v17 = vpop.f32.mrb[6].mxu0  ;;  %v4645_v8 = vsel %vm4636_vm2, %v6839_v62, 0.0 }
 0x34b   :  { %v4612_v11 = vpop.f32.mrb[50].mxu1  ;;  %v6823_v30 = vadd.f32 %v6822_v55, %v2902_v17  ;;  %v2904_v36 = vpop.f32.mrb[7].mxu0 }
 0x34c   :  { %v6840_v22 = vadd.f32 %v4612_v11, %v3885_v16  ;;  %v5905_v14 = vpop.f32.mrb[51].mxu1  ;;  %v6826_v23 = vadd.f32 %v6825_v27, %v2904_v36  ;;  %v4688_v36 = vsub.s32 %v4685_v54, %v12991_v31 }
 0x34d   :  { %v4643_v16 = vsel %vm4634_vm4, %v6823_v30, 0.0 }
 0x34e   :  { %v4648_v34 = vsel %vm4639_vm3, %v6840_v22, 0.0  ;;  %v2909_v58 = vpop.f32.mrb[8].mxu0  ;;  %v4644_v0 = vsel %vm4635_vm9, %v6826_v23, 0.0 }
 0x34f   :  { %v4668_v48 = vadd.f32 %v4648_v34, %v4645_v8  ;;  %v4618_v33 = vpop.f32.mrb[52].mxu1  ;;  %v6829_v46 = vadd.f32 %v6828_v19, %v2909_v58  ;;  %v2911_v53 = vpop.f32.mrb[9].mxu0 }
 0x350   :  { %v6841_v29 = vadd.f32 %v4618_v33, %v3892_v45  ;;  %v5908_v56 = vpop.f32.mrb[53].mxu1  ;;  %v6832_v1 = vadd.f32 %v6831_v35, %v2911_v53 }
 0x351   :  { %v4646_v41 = vsel %vm4637_vm1, %v6829_v46, 0.0 }
 0x352   :  { %v4651_v12 = vsel %vm4642_vm0, %v6841_v29, 0.0  ;;  %v4652_v57 = vadd.f32 %v4646_v41, %v4643_v16  ;;  %v4647_v5 = vsel %vm4638_vm8, %v6832_v1, 0.0  ;;  %v2916_v4 = vpop.f32.mrb[10].mxu0 }
 0x353   :  { %v4669_v7 = vadd.f32 %v4668_v48, %v4651_v12  ;;  %v4660_v39 = vadd.f32 %v4647_v5, %v4644_v0  ;;  %v6835_v26 = vadd.f32 %v6834_v50, %v2916_v4  ;;  %v2918_v55 = vpop.f32.mrb[11].mxu0 }
 0x354   :  { %v6838_v45 = vadd.f32 %v6837_v44, %v2918_v55  ;;  %v46_v44 = vrot.slane %v42_v3, %v12990_v42  ;;  %v12995_v42 = vlaneseq }
 0x355   :  { %v4670_v25 = vrot.slane %v4669_v7, 4  ;;  %v4649_v18 = vsel %vm4640_vm14, %v6835_v26, 0.0 }
 0x356   :  { %v4653_v27 = vadd.f32 %v4652_v57, %v4649_v18  ;;  %v4650_v52 = vsel %vm4641_vm13, %v6838_v45, 0.0  ;;  %vm4708_vm5 = vcmp.lt.s32.totalorder %v12995_v42, 384 }
 0x357   :  { %v4671_v6 = vadd.f32 %v4670_v25, %v4669_v7  ;;  %v4661_v47 = vadd.f32 %v4660_v39, %v4650_v52 }
 0x358   :  { %v4654_v15 = vrot.slane %v4653_v27, 4 }
 0x359   :  { %v4672_v40 = vrot.slane %v4671_v6, 2  ;;  %v4662_v59 = vrot.slane %v4661_v47, 4 }
 0x35a   :  { %v4655_v19 = vadd.f32 %v4654_v15, %v4653_v27 }
 0x35b   :  { %v4673_v21 = vadd.f32 %v4672_v40, %v4671_v6  ;;  %v4663_v61 = vadd.f32 %v4662_v59, %v4661_v47 }
 0x35c   :  { %v4656_v35 = vrot.slane %v4655_v19, 2 }
 0x35d   :  { %v4674_v9 = vrot.slane %v4673_v21, 1  ;;  %v4664_v63 = vrot.slane %v4663_v61, 2 }
 0x35e   :  { %v4657_v13 = vadd.f32 %v4656_v35, %v4655_v19 }
 0x35f   :  { %v4665_v50 = vadd.f32 %v4664_v63, %v4663_v61  ;;  %v4675_v24 = vadd.f32 %v4674_v9, %v4673_v21 }
 0x360   :  { %v4658_v20 = vrot.slane %v4657_v13, 1 }
 0x361   :  { %v4666_v62 = vrot.slane %v4665_v50, 1  ;;  %v4678_v51 = vadd.f32 %v4675_v24, %v54_v10 }
 0x362   :  { %v4659_v17 = vadd.f32 %v4658_v20, %v4657_v13 }
 0x363   :  { %v4667_v38 = vadd.f32 %v4666_v62, %v4665_v50  ;;  %v4696_v14 = vrot.slane %v4678_v51, %v4688_v36 }
 0x364   :  { %v4676_v11 = vadd.f32 %v4659_v17, %v46_v44 }
 0x365   :  { %v4677_v30 = vadd.f32 %v4667_v38, %v50_v37 }
 0x367   :  { %v4682_v28 = vcombine.low %v4676_v11, %v4677_v30 }
 0x369   :  { %v4689_v22 = vrot.slane %v4682_v28, %v4688_v36 }
 0x36b   :  { %v4697_v49 = vcombine.low %v4689_v22, %v4696_v14 }
 0x36d   :  { %v4704_v23 = vrot.slane %v4697_v49, %v4688_v36 }
 0x36f   :  { %4710 = vst.msk [vmem:[#allocation7] sm:$0x7] %vm4708_vm5, %v4704_v23 }
 0x370   :  { %6986 = shalt.err (!%p6983_p6)
}
 0x371   :  { %s6987_s11 = scalar_lea.hbm %s11072_s2, 48 }
 0x372   :  { %p6988_p7 = scmp.ne.s32.totalorder %s11072_s2, %s6987_s11  ;;  %p6991_p8 = scmp.lt.u32.totalorder %s6987_s11, %s11072_s2 }
 0x374   :  { %p6993_p9 = pnand %p6991_p8, %p6988_p7 }
 0x376   :  { %6996 = shalt.err (!%p6993_p9)
}
 0x377   :  { %4720 = dma.vmem_to_hbm [thread:$0]  %s4718_s6, 48, %s11072_s2, [#allocation4]  }
 0x378   :  { %7001 = dma.done.wait [#allocation4], 48  }
 0x379   :  { %7002 = vsyncadd [#allocation4], 4294967248 }
 0x37a   :  { %4724 = vsyncpa [#allocation3], 1 }
 0x37b   :  { %4725 = vsyncpa [#allocation6], 1 }
 0x37c   :  { %4726 = vsyncpa [#allocation4], 1 }

</bundles_post_ra>
